<compile_context>
chip_gen: v5e
topology: v5e:2x2
jax: 0.10.0
libtpu: 0.0.40
codegen_flags: <defaults>
</compile_context>

<pallas_src>
import numpy as np

import jax
import jax.numpy as jnp
from jax.experimental import pallas as pl
from jax.experimental.pallas import tpu as pltpu


def _round_up(x, m):
    return ((x + m - 1) // m) * m


@jax.jit
def downsample_forward(x, w, gamma, beta, eps=1e-5):
    """x: (N, C, D, H, W) f32.  w: (C, C, 3, 3, 3) f32 (OIDHW).
    Returns (N, C, Do, Ho, Wo) f32, matching PyTorch training-mode forward."""
    N, C, D, H, W = x.shape
    Do, Ho, Wo = (D - 1) // 2 + 1, (H - 1) // 2 + 1, (W - 1) // 2 + 1
    Dq, Hq, Wq = Do + 1, Ho + 1, Wo + 1          # phase-slab spatial extents
    Lq = Dq * Hq * Wq                            # flattened (incl. garbage cols)
    L_OUT = _round_up(Lq, 128)                   # lane-dense output width
    MAX_OFF = Hq * Wq + Wq + 1                   # largest tap lane-offset
    LPAD = _round_up(L_OUT + MAX_OFF, 128)       # phase slab lane width (halo)

    # ---------------- XLA glue: reflect pad + phase decomposition -------------
    # (single compact reshuffle, ~1.x input bytes; replaces the 3.4x im2col)
    xpad = jnp.pad(x, ((0, 0), (0, 0), (1, 1), (1, 1), (1, 1)), mode="reflect")
    phases = []
    for pd in range(2):
        for ph in range(2):
            for pw in range(2):
                s = xpad[:, :, pd::2, ph::2, pw::2]        # (N, C, dq, hq, wq)
                s = jnp.pad(s, ((0, 0), (0, 0),
                                (0, Dq - s.shape[2]),
                                (0, Hq - s.shape[3]),
                                (0, Wq - s.shape[4])))
                phases.append(s.reshape(N, C, Lq))
    PH = jnp.stack(phases, axis=1).astype(jnp.float32)     # (N, 8, C, Lq)
    PH = jnp.pad(PH, ((0, 0), (0, 0), (0, 0), (0, LPAD - Lq)))

    # Weight (Cout, Cin, kd, kh, kw) -> (27, Cout, Cin), tap t = kd*9 + kh*3 + kw
    wt = jnp.transpose(w, (2, 3, 4, 0, 1)).reshape(27, C, C).astype(jnp.float32)

    # Validity mask over the flattened output index space (garbage lanes -> 0).
    # BN statistics divide by the TRUE count (N*Do*Ho*Wo); garbage/padded lanes
    # are zeroed by this mask, so they can never corrupt the batch stats.
    l = np.arange(L_OUT)
    rem = l % (Hq * Wq)
    valid = (l // (Hq * Wq) < Do) & (rem // Wq < Ho) & (rem % Wq < Wo)
    mask = jnp.asarray(valid, dtype=jnp.float32).reshape(1, L_OUT)

    # --------------------- kernel 1: conv + partial BN stats ------------------
    def conv_stats_kernel(ph_ref, w_ref, mask_ref, o_ref, sum_ref, ssq_ref):
        acc = jnp.zeros((C, L_OUT), jnp.float32)
        for t in range(27):                      # static unroll over taps
            kd, kh, kw = t // 9, (t // 3) % 3, t % 3
            q = (kd % 2) * 4 + (kh % 2) * 2 + (kw % 2)
            off = (kd // 2) * (Hq * Wq) + (kh // 2) * Wq + (kw // 2)
            x_t = ph_ref[0, q, :, pl.ds(off, L_OUT)]        # (C, L_OUT)
            acc = acc + jnp.dot(w_ref[t, :, :], x_t,
                                preferred_element_type=jnp.float32)
        o_ref[0, :, :] = acc
        m = mask_ref[...]                                    # (1, L_OUT)
        am = acc * m
        # NOTE: single-pass E[x^2]-E[x]^2 in f32; fine at this scale but can
        # lose digits if |mean| >> std (see wrapper).
        sum_ref[0, :, :] = jnp.sum(am, axis=1, keepdims=True)
        ssq_ref[0, :, :] = jnp.sum(acc * am, axis=1, keepdims=True)

    conv_out, psum, pssq = pl.pallas_call(
        conv_stats_kernel,
        out_shape=(
            jax.ShapeDtypeStruct((N, C, L_OUT), jnp.float32),
            jax.ShapeDtypeStruct((N, C, 1), jnp.float32),
            jax.ShapeDtypeStruct((N, C, 1), jnp.float32),
        ),
        grid_spec=pltpu.PrefetchScalarGridSpec(
            num_scalar_prefetch=0,
            grid=(N,),
            in_specs=[
                pl.BlockSpec((1, 8, C, LPAD), lambda n: (n, 0, 0, 0)),
                pl.BlockSpec((27, C, C), lambda n: (0, 0, 0)),
                pl.BlockSpec((1, L_OUT), lambda n: (0, 0)),
            ],
            out_specs=[
                pl.BlockSpec((1, C, L_OUT), lambda n: (n, 0, 0)),
                pl.BlockSpec((1, C, 1), lambda n: (n, 0, 0)),
                pl.BlockSpec((1, C, 1), lambda n: (n, 0, 0)),
            ],
        ),
        compiler_params=pltpu.CompilerParams(
            dimension_semantics=("parallel",),      # no carry -> shardable (v7x)
            vmem_limit_bytes=32 * 1024 * 1024,
        ),
    )(PH, wt, mask)

    # ----------------- BatchNorm batch stats (reduce partials) ----------------
    cnt = jnp.float32(N * Do * Ho * Wo)             # TRUE element count
    ch_sum = jnp.sum(psum[:, :, 0], axis=0)         # (C,)
    ch_ssq = jnp.sum(pssq[:, :, 0], axis=0)         # (C,)
    mean = ch_sum / cnt
    var = ch_ssq / cnt - mean * mean                # biased variance
    inv = jax.lax.rsqrt(var + eps)
    scale = (gamma * inv).reshape(1, C, 1)
    shift = (beta - mean * gamma * inv).reshape(1, C, 1)

    # ------------------------- kernel 2: BN affine + ReLU ---------------------
    def bn_relu_kernel(x_ref, scale_ref, shift_ref, o_ref):
        o_ref[...] = jnp.maximum(x_ref[...] * scale_ref[...] + shift_ref[...], 0.0)

    y = pl.pallas_call(
        bn_relu_kernel,
        out_shape=jax.ShapeDtypeStruct((N, C, L_OUT), jnp.float32),
        grid_spec=pltpu.PrefetchScalarGridSpec(
            num_scalar_prefetch=0,
            grid=(N,),
            in_specs=[
                pl.BlockSpec((1, C, L_OUT), lambda n: (n, 0, 0)),
                pl.BlockSpec((1, C, 1), lambda n: (0, 0, 0)),
                pl.BlockSpec((1, C, 1), lambda n: (0, 0, 0)),
            ],
            out_specs=pl.BlockSpec((1, C, L_OUT), lambda n: (n, 0, 0)),
        ),
        input_output_aliases={0: 0},                 # reuse conv buffer in place
        compiler_params=pltpu.CompilerParams(
            dimension_semantics=("parallel",)),
    )(conv_out, scale, shift)

    # Drop garbage lanes and return NCDHW (no transpose needed).
    y = y[:, :, :Lq].reshape(N, C, Dq, Hq, Wq)[:, :, :Do, :Ho, :Wo]
    return y


# --------------------------- pure-JAX reference ------------------------------

def _reference(x, w, gamma, beta, eps=1e-5):
    xpad = jnp.pad(x, ((0, 0), (0, 0), (1, 1), (1, 1), (1, 1)), mode="reflect")
    conv = jax.lax.conv_general_dilated(
        xpad, w, window_strides=(2, 2, 2), padding="VALID",
        dimension_numbers=("NCDHW", "OIDHW", "NCDHW"))
    mean = jnp.mean(conv, axis=(0, 2, 3, 4), keepdims=True)
    var = jnp.mean((conv - mean) ** 2, axis=(0, 2, 3, 4), keepdims=True)
    g = gamma.reshape(1, -1, 1, 1, 1)
    b = beta.reshape(1, -1, 1, 1, 1)
    return jnp.maximum((conv - mean) * jax.lax.rsqrt(var + eps) * g + b, 0.0)


# ---------------------------------- main --------------------------------------

if __name__ == "__main__":
    key = jax.random.PRNGKey(0)
    kx, kw = jax.random.split(key)

    N, C, D, H, W = 2, 4, 16, 16, 16
    x = jax.random.normal(kx, (N, C, D, H, W), dtype=jnp.float32)

    # Deterministic synthetic parameters (not a checkpoint):
    w = jax.random.normal(kw, (C, C, 3, 3, 3), dtype=jnp.float32) * 0.1
    gamma = jnp.ones((C,), dtype=jnp.float32)   # BatchNorm3d default affine init
    beta = jnp.zeros((C,), dtype=jnp.float32)

    out = downsample_forward(x, w, gamma, beta)
    out = jax.block_until_ready(out)

    ref = _reference(x, w, gamma, beta)
    assert out.shape == (N, C, 8, 8, 8), out.shape
    assert jnp.allclose(out, ref, atol=1e-4, rtol=1e-4), \
        float(jnp.max(jnp.abs(out - ref)))

    print("KERNEL_OK")
</pallas_src>

<mosaic_0001>
module attributes {stable_mosaic.version = 11 : i64} {
  func.func @conv_stats_kernel(%arg0: i32, %arg1: memref<1x8x4x896xf32, #tpu.memory_space<vmem>>, %arg2: memref<27x4x4xf32, #tpu.memory_space<vmem>>, %arg3: memref<1x768xf32, #tpu.memory_space<vmem>>, %arg4: memref<1x4x768xf32, #tpu.memory_space<vmem>>, %arg5: memref<1x4x1xf32, #tpu.memory_space<vmem>>, %arg6: memref<1x4x1xf32, #tpu.memory_space<vmem>>) attributes {dimension_semantics = [#tpu.dimension_semantics<parallel>], iteration_bounds = array<i64: 2>, scalar_prefetch = 0 : i64, scratch_operands = 0 : i64, tpu.core_type = #tpu.core_type<tc>, window_params = [{transform_indices = @transform_0, window_bounds = array<i64: 1, 8, 4, 896>}, {pipeline_mode = #tpu.pipeline_mode<synchronous>, transform_indices = @transform_1, window_bounds = array<i64: 27, 4, 4>}, {pipeline_mode = #tpu.pipeline_mode<synchronous>, transform_indices = @transform_2, window_bounds = array<i64: 1, 768>}, {transform_indices = @transform_3, window_bounds = array<i64: 1, 4, 768>}, {transform_indices = @transform_4, window_bounds = array<i64: 1, 4, 1>}, {transform_indices = @transform_5, window_bounds = array<i64: 1, 4, 1>}]} {
    %cst = arith.constant 0.000000e+00 : f32
    %0 = vector.broadcast %cst : f32 to vector<4x768xf32>
    %c0 = arith.constant 0 : index
    %c0_0 = arith.constant 0 : index
    %c0_1 = arith.constant 0 : index
    %c0_2 = arith.constant 0 : index
    %1 = vector.load %arg1[%c0, %c0_0, %c0_1, %c0_2] : memref<1x8x4x896xf32, #tpu.memory_space<vmem>>, vector<1x1x4x768xf32>
    %2 = vector.shape_cast %1 : vector<1x1x4x768xf32> to vector<4x768xf32>
    %c0_3 = arith.constant 0 : index
    %c0_4 = arith.constant 0 : index
    %c0_5 = arith.constant 0 : index
    %3 = vector.load %arg2[%c0_3, %c0_4, %c0_5] : memref<27x4x4xf32, #tpu.memory_space<vmem>>, vector<1x4x4xf32>
    %4 = vector.shape_cast %3 : vector<1x4x4xf32> to vector<4x4xf32>
    %cst_6 = arith.constant dense<0.000000e+00> : vector<4x768xf32>
    %5 = tpu.matmul %4, %2, %cst_6 {dimension_numbers = #tpu.dot_dimension_numbers<[1], [0], [0], [1], [0, 0, 1, 1], [], []>} : vector<4x4xf32>, vector<4x768xf32>, vector<4x768xf32> -> vector<4x768xf32>
    %6 = arith.addf %0, %5 : vector<4x768xf32>
    %c0_7 = arith.constant 0 : index
    %c1 = arith.constant 1 : index
    %c0_8 = arith.constant 0 : index
    %c0_9 = arith.constant 0 : index
    %7 = vector.load %arg1[%c0_7, %c1, %c0_8, %c0_9] : memref<1x8x4x896xf32, #tpu.memory_space<vmem>>, vector<1x1x4x768xf32>
    %8 = vector.shape_cast %7 : vector<1x1x4x768xf32> to vector<4x768xf32>
    %c1_10 = arith.constant 1 : index
    %c0_11 = arith.constant 0 : index
    %c0_12 = arith.constant 0 : index
    %9 = vector.load %arg2[%c1_10, %c0_11, %c0_12] : memref<27x4x4xf32, #tpu.memory_space<vmem>>, vector<1x4x4xf32>
    %10 = vector.shape_cast %9 : vector<1x4x4xf32> to vector<4x4xf32>
    %cst_13 = arith.constant dense<0.000000e+00> : vector<4x768xf32>
    %11 = tpu.matmul %10, %8, %cst_13 {dimension_numbers = #tpu.dot_dimension_numbers<[1], [0], [0], [1], [0, 0, 1, 1], [], []>} : vector<4x4xf32>, vector<4x768xf32>, vector<4x768xf32> -> vector<4x768xf32>
    %12 = arith.addf %6, %11 : vector<4x768xf32>
    %c0_14 = arith.constant 0 : index
    %c0_15 = arith.constant 0 : index
    %c0_16 = arith.constant 0 : index
    %c1_17 = arith.constant 1 : index
    %13 = vector.load %arg1[%c0_14, %c0_15, %c0_16, %c1_17] : memref<1x8x4x896xf32, #tpu.memory_space<vmem>>, vector<1x1x4x768xf32>
    %14 = vector.shape_cast %13 : vector<1x1x4x768xf32> to vector<4x768xf32>
    %c2 = arith.constant 2 : index
    %c0_18 = arith.constant 0 : index
    %c0_19 = arith.constant 0 : index
    %15 = vector.load %arg2[%c2, %c0_18, %c0_19] : memref<27x4x4xf32, #tpu.memory_space<vmem>>, vector<1x4x4xf32>
    %16 = vector.shape_cast %15 : vector<1x4x4xf32> to vector<4x4xf32>
    %cst_20 = arith.constant dense<0.000000e+00> : vector<4x768xf32>
    %17 = tpu.matmul %16, %14, %cst_20 {dimension_numbers = #tpu.dot_dimension_numbers<[1], [0], [0], [1], [0, 0, 1, 1], [], []>} : vector<4x4xf32>, vector<4x768xf32>, vector<4x768xf32> -> vector<4x768xf32>
    %18 = arith.addf %12, %17 : vector<4x768xf32>
    %c0_21 = arith.constant 0 : index
    %c2_22 = arith.constant 2 : index
    %c0_23 = arith.constant 0 : index
    %c0_24 = arith.constant 0 : index
    %19 = vector.load %arg1[%c0_21, %c2_22, %c0_23, %c0_24] : memref<1x8x4x896xf32, #tpu.memory_space<vmem>>, vector<1x1x4x768xf32>
    %20 = vector.shape_cast %19 : vector<1x1x4x768xf32> to vector<4x768xf32>
    %c3 = arith.constant 3 : index
    %c0_25 = arith.constant 0 : index
    %c0_26 = arith.constant 0 : index
    %21 = vector.load %arg2[%c3, %c0_25, %c0_26] : memref<27x4x4xf32, #tpu.memory_space<vmem>>, vector<1x4x4xf32>
    %22 = vector.shape_cast %21 : vector<1x4x4xf32> to vector<4x4xf32>
    %cst_27 = arith.constant dense<0.000000e+00> : vector<4x768xf32>
    %23 = tpu.matmul %22, %20, %cst_27 {dimension_numbers = #tpu.dot_dimension_numbers<[1], [0], [0], [1], [0, 0, 1, 1], [], []>} : vector<4x4xf32>, vector<4x768xf32>, vector<4x768xf32> -> vector<4x768xf32>
    %24 = arith.addf %18, %23 : vector<4x768xf32>
    %c0_28 = arith.constant 0 : index
    %c3_29 = arith.constant 3 : index
    %c0_30 = arith.constant 0 : index
    %c0_31 = arith.constant 0 : index
    %25 = vector.load %arg1[%c0_28, %c3_29, %c0_30, %c0_31] : memref<1x8x4x896xf32, #tpu.memory_space<vmem>>, vector<1x1x4x768xf32>
    %26 = vector.shape_cast %25 : vector<1x1x4x768xf32> to vector<4x768xf32>
    %c4 = arith.constant 4 : index
    %c0_32 = arith.constant 0 : index
    %c0_33 = arith.constant 0 : index
    %27 = vector.load %arg2[%c4, %c0_32, %c0_33] : memref<27x4x4xf32, #tpu.memory_space<vmem>>, vector<1x4x4xf32>
    %28 = vector.shape_cast %27 : vector<1x4x4xf32> to vector<4x4xf32>
    %cst_34 = arith.constant dense<0.000000e+00> : vector<4x768xf32>
    %29 = tpu.matmul %28, %26, %cst_34 {dimension_numbers = #tpu.dot_dimension_numbers<[1], [0], [0], [1], [0, 0, 1, 1], [], []>} : vector<4x4xf32>, vector<4x768xf32>, vector<4x768xf32> -> vector<4x768xf32>
    %30 = arith.addf %24, %29 : vector<4x768xf32>
    %c0_35 = arith.constant 0 : index
    %c2_36 = arith.constant 2 : index
    %c0_37 = arith.constant 0 : index
    %c1_38 = arith.constant 1 : index
    %31 = vector.load %arg1[%c0_35, %c2_36, %c0_37, %c1_38] : memref<1x8x4x896xf32, #tpu.memory_space<vmem>>, vector<1x1x4x768xf32>
    %32 = vector.shape_cast %31 : vector<1x1x4x768xf32> to vector<4x768xf32>
    %c5 = arith.constant 5 : index
    %c0_39 = arith.constant 0 : index
    %c0_40 = arith.constant 0 : index
    %33 = vector.load %arg2[%c5, %c0_39, %c0_40] : memref<27x4x4xf32, #tpu.memory_space<vmem>>, vector<1x4x4xf32>
    %34 = vector.shape_cast %33 : vector<1x4x4xf32> to vector<4x4xf32>
    %cst_41 = arith.constant dense<0.000000e+00> : vector<4x768xf32>
    %35 = tpu.matmul %34, %32, %cst_41 {dimension_numbers = #tpu.dot_dimension_numbers<[1], [0], [0], [1], [0, 0, 1, 1], [], []>} : vector<4x4xf32>, vector<4x768xf32>, vector<4x768xf32> -> vector<4x768xf32>
    %36 = arith.addf %30, %35 : vector<4x768xf32>
    %c0_42 = arith.constant 0 : index
    %c0_43 = arith.constant 0 : index
    %c0_44 = arith.constant 0 : index
    %c9 = arith.constant 9 : index
    %37 = vector.load %arg1[%c0_42, %c0_43, %c0_44, %c9] : memref<1x8x4x896xf32, #tpu.memory_space<vmem>>, vector<1x1x4x768xf32>
    %38 = vector.shape_cast %37 : vector<1x1x4x768xf32> to vector<4x768xf32>
    %c6 = arith.constant 6 : index
    %c0_45 = arith.constant 0 : index
    %c0_46 = arith.constant 0 : index
    %39 = vector.load %arg2[%c6, %c0_45, %c0_46] : memref<27x4x4xf32, #tpu.memory_space<vmem>>, vector<1x4x4xf32>
    %40 = vector.shape_cast %39 : vector<1x4x4xf32> to vector<4x4xf32>
    %cst_47 = arith.constant dense<0.000000e+00> : vector<4x768xf32>
    %41 = tpu.matmul %40, %38, %cst_47 {dimension_numbers = #tpu.dot_dimension_numbers<[1], [0], [0], [1], [0, 0, 1, 1], [], []>} : vector<4x4xf32>, vector<4x768xf32>, vector<4x768xf32> -> vector<4x768xf32>
    %42 = arith.addf %36, %41 : vector<4x768xf32>
    %c0_48 = arith.constant 0 : index
    %c1_49 = arith.constant 1 : index
    %c0_50 = arith.constant 0 : index
    %c9_51 = arith.constant 9 : index
    %43 = vector.load %arg1[%c0_48, %c1_49, %c0_50, %c9_51] : memref<1x8x4x896xf32, #tpu.memory_space<vmem>>, vector<1x1x4x768xf32>
    %44 = vector.shape_cast %43 : vector<1x1x4x768xf32> to vector<4x768xf32>
    %c7 = arith.constant 7 : index
    %c0_52 = arith.constant 0 : index
    %c0_53 = arith.constant 0 : index
    %45 = vector.load %arg2[%c7, %c0_52, %c0_53] : memref<27x4x4xf32, #tpu.memory_space<vmem>>, vector<1x4x4xf32>
    %46 = vector.shape_cast %45 : vector<1x4x4xf32> to vector<4x4xf32>
    %cst_54 = arith.constant dense<0.000000e+00> : vector<4x768xf32>
    %47 = tpu.matmul %46, %44, %cst_54 {dimension_numbers = #tpu.dot_dimension_numbers<[1], [0], [0], [1], [0, 0, 1, 1], [], []>} : vector<4x4xf32>, vector<4x768xf32>, vector<4x768xf32> -> vector<4x768xf32>
    %48 = arith.addf %42, %47 : vector<4x768xf32>
    %c0_55 = arith.constant 0 : index
    %c0_56 = arith.constant 0 : index
    %c0_57 = arith.constant 0 : index
    %c10 = arith.constant 10 : index
    %49 = vector.load %arg1[%c0_55, %c0_56, %c0_57, %c10] : memref<1x8x4x896xf32, #tpu.memory_space<vmem>>, vector<1x1x4x768xf32>
    %50 = vector.shape_cast %49 : vector<1x1x4x768xf32> to vector<4x768xf32>
    %c8 = arith.constant 8 : index
    %c0_58 = arith.constant 0 : index
    %c0_59 = arith.constant 0 : index
    %51 = vector.load %arg2[%c8, %c0_58, %c0_59] : memref<27x4x4xf32, #tpu.memory_space<vmem>>, vector<1x4x4xf32>
    %52 = vector.shape_cast %51 : vector<1x4x4xf32> to vector<4x4xf32>
    %cst_60 = arith.constant dense<0.000000e+00> : vector<4x768xf32>
    %53 = tpu.matmul %52, %50, %cst_60 {dimension_numbers = #tpu.dot_dimension_numbers<[1], [0], [0], [1], [0, 0, 1, 1], [], []>} : vector<4x4xf32>, vector<4x768xf32>, vector<4x768xf32> -> vector<4x768xf32>
    %54 = arith.addf %48, %53 : vector<4x768xf32>
    %c0_61 = arith.constant 0 : index
    %c4_62 = arith.constant 4 : index
    %c0_63 = arith.constant 0 : index
    %c0_64 = arith.constant 0 : index
    %55 = vector.load %arg1[%c0_61, %c4_62, %c0_63, %c0_64] : memref<1x8x4x896xf32, #tpu.memory_space<vmem>>, vector<1x1x4x768xf32>
    %56 = vector.shape_cast %55 : vector<1x1x4x768xf32> to vector<4x768xf32>
    %c9_65 = arith.constant 9 : index
    %c0_66 = arith.constant 0 : index
    %c0_67 = arith.constant 0 : index
    %57 = vector.load %arg2[%c9_65, %c0_66, %c0_67] : memref<27x4x4xf32, #tpu.memory_space<vmem>>, vector<1x4x4xf32>
    %58 = vector.shape_cast %57 : vector<1x4x4xf32> to vector<4x4xf32>
    %cst_68 = arith.constant dense<0.000000e+00> : vector<4x768xf32>
    %59 = tpu.matmul %58, %56, %cst_68 {dimension_numbers = #tpu.dot_dimension_numbers<[1], [0], [0], [1], [0, 0, 1, 1], [], []>} : vector<4x4xf32>, vector<4x768xf32>, vector<4x768xf32> -> vector<4x768xf32>
    %60 = arith.addf %54, %59 : vector<4x768xf32>
    %c0_69 = arith.constant 0 : index
    %c5_70 = arith.constant 5 : index
    %c0_71 = arith.constant 0 : index
    %c0_72 = arith.constant 0 : index
    %61 = vector.load %arg1[%c0_69, %c5_70, %c0_71, %c0_72] : memref<1x8x4x896xf32, #tpu.memory_space<vmem>>, vector<1x1x4x768xf32>
    %62 = vector.shape_cast %61 : vector<1x1x4x768xf32> to vector<4x768xf32>
    %c10_73 = arith.constant 10 : index
    %c0_74 = arith.constant 0 : index
    %c0_75 = arith.constant 0 : index
    %63 = vector.load %arg2[%c10_73, %c0_74, %c0_75] : memref<27x4x4xf32, #tpu.memory_space<vmem>>, vector<1x4x4xf32>
    %64 = vector.shape_cast %63 : vector<1x4x4xf32> to vector<4x4xf32>
    %cst_76 = arith.constant dense<0.000000e+00> : vector<4x768xf32>
    %65 = tpu.matmul %64, %62, %cst_76 {dimension_numbers = #tpu.dot_dimension_numbers<[1], [0], [0], [1], [0, 0, 1, 1], [], []>} : vector<4x4xf32>, vector<4x768xf32>, vector<4x768xf32> -> vector<4x768xf32>
    %66 = arith.addf %60, %65 : vector<4x768xf32>
    %c0_77 = arith.constant 0 : index
    %c4_78 = arith.constant 4 : index
    %c0_79 = arith.constant 0 : index
    %c1_80 = arith.constant 1 : index
    %67 = vector.load %arg1[%c0_77, %c4_78, %c0_79, %c1_80] : memref<1x8x4x896xf32, #tpu.memory_space<vmem>>, vector<1x1x4x768xf32>
    %68 = vector.shape_cast %67 : vector<1x1x4x768xf32> to vector<4x768xf32>
    %c11 = arith.constant 11 : index
    %c0_81 = arith.constant 0 : index
    %c0_82 = arith.constant 0 : index
    %69 = vector.load %arg2[%c11, %c0_81, %c0_82] : memref<27x4x4xf32, #tpu.memory_space<vmem>>, vector<1x4x4xf32>
    %70 = vector.shape_cast %69 : vector<1x4x4xf32> to vector<4x4xf32>
    %cst_83 = arith.constant dense<0.000000e+00> : vector<4x768xf32>
    %71 = tpu.matmul %70, %68, %cst_83 {dimension_numbers = #tpu.dot_dimension_numbers<[1], [0], [0], [1], [0, 0, 1, 1], [], []>} : vector<4x4xf32>, vector<4x768xf32>, vector<4x768xf32> -> vector<4x768xf32>
    %72 = arith.addf %66, %71 : vector<4x768xf32>
    %c0_84 = arith.constant 0 : index
    %c6_85 = arith.constant 6 : index
    %c0_86 = arith.constant 0 : index
    %c0_87 = arith.constant 0 : index
    %73 = vector.load %arg1[%c0_84, %c6_85, %c0_86, %c0_87] : memref<1x8x4x896xf32, #tpu.memory_space<vmem>>, vector<1x1x4x768xf32>
    %74 = vector.shape_cast %73 : vector<1x1x4x768xf32> to vector<4x768xf32>
    %c12 = arith.constant 12 : index
    %c0_88 = arith.constant 0 : index
    %c0_89 = arith.constant 0 : index
    %75 = vector.load %arg2[%c12, %c0_88, %c0_89] : memref<27x4x4xf32, #tpu.memory_space<vmem>>, vector<1x4x4xf32>
    %76 = vector.shape_cast %75 : vector<1x4x4xf32> to vector<4x4xf32>
    %cst_90 = arith.constant dense<0.000000e+00> : vector<4x768xf32>
    %77 = tpu.matmul %76, %74, %cst_90 {dimension_numbers = #tpu.dot_dimension_numbers<[1], [0], [0], [1], [0, 0, 1, 1], [], []>} : vector<4x4xf32>, vector<4x768xf32>, vector<4x768xf32> -> vector<4x768xf32>
    %78 = arith.addf %72, %77 : vector<4x768xf32>
    %c0_91 = arith.constant 0 : index
    %c7_92 = arith.constant 7 : index
    %c0_93 = arith.constant 0 : index
    %c0_94 = arith.constant 0 : index
    %79 = vector.load %arg1[%c0_91, %c7_92, %c0_93, %c0_94] : memref<1x8x4x896xf32, #tpu.memory_space<vmem>>, vector<1x1x4x768xf32>
    %80 = vector.shape_cast %79 : vector<1x1x4x768xf32> to vector<4x768xf32>
    %c13 = arith.constant 13 : index
    %c0_95 = arith.constant 0 : index
    %c0_96 = arith.constant 0 : index
    %81 = vector.load %arg2[%c13, %c0_95, %c0_96] : memref<27x4x4xf32, #tpu.memory_space<vmem>>, vector<1x4x4xf32>
    %82 = vector.shape_cast %81 : vector<1x4x4xf32> to vector<4x4xf32>
    %cst_97 = arith.constant dense<0.000000e+00> : vector<4x768xf32>
    %83 = tpu.matmul %82, %80, %cst_97 {dimension_numbers = #tpu.dot_dimension_numbers<[1], [0], [0], [1], [0, 0, 1, 1], [], []>} : vector<4x4xf32>, vector<4x768xf32>, vector<4x768xf32> -> vector<4x768xf32>
    %84 = arith.addf %78, %83 : vector<4x768xf32>
    %c0_98 = arith.constant 0 : index
    %c6_99 = arith.constant 6 : index
    %c0_100 = arith.constant 0 : index
    %c1_101 = arith.constant 1 : index
    %85 = vector.load %arg1[%c0_98, %c6_99, %c0_100, %c1_101] : memref<1x8x4x896xf32, #tpu.memory_space<vmem>>, vector<1x1x4x768xf32>
    %86 = vector.shape_cast %85 : vector<1x1x4x768xf32> to vector<4x768xf32>
    %c14 = arith.constant 14 : index
    %c0_102 = arith.constant 0 : index
    %c0_103 = arith.constant 0 : index
    %87 = vector.load %arg2[%c14, %c0_102, %c0_103] : memref<27x4x4xf32, #tpu.memory_space<vmem>>, vector<1x4x4xf32>
    %88 = vector.shape_cast %87 : vector<1x4x4xf32> to vector<4x4xf32>
    %cst_104 = arith.constant dense<0.000000e+00> : vector<4x768xf32>
    %89 = tpu.matmul %88, %86, %cst_104 {dimension_numbers = #tpu.dot_dimension_numbers<[1], [0], [0], [1], [0, 0, 1, 1], [], []>} : vector<4x4xf32>, vector<4x768xf32>, vector<4x768xf32> -> vector<4x768xf32>
    %90 = arith.addf %84, %89 : vector<4x768xf32>
    %c0_105 = arith.constant 0 : index
    %c4_106 = arith.constant 4 : index
    %c0_107 = arith.constant 0 : index
    %c9_108 = arith.constant 9 : index
    %91 = vector.load %arg1[%c0_105, %c4_106, %c0_107, %c9_108] : memref<1x8x4x896xf32, #tpu.memory_space<vmem>>, vector<1x1x4x768xf32>
    %92 = vector.shape_cast %91 : vector<1x1x4x768xf32> to vector<4x768xf32>
    %c15 = arith.constant 15 : index
    %c0_109 = arith.constant 0 : index
    %c0_110 = arith.constant 0 : index
    %93 = vector.load %arg2[%c15, %c0_109, %c0_110] : memref<27x4x4xf32, #tpu.memory_space<vmem>>, vector<1x4x4xf32>
    %94 = vector.shape_cast %93 : vector<1x4x4xf32> to vector<4x4xf32>
    %cst_111 = arith.constant dense<0.000000e+00> : vector<4x768xf32>
    %95 = tpu.matmul %94, %92, %cst_111 {dimension_numbers = #tpu.dot_dimension_numbers<[1], [0], [0], [1], [0, 0, 1, 1], [], []>} : vector<4x4xf32>, vector<4x768xf32>, vector<4x768xf32> -> vector<4x768xf32>
    %96 = arith.addf %90, %95 : vector<4x768xf32>
    %c0_112 = arith.constant 0 : index
    %c5_113 = arith.constant 5 : index
    %c0_114 = arith.constant 0 : index
    %c9_115 = arith.constant 9 : index
    %97 = vector.load %arg1[%c0_112, %c5_113, %c0_114, %c9_115] : memref<1x8x4x896xf32, #tpu.memory_space<vmem>>, vector<1x1x4x768xf32>
    %98 = vector.shape_cast %97 : vector<1x1x4x768xf32> to vector<4x768xf32>
    %c16 = arith.constant 16 : index
    %c0_116 = arith.constant 0 : index
    %c0_117 = arith.constant 0 : index
    %99 = vector.load %arg2[%c16, %c0_116, %c0_117] : memref<27x4x4xf32, #tpu.memory_space<vmem>>, vector<1x4x4xf32>
    %100 = vector.shape_cast %99 : vector<1x4x4xf32> to vector<4x4xf32>
    %cst_118 = arith.constant dense<0.000000e+00> : vector<4x768xf32>
    %101 = tpu.matmul %100, %98, %cst_118 {dimension_numbers = #tpu.dot_dimension_numbers<[1], [0], [0], [1], [0, 0, 1, 1], [], []>} : vector<4x4xf32>, vector<4x768xf32>, vector<4x768xf32> -> vector<4x768xf32>
    %102 = arith.addf %96, %101 : vector<4x768xf32>
    %c0_119 = arith.constant 0 : index
    %c4_120 = arith.constant 4 : index
    %c0_121 = arith.constant 0 : index
    %c10_122 = arith.constant 10 : index
    %103 = vector.load %arg1[%c0_119, %c4_120, %c0_121, %c10_122] : memref<1x8x4x896xf32, #tpu.memory_space<vmem>>, vector<1x1x4x768xf32>
    %104 = vector.shape_cast %103 : vector<1x1x4x768xf32> to vector<4x768xf32>
    %c17 = arith.constant 17 : index
    %c0_123 = arith.constant 0 : index
    %c0_124 = arith.constant 0 : index
    %105 = vector.load %arg2[%c17, %c0_123, %c0_124] : memref<27x4x4xf32, #tpu.memory_space<vmem>>, vector<1x4x4xf32>
    %106 = vector.shape_cast %105 : vector<1x4x4xf32> to vector<4x4xf32>
    %cst_125 = arith.constant dense<0.000000e+00> : vector<4x768xf32>
    %107 = tpu.matmul %106, %104, %cst_125 {dimension_numbers = #tpu.dot_dimension_numbers<[1], [0], [0], [1], [0, 0, 1, 1], [], []>} : vector<4x4xf32>, vector<4x768xf32>, vector<4x768xf32> -> vector<4x768xf32>
    %108 = arith.addf %102, %107 : vector<4x768xf32>
    %c0_126 = arith.constant 0 : index
    %c0_127 = arith.constant 0 : index
    %c0_128 = arith.constant 0 : index
    %c81 = arith.constant 81 : index
    %109 = vector.load %arg1[%c0_126, %c0_127, %c0_128, %c81] : memref<1x8x4x896xf32, #tpu.memory_space<vmem>>, vector<1x1x4x768xf32>
    %110 = vector.shape_cast %109 : vector<1x1x4x768xf32> to vector<4x768xf32>
    %c18 = arith.constant 18 : index
    %c0_129 = arith.constant 0 : index
    %c0_130 = arith.constant 0 : index
    %111 = vector.load %arg2[%c18, %c0_129, %c0_130] : memref<27x4x4xf32, #tpu.memory_space<vmem>>, vector<1x4x4xf32>
    %112 = vector.shape_cast %111 : vector<1x4x4xf32> to vector<4x4xf32>
    %cst_131 = arith.constant dense<0.000000e+00> : vector<4x768xf32>
    %113 = tpu.matmul %112, %110, %cst_131 {dimension_numbers = #tpu.dot_dimension_numbers<[1], [0], [0], [1], [0, 0, 1, 1], [], []>} : vector<4x4xf32>, vector<4x768xf32>, vector<4x768xf32> -> vector<4x768xf32>
    %114 = arith.addf %108, %113 : vector<4x768xf32>
    %c0_132 = arith.constant 0 : index
    %c1_133 = arith.constant 1 : index
    %c0_134 = arith.constant 0 : index
    %c81_135 = arith.constant 81 : index
    %115 = vector.load %arg1[%c0_132, %c1_133, %c0_134, %c81_135] : memref<1x8x4x896xf32, #tpu.memory_space<vmem>>, vector<1x1x4x768xf32>
    %116 = vector.shape_cast %115 : vector<1x1x4x768xf32> to vector<4x768xf32>
    %c19 = arith.constant 19 : index
    %c0_136 = arith.constant 0 : index
    %c0_137 = arith.constant 0 : index
    %117 = vector.load %arg2[%c19, %c0_136, %c0_137] : memref<27x4x4xf32, #tpu.memory_space<vmem>>, vector<1x4x4xf32>
    %118 = vector.shape_cast %117 : vector<1x4x4xf32> to vector<4x4xf32>
    %cst_138 = arith.constant dense<0.000000e+00> : vector<4x768xf32>
    %119 = tpu.matmul %118, %116, %cst_138 {dimension_numbers = #tpu.dot_dimension_numbers<[1], [0], [0], [1], [0, 0, 1, 1], [], []>} : vector<4x4xf32>, vector<4x768xf32>, vector<4x768xf32> -> vector<4x768xf32>
    %120 = arith.addf %114, %119 : vector<4x768xf32>
    %c0_139 = arith.constant 0 : index
    %c0_140 = arith.constant 0 : index
    %c0_141 = arith.constant 0 : index
    %c82 = arith.constant 82 : index
    %121 = vector.load %arg1[%c0_139, %c0_140, %c0_141, %c82] : memref<1x8x4x896xf32, #tpu.memory_space<vmem>>, vector<1x1x4x768xf32>
    %122 = vector.shape_cast %121 : vector<1x1x4x768xf32> to vector<4x768xf32>
    %c20 = arith.constant 20 : index
    %c0_142 = arith.constant 0 : index
    %c0_143 = arith.constant 0 : index
    %123 = vector.load %arg2[%c20, %c0_142, %c0_143] : memref<27x4x4xf32, #tpu.memory_space<vmem>>, vector<1x4x4xf32>
    %124 = vector.shape_cast %123 : vector<1x4x4xf32> to vector<4x4xf32>
    %cst_144 = arith.constant dense<0.000000e+00> : vector<4x768xf32>
    %125 = tpu.matmul %124, %122, %cst_144 {dimension_numbers = #tpu.dot_dimension_numbers<[1], [0], [0], [1], [0, 0, 1, 1], [], []>} : vector<4x4xf32>, vector<4x768xf32>, vector<4x768xf32> -> vector<4x768xf32>
    %126 = arith.addf %120, %125 : vector<4x768xf32>
    %c0_145 = arith.constant 0 : index
    %c2_146 = arith.constant 2 : index
    %c0_147 = arith.constant 0 : index
    %c81_148 = arith.constant 81 : index
    %127 = vector.load %arg1[%c0_145, %c2_146, %c0_147, %c81_148] : memref<1x8x4x896xf32, #tpu.memory_space<vmem>>, vector<1x1x4x768xf32>
    %128 = vector.shape_cast %127 : vector<1x1x4x768xf32> to vector<4x768xf32>
    %c21 = arith.constant 21 : index
    %c0_149 = arith.constant 0 : index
    %c0_150 = arith.constant 0 : index
    %129 = vector.load %arg2[%c21, %c0_149, %c0_150] : memref<27x4x4xf32, #tpu.memory_space<vmem>>, vector<1x4x4xf32>
    %130 = vector.shape_cast %129 : vector<1x4x4xf32> to vector<4x4xf32>
    %cst_151 = arith.constant dense<0.000000e+00> : vector<4x768xf32>
    %131 = tpu.matmul %130, %128, %cst_151 {dimension_numbers = #tpu.dot_dimension_numbers<[1], [0], [0], [1], [0, 0, 1, 1], [], []>} : vector<4x4xf32>, vector<4x768xf32>, vector<4x768xf32> -> vector<4x768xf32>
    %132 = arith.addf %126, %131 : vector<4x768xf32>
    %c0_152 = arith.constant 0 : index
    %c3_153 = arith.constant 3 : index
    %c0_154 = arith.constant 0 : index
    %c81_155 = arith.constant 81 : index
    %133 = vector.load %arg1[%c0_152, %c3_153, %c0_154, %c81_155] : memref<1x8x4x896xf32, #tpu.memory_space<vmem>>, vector<1x1x4x768xf32>
    %134 = vector.shape_cast %133 : vector<1x1x4x768xf32> to vector<4x768xf32>
    %c22 = arith.constant 22 : index
    %c0_156 = arith.constant 0 : index
    %c0_157 = arith.constant 0 : index
    %135 = vector.load %arg2[%c22, %c0_156, %c0_157] : memref<27x4x4xf32, #tpu.memory_space<vmem>>, vector<1x4x4xf32>
    %136 = vector.shape_cast %135 : vector<1x4x4xf32> to vector<4x4xf32>
    %cst_158 = arith.constant dense<0.000000e+00> : vector<4x768xf32>
    %137 = tpu.matmul %136, %134, %cst_158 {dimension_numbers = #tpu.dot_dimension_numbers<[1], [0], [0], [1], [0, 0, 1, 1], [], []>} : vector<4x4xf32>, vector<4x768xf32>, vector<4x768xf32> -> vector<4x768xf32>
    %138 = arith.addf %132, %137 : vector<4x768xf32>
    %c0_159 = arith.constant 0 : index
    %c2_160 = arith.constant 2 : index
    %c0_161 = arith.constant 0 : index
    %c82_162 = arith.constant 82 : index
    %139 = vector.load %arg1[%c0_159, %c2_160, %c0_161, %c82_162] : memref<1x8x4x896xf32, #tpu.memory_space<vmem>>, vector<1x1x4x768xf32>
    %140 = vector.shape_cast %139 : vector<1x1x4x768xf32> to vector<4x768xf32>
    %c23 = arith.constant 23 : index
    %c0_163 = arith.constant 0 : index
    %c0_164 = arith.constant 0 : index
    %141 = vector.load %arg2[%c23, %c0_163, %c0_164] : memref<27x4x4xf32, #tpu.memory_space<vmem>>, vector<1x4x4xf32>
    %142 = vector.shape_cast %141 : vector<1x4x4xf32> to vector<4x4xf32>
    %cst_165 = arith.constant dense<0.000000e+00> : vector<4x768xf32>
    %143 = tpu.matmul %142, %140, %cst_165 {dimension_numbers = #tpu.dot_dimension_numbers<[1], [0], [0], [1], [0, 0, 1, 1], [], []>} : vector<4x4xf32>, vector<4x768xf32>, vector<4x768xf32> -> vector<4x768xf32>
    %144 = arith.addf %138, %143 : vector<4x768xf32>
    %c0_166 = arith.constant 0 : index
    %c0_167 = arith.constant 0 : index
    %c0_168 = arith.constant 0 : index
    %c90 = arith.constant 90 : index
    %145 = vector.load %arg1[%c0_166, %c0_167, %c0_168, %c90] : memref<1x8x4x896xf32, #tpu.memory_space<vmem>>, vector<1x1x4x768xf32>
    %146 = vector.shape_cast %145 : vector<1x1x4x768xf32> to vector<4x768xf32>
    %c24 = arith.constant 24 : index
    %c0_169 = arith.constant 0 : index
    %c0_170 = arith.constant 0 : index
    %147 = vector.load %arg2[%c24, %c0_169, %c0_170] : memref<27x4x4xf32, #tpu.memory_space<vmem>>, vector<1x4x4xf32>
    %148 = vector.shape_cast %147 : vector<1x4x4xf32> to vector<4x4xf32>
    %cst_171 = arith.constant dense<0.000000e+00> : vector<4x768xf32>
    %149 = tpu.matmul %148, %146, %cst_171 {dimension_numbers = #tpu.dot_dimension_numbers<[1], [0], [0], [1], [0, 0, 1, 1], [], []>} : vector<4x4xf32>, vector<4x768xf32>, vector<4x768xf32> -> vector<4x768xf32>
    %150 = arith.addf %144, %149 : vector<4x768xf32>
    %c0_172 = arith.constant 0 : index
    %c1_173 = arith.constant 1 : index
    %c0_174 = arith.constant 0 : index
    %c90_175 = arith.constant 90 : index
    %151 = vector.load %arg1[%c0_172, %c1_173, %c0_174, %c90_175] : memref<1x8x4x896xf32, #tpu.memory_space<vmem>>, vector<1x1x4x768xf32>
    %152 = vector.shape_cast %151 : vector<1x1x4x768xf32> to vector<4x768xf32>
    %c25 = arith.constant 25 : index
    %c0_176 = arith.constant 0 : index
    %c0_177 = arith.constant 0 : index
    %153 = vector.load %arg2[%c25, %c0_176, %c0_177] : memref<27x4x4xf32, #tpu.memory_space<vmem>>, vector<1x4x4xf32>
    %154 = vector.shape_cast %153 : vector<1x4x4xf32> to vector<4x4xf32>
    %cst_178 = arith.constant dense<0.000000e+00> : vector<4x768xf32>
    %155 = tpu.matmul %154, %152, %cst_178 {dimension_numbers = #tpu.dot_dimension_numbers<[1], [0], [0], [1], [0, 0, 1, 1], [], []>} : vector<4x4xf32>, vector<4x768xf32>, vector<4x768xf32> -> vector<4x768xf32>
    %156 = arith.addf %150, %155 : vector<4x768xf32>
    %c0_179 = arith.constant 0 : index
    %c0_180 = arith.constant 0 : index
    %c0_181 = arith.constant 0 : index
    %c91 = arith.constant 91 : index
    %157 = vector.load %arg1[%c0_179, %c0_180, %c0_181, %c91] : memref<1x8x4x896xf32, #tpu.memory_space<vmem>>, vector<1x1x4x768xf32>
    %158 = vector.shape_cast %157 : vector<1x1x4x768xf32> to vector<4x768xf32>
    %c26 = arith.constant 26 : index
    %c0_182 = arith.constant 0 : index
    %c0_183 = arith.constant 0 : index
    %159 = vector.load %arg2[%c26, %c0_182, %c0_183] : memref<27x4x4xf32, #tpu.memory_space<vmem>>, vector<1x4x4xf32>
    %160 = vector.shape_cast %159 : vector<1x4x4xf32> to vector<4x4xf32>
    %cst_184 = arith.constant dense<0.000000e+00> : vector<4x768xf32>
    %161 = tpu.matmul %160, %158, %cst_184 {dimension_numbers = #tpu.dot_dimension_numbers<[1], [0], [0], [1], [0, 0, 1, 1], [], []>} : vector<4x4xf32>, vector<4x768xf32>, vector<4x768xf32> -> vector<4x768xf32>
    %162 = arith.addf %156, %161 : vector<4x768xf32>
    %c0_185 = arith.constant 0 : index
    %c0_186 = arith.constant 0 : index
    %c0_187 = arith.constant 0 : index
    %163 = vector.load %arg4[%c0_185, %c0_186, %c0_187] : memref<1x4x768xf32, #tpu.memory_space<vmem>>, vector<1x4x768xf32>
    %164 = vector.shape_cast %163 : vector<1x4x768xf32> to vector<4x768xf32>
    %165 = vector.shape_cast %162 : vector<4x768xf32> to vector<1x4x768xf32>
    tpu.vector_store %arg4[%c0_185, %c0_186, %c0_187], %165 {strides = array<i32>} : memref<1x4x768xf32, #tpu.memory_space<vmem>>, vector<1x4x768xf32>,
    %c0_188 = arith.constant 0 : index
    %c0_189 = arith.constant 0 : index
    %166 = vector.load %arg3[%c0_188, %c0_189] : memref<1x768xf32, #tpu.memory_space<vmem>>, vector<1x768xf32>
    %167 = vector.broadcast %166 : vector<1x768xf32> to vector<4x768xf32>
    %168 = arith.mulf %162, %167 : vector<4x768xf32>
    %cst_190 = arith.constant dense<0.000000e+00> : vector<4xf32>
    %169 = vector.multi_reduction <add>, %168, %cst_190 [1] : vector<4x768xf32> to vector<4xf32>
    %170 = vector.shape_cast %169 : vector<4xf32> to vector<4x1xf32>
    %c0_191 = arith.constant 0 : index
    %c0_192 = arith.constant 0 : index
    %c0_193 = arith.constant 0 : index
    %171 = vector.load %arg5[%c0_191, %c0_192, %c0_193] : memref<1x4x1xf32, #tpu.memory_space<vmem>>, vector<1x4x1xf32>
    %172 = vector.shape_cast %171 : vector<1x4x1xf32> to vector<4x1xf32>
    %173 = vector.shape_cast %170 : vector<4x1xf32> to vector<1x4x1xf32>
    tpu.vector_store %arg5[%c0_191, %c0_192, %c0_193], %173 {strides = array<i32>} : memref<1x4x1xf32, #tpu.memory_space<vmem>>, vector<1x4x1xf32>,
    %174 = arith.mulf %162, %168 : vector<4x768xf32>
    %cst_194 = arith.constant dense<0.000000e+00> : vector<4xf32>
    %175 = vector.multi_reduction <add>, %174, %cst_194 [1] : vector<4x768xf32> to vector<4xf32>
    %176 = vector.shape_cast %175 : vector<4xf32> to vector<4x1xf32>
    %c0_195 = arith.constant 0 : index
    %c0_196 = arith.constant 0 : index
    %c0_197 = arith.constant 0 : index
    %177 = vector.load %arg6[%c0_195, %c0_196, %c0_197] : memref<1x4x1xf32, #tpu.memory_space<vmem>>, vector<1x4x1xf32>
    %178 = vector.shape_cast %177 : vector<1x4x1xf32> to vector<4x1xf32>
    %179 = vector.shape_cast %176 : vector<4x1xf32> to vector<1x4x1xf32>
    tpu.vector_store %arg6[%c0_195, %c0_196, %c0_197], %179 {strides = array<i32>} : memref<1x4x1xf32, #tpu.memory_space<vmem>>, vector<1x4x1xf32>,
    return
  }
  func.func @transform_0(%arg0: i32) -> (i32, i32, i32, i32) {
    %c0_i32 = arith.constant 0 : i32
    %c0_i32_0 = arith.constant 0 : i32
    %c0_i32_1 = arith.constant 0 : i32
    %c0_i32_2 = arith.constant 0 : i32
    return %arg0, %c0_i32, %c0_i32_0, %c0_i32_1 : i32, i32, i32, i32
  }
  func.func @transform_1(%arg0: i32) -> (i32, i32, i32) {
    %c0_i32 = arith.constant 0 : i32
    %c0_i32_0 = arith.constant 0 : i32
    %c0_i32_1 = arith.constant 0 : i32
    %c0_i32_2 = arith.constant 0 : i32
    return %c0_i32, %c0_i32_0, %c0_i32_1 : i32, i32, i32
  }
  func.func @transform_2(%arg0: i32) -> (i32, i32) {
    %c0_i32 = arith.constant 0 : i32
    %c0_i32_0 = arith.constant 0 : i32
    %c0_i32_1 = arith.constant 0 : i32
    return %c0_i32, %c0_i32_0 : i32, i32
  }
  func.func @transform_3(%arg0: i32) -> (i32, i32, i32) {
    %c0_i32 = arith.constant 0 : i32
    %c0_i32_0 = arith.constant 0 : i32
    %c0_i32_1 = arith.constant 0 : i32
    return %arg0, %c0_i32, %c0_i32_0 : i32, i32, i32
  }
  func.func @transform_4(%arg0: i32) -> (i32, i32, i32) {
    %c0_i32 = arith.constant 0 : i32
    %c0_i32_0 = arith.constant 0 : i32
    %c0_i32_1 = arith.constant 0 : i32
    return %arg0, %c0_i32, %c0_i32_0 : i32, i32, i32
  }
  func.func @transform_5(%arg0: i32) -> (i32, i32, i32) {
    %c0_i32 = arith.constant 0 : i32
    %c0_i32_0 = arith.constant 0 : i32
    %c0_i32_1 = arith.constant 0 : i32
    return %arg0, %c0_i32, %c0_i32_0 : i32, i32, i32
  }
}

module attributes {stable_mosaic.version = 11 : i64} {
  func.func @bn_relu_kernel(%arg0: i32, %arg1: memref<1x4x768xf32, #tpu.memory_space<vmem>>, %arg2: memref<1x4x1xf32, #tpu.memory_space<vmem>>, %arg3: memref<1x4x1xf32, #tpu.memory_space<vmem>>, %arg4: memref<1x4x768xf32, #tpu.memory_space<vmem>>) attributes {dimension_semantics = [#tpu.dimension_semantics<parallel>], iteration_bounds = array<i64: 2>, scalar_prefetch = 0 : i64, scratch_operands = 0 : i64, tpu.core_type = #tpu.core_type<tc>, window_params = [{transform_indices = @transform_0, window_bounds = array<i64: 1, 4, 768>}, {pipeline_mode = #tpu.pipeline_mode<synchronous>, transform_indices = @transform_1, window_bounds = array<i64: 1, 4, 1>}, {pipeline_mode = #tpu.pipeline_mode<synchronous>, transform_indices = @transform_2, window_bounds = array<i64: 1, 4, 1>}, {transform_indices = @transform_3, window_bounds = array<i64: 1, 4, 768>}]} {
    %c0 = arith.constant 0 : index
    %c0_0 = arith.constant 0 : index
    %c0_1 = arith.constant 0 : index
    %0 = vector.load %arg1[%c0, %c0_0, %c0_1] : memref<1x4x768xf32, #tpu.memory_space<vmem>>, vector<1x4x768xf32>
    %c0_2 = arith.constant 0 : index
    %c0_3 = arith.constant 0 : index
    %c0_4 = arith.constant 0 : index
    %1 = vector.load %arg2[%c0_2, %c0_3, %c0_4] : memref<1x4x1xf32, #tpu.memory_space<vmem>>, vector<1x4x1xf32>
    %2 = vector.broadcast %1 : vector<1x4x1xf32> to vector<1x4x768xf32>
    %3 = arith.mulf %0, %2 : vector<1x4x768xf32>
    %c0_5 = arith.constant 0 : index
    %c0_6 = arith.constant 0 : index
    %c0_7 = arith.constant 0 : index
    %4 = vector.load %arg3[%c0_5, %c0_6, %c0_7] : memref<1x4x1xf32, #tpu.memory_space<vmem>>, vector<1x4x1xf32>
    %5 = vector.broadcast %4 : vector<1x4x1xf32> to vector<1x4x768xf32>
    %6 = arith.addf %3, %5 : vector<1x4x768xf32>
    %cst = arith.constant 0.000000e+00 : f32
    %7 = vector.broadcast %cst : f32 to vector<1x4x768xf32>
    %8 = arith.maximumf %6, %7 : vector<1x4x768xf32>
    %c0_8 = arith.constant 0 : index
    %c0_9 = arith.constant 0 : index
    %c0_10 = arith.constant 0 : index
    %9 = vector.load %arg4[%c0_8, %c0_9, %c0_10] : memref<1x4x768xf32, #tpu.memory_space<vmem>>, vector<1x4x768xf32>
    tpu.vector_store %arg4[%c0_8, %c0_9, %c0_10], %8 {strides = array<i32>} : memref<1x4x768xf32, #tpu.memory_space<vmem>>, vector<1x4x768xf32>,
    return
  }
  func.func @transform_0(%arg0: i32) -> (i32, i32, i32) {
    %c0_i32 = arith.constant 0 : i32
    %c0_i32_0 = arith.constant 0 : i32
    %c0_i32_1 = arith.constant 0 : i32
    return %arg0, %c0_i32, %c0_i32_0 : i32, i32, i32
  }
  func.func @transform_1(%arg0: i32) -> (i32, i32, i32) {
    %c0_i32 = arith.constant 0 : i32
    %c0_i32_0 = arith.constant 0 : i32
    %c0_i32_1 = arith.constant 0 : i32
    %c0_i32_2 = arith.constant 0 : i32
    return %c0_i32, %c0_i32_0, %c0_i32_1 : i32, i32, i32
  }
  func.func @transform_2(%arg0: i32) -> (i32, i32, i32) {
    %c0_i32 = arith.constant 0 : i32
    %c0_i32_0 = arith.constant 0 : i32
    %c0_i32_1 = arith.constant 0 : i32
    %c0_i32_2 = arith.constant 0 : i32
    return %c0_i32, %c0_i32_0, %c0_i32_1 : i32, i32, i32
  }
  func.func @transform_3(%arg0: i32) -> (i32, i32, i32) {
    %c0_i32 = arith.constant 0 : i32
    %c0_i32_0 = arith.constant 0 : i32
    %c0_i32_1 = arith.constant 0 : i32
    return %arg0, %c0_i32, %c0_i32_0 : i32, i32, i32
  }
}

</mosaic_0001>

<bundles_post_ra>
// kernel: downsample_forward.3
= control target key start
LH: loop header
LB: loop body
LE: loop exit
PB: predicated region body
PF: predicated region fallthrough
CT: control target
= control target key end

     0   :  { %s312_s12 = smov 0   ;;  %s335_s0 = inlined_call_operand.vmem [shape: f32[2,4,768], index: 0, kind: input, shape index: {}, may-alias: {0,3}]   ;;  %s336_s1 = inlined_call_operand.vmem [shape: f32[1,4,1], index: 1, kind: input, shape index: {}]   ;;  %s337_s2 = inlined_call_operand.vmem [shape: f32[1,4,1], index: 2, kind: input, shape index: {}]   ;;  %s338_s3 = inlined_call_operand.vmem [shape: f32[2,4,768], index: 3, kind: output, shape index: {}, may-alias: {0,3}]  }
   0x1 LB: > { %s261_s13 = sadd.s32 4294967295, %s288_s12   ;;  %p265_p0 = scmp.ge.s32.totalorder %s288_s12, 1  ;;  %s288_s12 = sphi %s312_s12, %s13_s12  }
   0x2   : > { %p137_p1 = scmp.lt.s32.totalorder %s288_s12, 3 }
   0x4   : > { %p138_p2 = pnand %p265_p0, %p137_p1 }
   0x5   : > { %p161_p3 = scmp.lt.s32.totalorder (!%p138_p2), %s261_s13, 1 }
   0x6   : > { %141 = sbr.rel (%p138_p2) target bundleno = 145 (0x91), region = 32 }
   0xb   : > { %v174_v0 = vld [vmem:[%s336_s1] sm:$0xf]  ;;  %v290_v1 = vmov 0   ;;  %s340_s13 = smov (!%p161_p3, %s261_s13), 1  ;;  %v291_v3 = vmov 839922192  }
   0xc   : > { %281 = vset.pattern.permute.xlu0 %v290_v1  ;;  %v187_v2 = vld [vmem:[%s337_s2] sm:$0xf]  ;;  %v180_v4 = vunpack.c.l.s4 %v291_v3  ;;  %s270_s18 = smul.u32 24, %s340_s13 }
   0xd   : > { %177 = vperm.xlu0 %281, %v174_v0  }
   0xe   : > { %v181_v6 = vunpack.c.0.s8 %v180_v4  ;;  %s165_s21 = scalar_lea.vmem %s335_s0, %s270_s18  ;;  %s170_s24 = scalar_lea.vmem %s338_s3, %s270_s18 }
   0xf   : > { %v171_v8 = vld [vmem:[%s165_s21] sm:$0xff]  ;;  %v172_v9 = vld [vmem:[%s165_s21 + $0x8] sm:$0xff]  ;;  %v173_v10 = vld [vmem:[%s165_s21 + $0x10] sm:$0xff] }
  0x15   : > { %190 = vperm.xlu0 %281, %v187_v2  }
  0x7f   : > { %v178_v5 = vpop.permute.xlu0 %177 }
  0x80   : > { %v182_v7 = vperm.slane %v178_v5, %v181_v6 }
  0x82   : > { %v184_v12 = vmul.f32 %v182_v7, %v171_v8  ;;  %v185_v13 = vmul.f32 %v182_v7, %v172_v9  ;;  %v186_v14 = vmul.f32 %v182_v7, %v173_v10 }
  0x87   : > { %v191_v11 = vpop.permute.xlu0 %190 }
  0x88   : > { %v195_v15 = vperm.slane %v191_v11, %v181_v6 }
  0x8a   : > { %v197_v16 = vadd.f32 %v195_v15, %v184_v12  ;;  %v198_v17 = vadd.f32 %v195_v15, %v185_v13  ;;  %v199_v18 = vadd.f32 %v195_v15, %v186_v14 }
  0x8c   : > { %v200_v19 = vmax.f32 %v197_v16, 0.0  ;;  %v201_v20 = vmax.f32 %v198_v17, 0.0  ;;  %v202_v21 = vmax.f32 %v199_v18, 0.0 }
  0x8e   : > { %203 = vst [vmem:[%s170_s24] sm:$0xff] %v200_v19 }
  0x8f   : > { %204 = vst [vmem:[%s170_s24 + $0x8] sm:$0xff] %v201_v20 }
  0x90   : > { %205 = vst [vmem:[%s170_s24 + $0x10] sm:$0xff] %v202_v21 }
  0x91 PF: > { %s13_s12 = sadd.s32 1, %s288_s12  }
  0x92   : > { %p10_p4 = scmp.ge.s32.totalorder %s13_s12, 4  }
  0x94   :  { %12 = sbr.rel (!%p10_p4) target bundleno = 1 (0x1), region = 62 }

// kernel: downsample_forward.2
= control target key start
LH: loop header
LB: loop body
LE: loop exit
PB: predicated region body
PF: predicated region fallthrough
CT: control target
= control target key end

     0   :  { %s5726_s18 = smov 0   ;;  %s7298_s0 = inlined_call_operand.vmem [shape: f32[2,8,4,896], index: 0, kind: input, shape index: {}]   ;;  %s7299_s1 = inlined_call_operand.vmem [shape: f32[27,4,4], index: 1, kind: input, shape index: {}]   ;;  %s7300_s2 = inlined_call_operand.vmem [shape: f32[1,768], index: 2, kind: input, shape index: {}]   ;;  %s7301_s3 = inlined_call_operand.vmem [shape: f32[2,4,768], index: 3, kind: output, shape index: {0}]   ;;  %s7302_s4 = inlined_call_operand.vmem [shape: f32[2,4,1], index: 4, kind: output, shape index: {1}]   ;;  %s7303_s5 = inlined_call_operand.vmem [shape: f32[2,4,1], index: 5, kind: output, shape index: {2}]  }
   0x1 LB: > { %s5234_s19 = sadd.s32 4294967295, %s5687_s18   ;;  %p5238_p0 = scmp.ge.s32.totalorder %s5687_s18, 1  ;;  %s5687_s18 = sphi %s5726_s18, %s16_s18  }
   0x2   : > { %p192_p1 = scmp.lt.s32.totalorder %s5687_s18, 3 }
   0x4   : > { %p193_p2 = pnand %p5238_p0, %p192_p1 }
   0x6   : > { %196 = sbr.rel (%p193_p2) target bundleno = 772 (0x304), region = 32 }
   0xb   : > { %p228_p3 = scmp.lt.s32.totalorder %s5234_s19, 1  ;;  %s5689_s24 = smov 127   ;;  %vm274_vm0 = vcmask 1043456   ;;  %vm270_vm1 = vcmask 31744   ;;  %vm594_vm2 = vcmask 1039360   ;;  %vm1287_vm3 = vcmask 973824  }
   0xc   : > { %s5690_s25 = smov 119   ;;  %s5691_s28 = smov 118   ;;  %vm1658_vm4 = vcmask 965632   ;;  %vm3413_vm5 = vcmask 384000   ;;  %vm3784_vm6 = vcmask 375808   ;;  %vm4525_vm7 = vcmask 310272  }
   0xd   : > { %s7315_s19 = smov (!%p228_p3, %s5234_s19), 1  ;;  %s5693_s26 = smov 46   ;;  %vm4896_vm8 = vcmask 302080   ;;  %vm5095_vm9 = vcmask 3072  }
   0xe   : > { %s5664_s20 = smul.u32 224, %s7315_s19  ;;  %s5694_s16 = smov 38  }
   0xf   : > { %s5665_s17 = smul.u32 24, %s7315_s19  ;;  %s5241_s22 = sshll.u32 %s7315_s19, 2 }
  0x10   : > { %s5740_s23 = scalar_lea.vmem %s7298_s0, %s5664_s20  ;;  %s5692_s20 = smov 47  }
  0x11   : > { %v559_v0 = vld [vmem:[%s5740_s23 + $0x18] sm:$0xf]  ;;  %v5744_v1 = vld [vmem:[%s5740_s23 + $0x2c] sm:$0xff]  ;;  %v5747_v2 = vld [vmem:[%s5740_s23 + $0x24] sm:$0xff]  ;;  %s7260_s21 = scalar_lea.vmem %s7301_s3, %s5665_s17  ;;  %s245_s29 = scalar_lea.vmem %s7303_s5, %s5241_s22 }
  0x12   : > { %572 = vst [vmem:[#allocation1 + $0x30] ss:$2 sm:$0xff] %v559_v0  ;;  %v5751_v3 = vld [vmem:[%s5740_s23 + $0x1c] sm:$0xff]  ;;  %v5319_v4 = vld [vmem:[%s5740_s23 + $0x50] sm:$0xf]  ;;  %v5763_v8 = vld [vmem:[%s5740_s23 + $0x8] sm:$0xff] }
  0x13   : > { %263 = vst [vmem:[#allocation1 + $0x20] ss:$2 sm:$0xff] %v5744_v1  ;;  %v5757_v6 = vld [vmem:[%s5740_s23 + $0x10] sm:$0xff]  ;;  %v5773_v12 = vld [vmem:[%s5740_s23] sm:$0xff]  ;;  %v1252_v15 = vld [vmem:[%s5740_s23 + $0x18] sm:$0xf] }
  0x14   : > { %261 = vst [vmem:[#allocation1 + $0x10] ss:$2 sm:$0xff] %v5747_v2  ;;  %v5349_v23 = vld [vmem:[%s5740_s23 + $0x34] sm:$0xf]  ;;  %v5286_v25 = vld [vmem:[%s5740_s23 + $0x48] sm:$0xff]  ;;  %v5285_v26 = vld [vmem:[%s5740_s23 + $0x40] sm:$0xff] }
  0x15   : > { %259 = vst [vmem:[#allocation1] ss:$2 sm:$0xff] %v5751_v3  ;;  %v5284_v29 = vld [vmem:[%s5740_s23 + $0x38] sm:$0xff]  ;;  %v5302_v34 = vld [vmem:[%s5740_s23 + $0x64] sm:$0xff] }
  0x16   : > { %v5301_v35 = vld [vmem:[%s5740_s23 + $0x5c] sm:$0xff]  ;;  %v5300_v38 = vld [vmem:[%s5740_s23 + $0x54] sm:$0xff] }
  0x19   : > { %v579_v5 = vld.sshfl [vmem:[#allocation1 + $0x30] sm:$0xff pattern:$0x75316420] }
  0x1a   : > { %592 = vrot.lane.b32.xlu0 %v579_v5, %s5689_s24  ;;  %1080 = vst [vmem:[#allocation1 + $0x30] ss:$2 sm:$0xff] %v5319_v4  ;;  %v5760_v7 = vld.sshfl [vmem:[#allocation1 + $0x20] sm:$0xff pattern:$0x75316420] }
  0x1b   : > { %v5765_v9 = vld.sshfl [vmem:[#allocation1 + $0x28] sm:$0xff pattern:$0x75316420]  ;;  %v5767_v10 = vld.sshfl [vmem:[#allocation1 + $0x10] sm:$0xff pattern:$0x75316420] }
  0x1c   : > { %414 = vst [vmem:[#allocation1 + $0x20] ss:$2 sm:$0xff] %v5757_v6  ;;  %v5770_v11 = vld.sshfl [vmem:[#allocation1 + $0x18] sm:$0xff pattern:$0x75316420]  ;;  %5251 = vmatpush.msk.msra.mxu2 %vm274_vm0, %v5767_v10 }
  0x1d   : > { %412 = vst [vmem:[#allocation1 + $0x10] ss:$2 sm:$0xff] %v5763_v8  ;;  %v5776_v13 = vld.sshfl [vmem:[#allocation1] sm:$0xff pattern:$0x75316420]  ;;  %5253 = vmatpush.msk.msra.mxu3 %vm274_vm0, %v5770_v11 }
  0x1e   : > { %v5778_v14 = vld.sshfl [vmem:[#allocation1 + $0x8] sm:$0xff pattern:$0x75316420]  ;;  %5247 = vmatpush.msk.msra.mxu0 %vm274_vm0, %v5776_v13  ;;  %v5460_v10 = vld [vmem:[%s5740_s23 + $0xc0] sm:$0xf] }
  0x1f   : > { %410 = vst [vmem:[#allocation1] ss:$2 sm:$0xff] %v5773_v12  ;;  %5249 = vmatpush.msk.msra.mxu1 %vm274_vm0, %v5778_v14 }
  0x20   : > { %5255 = vmatpush.msk.msrb.mxu0 %vm274_vm0, %v5760_v7 }
  0x21   : > { %v1087_v16 = vld.sshfl [vmem:[#allocation1 + $0x30] sm:$0xff pattern:$0x75316420]  ;;  %5257 = vmatpush.msk.msrb.mxu1 %vm274_vm0, %v5765_v9 }
  0x22   : > { %1100 = vrot.lane.b32.xlu1 %v1087_v16, %s5689_s24  ;;  %1265 = vst [vmem:[#allocation1 + $0x30] ss:$2 sm:$0xff] %v1252_v15  ;;  %v5856_v15 = vld [vmem:[%s5740_s23 + $0x80] sm:$0xff]  ;;  %v5859_v16 = vld [vmem:[%s5740_s23 + $0x78] sm:$0xff] }
  0x23   : > { %v5783_v17 = vld.sshfl [vmem:[#allocation1 + $0x20] sm:$0xff pattern:$0x75316420]  ;;  %v5785_v18 = vld.sshfl [vmem:[#allocation1 + $0x28] sm:$0xff pattern:$0x75316420] }
  0x24   : > { %570 = vst [vmem:[#allocation1 + $0x20] ss:$2 sm:$0xff] %v5757_v6  ;;  %v5788_v19 = vld.sshfl [vmem:[#allocation1 + $0x10] sm:$0xff pattern:$0x75316420] }
  0x25   : > { %v5790_v20 = vld.sshfl [vmem:[#allocation1 + $0x18] sm:$0xff pattern:$0x75316420] }
  0x26   : > { %568 = vst [vmem:[#allocation1 + $0x10] ss:$2 sm:$0xff] %v5763_v8  ;;  %v5793_v21 = vld.sshfl [vmem:[#allocation1] sm:$0xff pattern:$0x75316420] }
  0x27   : > { %v5795_v22 = vld.sshfl [vmem:[#allocation1 + $0x8] sm:$0xff pattern:$0x75316420]  ;;  %5259 = vmatpush.msk.msrb.mxu2 %vm274_vm0, %v5793_v21  ;;  %v249_v21 = vld [vmem:[%s7299_s1] sm:$0xf] }
  0x28   : > { %566 = vst [vmem:[#allocation1] ss:$2 sm:$0xff] %v5773_v12  ;;  %5261 = vmatpush.msk.msrb.mxu3 %vm274_vm0, %v5795_v22 }
  0x29   : > { %v1272_v24 = vld.sshfl [vmem:[#allocation1 + $0x30] sm:$0xff pattern:$0x75316420] }
  0x2a   : > { %1451 = vst [vmem:[#allocation1 + $0x30] ss:$2 sm:$0xff] %v5349_v23 }
  0x2b   : > { %v577_v27 = vld.sshfl [vmem:[#allocation1 + $0x20] sm:$0xff pattern:$0x75316420]  ;;  %v578_v28 = vld.sshfl [vmem:[#allocation1 + $0x28] sm:$0xff pattern:$0x75316420] }
  0x2c   : > { %588 = vrot.lane.b32.xlu2 %v577_v27, %s5689_s24  ;;  %755 = vst [vmem:[#allocation1 + $0x20] ss:$2 sm:$0xff] %v5286_v25 }
  0x2d   : > { %v575_v30 = vld.sshfl [vmem:[#allocation1 + $0x10] sm:$0xff pattern:$0x75316420]  ;;  %v576_v31 = vld.sshfl [vmem:[#allocation1 + $0x18] sm:$0xff pattern:$0x75316420] }
  0x2e   : > { %584 = vrot.lane.b32.xlu0 %v575_v30, %s5689_s24  ;;  %753 = vst [vmem:[#allocation1 + $0x10] ss:$2 sm:$0xff] %v5285_v26  ;;  %v5882_v30 = vld [vmem:[%s5740_s23 + $0x9c] sm:$0xff] }
  0x2f   : > { %v573_v32 = vld.sshfl [vmem:[#allocation1] sm:$0xff pattern:$0x75316420]  ;;  %v574_v33 = vld.sshfl [vmem:[#allocation1 + $0x8] sm:$0xff pattern:$0x75316420] }
  0x30   : > { %580 = vrot.lane.b32.xlu1 %v573_v32, %s5689_s24  ;;  %751 = vst [vmem:[#allocation1] ss:$2 sm:$0xff] %v5284_v29 }
  0x31   : > { %v1458_v43 = vld.sshfl [vmem:[#allocation1 + $0x30] sm:$0xff pattern:$0x75316420] }
  0x33   : > { %v5807_v36 = vld.sshfl [vmem:[#allocation1 + $0x20] sm:$0xff pattern:$0x75316420]  ;;  %v5809_v37 = vld.sshfl [vmem:[#allocation1 + $0x28] sm:$0xff pattern:$0x75316420] }
  0x34   : > { %590 = vrot.lane.b32.xlu2 %v578_v28, %s5689_s24  ;;  %916 = vst [vmem:[#allocation1 + $0x20] ss:$2 sm:$0xff] %v5302_v34  ;;  %v5892_v34 = vld [vmem:[%s5740_s23 + $0x8c] sm:$0xff] }
  0x35   : > { %v5813_v39 = vld.sshfl [vmem:[#allocation1 + $0x10] sm:$0xff pattern:$0x75316420]  ;;  %v5815_v40 = vld.sshfl [vmem:[#allocation1 + $0x18] sm:$0xff pattern:$0x75316420] }
  0x36   : > { %586 = vrot.lane.b32.xlu0 %v576_v31, %s5689_s24  ;;  %914 = vst [vmem:[#allocation1 + $0x10] ss:$2 sm:$0xff] %v5301_v35  ;;  %v5885_v31 = vld [vmem:[%s5740_s23 + $0x94] sm:$0xff] }
  0x37   : > { %v5818_v41 = vld.sshfl [vmem:[#allocation1] sm:$0xff pattern:$0x75316420]  ;;  %v5820_v42 = vld.sshfl [vmem:[#allocation1 + $0x8] sm:$0xff pattern:$0x75316420] }
  0x38   : > { %582 = vrot.lane.b32.xlu1 %v574_v33, %s5689_s24  ;;  %912 = vst [vmem:[#allocation1] ss:$2 sm:$0xff] %v5300_v38 }
  0x3b   : > { %v5823_v44 = vld.sshfl [vmem:[#allocation1 + $0x20] sm:$0xff pattern:$0x75316420]  ;;  %v5825_v45 = vld.sshfl [vmem:[#allocation1 + $0x28] sm:$0xff pattern:$0x75316420] }
  0x3c   : > { %1285 = vrot.lane.b32.xlu2 %v1272_v24, %s5690_s25  ;;  %1078 = vst [vmem:[#allocation1 + $0x20] ss:$2 sm:$0xff] %v5286_v25  ;;  %v5866_v24 = vld [vmem:[%s5740_s23 + $0x70] sm:$0xff] }
  0x3d   : > { %v5828_v46 = vld.sshfl [vmem:[#allocation1 + $0x10] sm:$0xff pattern:$0x75316420]  ;;  %v5830_v47 = vld.sshfl [vmem:[#allocation1 + $0x18] sm:$0xff pattern:$0x75316420] }
  0x3e   : > { %1471 = vrot.lane.b32.xlu0 %v1458_v43, %s5690_s25  ;;  %1076 = vst [vmem:[#allocation1 + $0x10] ss:$2 sm:$0xff] %v5285_v26 }
  0x3f   : > { %v5833_v48 = vld.sshfl [vmem:[#allocation1] sm:$0xff pattern:$0x75316420]  ;;  %v5835_v49 = vld.sshfl [vmem:[#allocation1 + $0x8] sm:$0xff pattern:$0x75316420] }
  0x40   : > { %1074 = vst [vmem:[#allocation1] ss:$2 sm:$0xff] %v5284_v29  ;;  %v1623_v29 = vld [vmem:[%s5740_s23 + $0x18] sm:$0xf] }
  0x41   : > { %1636 = vst [vmem:[#allocation1 + $0x30] ss:$2 sm:$0xff] %v1623_v29 }
  0x43   : > { %v1086_v50 = vld.sshfl [vmem:[#allocation1 + $0x28] sm:$0xff pattern:$0x75316420]  ;;  %v1085_v51 = vld.sshfl [vmem:[#allocation1 + $0x20] sm:$0xff pattern:$0x75316420] }
  0x44   : > { %1263 = vst [vmem:[#allocation1 + $0x20] ss:$2 sm:$0xff] %v5757_v6 }
  0x45   : > { %v1083_v52 = vld.sshfl [vmem:[#allocation1 + $0x10] sm:$0xff pattern:$0x75316420]  ;;  %v1084_v53 = vld.sshfl [vmem:[#allocation1 + $0x18] sm:$0xff pattern:$0x75316420] }
  0x46   : > { %1092 = vrot.lane.b32.xlu0 %v1083_v52, %s5689_s24  ;;  %1261 = vst [vmem:[#allocation1 + $0x10] ss:$2 sm:$0xff] %v5763_v8  ;;  %v5411_v52 = vld [vmem:[%s5740_s23 + $0x88] sm:$0xf] }
  0x47   : > { %v1082_v54 = vld.sshfl [vmem:[#allocation1 + $0x8] sm:$0xff pattern:$0x75316420]  ;;  %v1081_v55 = vld.sshfl [vmem:[#allocation1] sm:$0xff pattern:$0x75316420] }
  0x48   : > { %1090 = vrot.lane.b32.xlu2 %v1082_v54, %s5689_s24  ;;  %1088 = vrot.lane.b32.xlu1 %v1081_v55, %s5689_s24  ;;  %1259 = vst [vmem:[#allocation1] ss:$2 sm:$0xff] %v5773_v12 }
  0x4b   : > { %v1270_v56 = vld.sshfl [vmem:[#allocation1 + $0x20] sm:$0xff pattern:$0x75316420]  ;;  %v1271_v57 = vld.sshfl [vmem:[#allocation1 + $0x28] sm:$0xff pattern:$0x75316420] }
  0x4c   : > { %1449 = vst [vmem:[#allocation1 + $0x20] ss:$2 sm:$0xff] %v5744_v1 }
  0x4d   : > { %v1269_v58 = vld.sshfl [vmem:[#allocation1 + $0x18] sm:$0xff pattern:$0x75316420]  ;;  %v1268_v59 = vld.sshfl [vmem:[#allocation1 + $0x10] sm:$0xff pattern:$0x75316420] }
  0x4e   : > { %1094 = vrot.lane.b32.xlu0 %v1084_v53, %s5689_s24  ;;  %1447 = vst [vmem:[#allocation1 + $0x10] ss:$2 sm:$0xff] %v5747_v2 }
  0x4f   : > { %v1266_v60 = vld.sshfl [vmem:[#allocation1] sm:$0xff pattern:$0x75316420]  ;;  %v1267_v61 = vld.sshfl [vmem:[#allocation1 + $0x8] sm:$0xff pattern:$0x75316420] }
  0x50   : > { %1098 = vrot.lane.b32.xlu2 %v1086_v50, %s5689_s24  ;;  %1096 = vrot.lane.b32.xlu1 %v1085_v51, %s5689_s24  ;;  %1445 = vst [vmem:[#allocation1] ss:$2 sm:$0xff] %v5751_v3  ;;  %v5908_v51 = vld.sshfl [vmem:[#allocation1 + $0x30] sm:$0xff pattern:$0x75316420] }
  0x51   : > { %2144 = vst [vmem:[#allocation1 + $0x30] ss:$2 sm:$0xff] %v5411_v52 }
  0x53   : > { %v1456_v62 = vld.sshfl [vmem:[#allocation1 + $0x20] sm:$0xff pattern:$0x75316420]  ;;  %v1457_v63 = vld.sshfl [vmem:[#allocation1 + $0x28] sm:$0xff pattern:$0x75316420] }
  0x54   : > { %1634 = vst [vmem:[#allocation1 + $0x20] ss:$2 sm:$0xff] %v5757_v6 }
  0x55   : > { %v1454_v0 = vld.sshfl [vmem:[#allocation1 + $0x10] sm:$0xff pattern:$0x75316420]  ;;  %v1455_v1 = vld.sshfl [vmem:[#allocation1 + $0x18] sm:$0xff pattern:$0x75316420] }
  0x56   : > { %1279 = vrot.lane.b32.xlu0 %v1269_v58, %s5690_s25  ;;  %1632 = vst [vmem:[#allocation1 + $0x10] ss:$2 sm:$0xff] %v5763_v8 }
  0x57   : > { %v1452_v4 = vld.sshfl [vmem:[#allocation1] sm:$0xff pattern:$0x75316420]  ;;  %v1453_v5 = vld.sshfl [vmem:[#allocation1 + $0x8] sm:$0xff pattern:$0x75316420] }
  0x58   : > { %1273 = vrot.lane.b32.xlu1 %v1266_v60, %s5690_s25  ;;  %1277 = vrot.lane.b32.xlu2 %v1268_v59, %s5690_s25  ;;  %1630 = vst [vmem:[#allocation1] ss:$2 sm:$0xff] %v5773_v12  ;;  %v5930_v59 = vld [vmem:[%s5740_s23 + $0xb8] sm:$0xff]  ;;  %v5246_v60 = vld [vmem:[%s7299_s1 + $0x4] sm:$0xf] }
  0x59   : > { %5248 = vmatmul.msk.f32.vlgmr.msra.gmra.mxu0 %vm270_vm1, %v5246_v60  ;;  %5250 = vmatmul.msk.f32.vlgmr.msra.gmra.mxu1 %vm270_vm1, %v5246_v60 }
  0x5a   : > { %5252 = vmatmul.msk.f32.vlgmr.msra.gmra.mxu2 %vm270_vm1, %v5246_v60  ;;  %5254 = vmatmul.msk.f32.vlgmr.msra.gmra.mxu3 %vm270_vm1, %v5246_v60 }
  0x5b   : > { %v5861_v6 = vld.sshfl [vmem:[#allocation1 + $0x28] sm:$0xff pattern:$0x75316420]  ;;  %v5863_v23 = vld.sshfl [vmem:[#allocation1 + $0x20] sm:$0xff pattern:$0x75316420]  ;;  %5263 = vmatpush.msk.msra.mxu0 %vm274_vm0, %v5788_v19  ;;  %5265 = vmatpush.msk.msra.mxu1 %vm274_vm0, %v5790_v20 }
  0x5c   : > { %1819 = vst [vmem:[#allocation1 + $0x20] ss:$2 sm:$0xff] %v5856_v15  ;;  %5267 = vmatpush.msk.msra.mxu2 %vm274_vm0, %v5783_v17  ;;  %v5442_v19 = vld [vmem:[%s5740_s23 + $0xcc] sm:$0xff]  ;;  %5269 = vmatpush.msk.msra.mxu3 %vm274_vm0, %v5785_v18  ;;  %v5441_v18 = vld [vmem:[%s5740_s23 + $0xc4] sm:$0xff] }
  0x5d   : > { %v5869_v25 = vld.sshfl [vmem:[#allocation1 + $0x10] sm:$0xff pattern:$0x75316420]  ;;  %v5871_v26 = vld.sshfl [vmem:[#allocation1 + $0x18] sm:$0xff pattern:$0x75316420] }
  0x5e   : > { %1281 = vrot.lane.b32.xlu0 %v1270_v56, %s5690_s25  ;;  %1817 = vst [vmem:[#allocation1 + $0x10] ss:$2 sm:$0xff] %v5859_v16 }
  0x5f   : > { %v1637_v27 = vld.sshfl [vmem:[#allocation1] sm:$0xff pattern:$0x75316420]  ;;  %v5875_v28 = vld.sshfl [vmem:[#allocation1 + $0x8] sm:$0xff pattern:$0x75316420] }
  0x60   : > { %1459 = vrot.lane.b32.xlu1 %v1452_v4, %s5690_s25  ;;  %1275 = vrot.lane.b32.xlu2 %v1267_v61, %s5690_s25  ;;  %1815 = vst [vmem:[#allocation1] ss:$2 sm:$0xff] %v5866_v24  ;;  %v2151_v61 = vld.sshfl [vmem:[#allocation1 + $0x30] sm:$0xff pattern:$0x75316420] }
  0x61   : > { %2651 = vst [vmem:[#allocation1 + $0x30] ss:$2 sm:$0xff] %v5460_v10  ;;  %5256 = vmatmul.msk.f32.vlgmr.msrb.gmra.mxu0 %vm270_vm1, %v5246_v60  ;;  %5258 = vmatmul.msk.f32.vlgmr.msrb.gmra.mxu1 %vm270_vm1, %v5246_v60 }
  0x62   : > { %5260 = vmatmul.msk.f32.vlgmr.msrb.gmra.mxu2 %vm270_vm1, %v249_v21  ;;  %5262 = vmatmul.msk.f32.vlgmr.msrb.gmra.mxu3 %vm270_vm1, %v249_v21 }
  0x63   : > { %v5887_v32 = vld.sshfl [vmem:[#allocation1 + $0x20] sm:$0xff pattern:$0x75316420]  ;;  %v5889_v33 = vld.sshfl [vmem:[#allocation1 + $0x28] sm:$0xff pattern:$0x75316420] }
  0x64   : > { %1980 = vst [vmem:[#allocation1 + $0x20] ss:$2 sm:$0xff] %v5882_v30 }
  0x65   : > { %v5895_v35 = vld.sshfl [vmem:[#allocation1 + $0x10] sm:$0xff pattern:$0x75316420]  ;;  %v5897_v38 = vld.sshfl [vmem:[#allocation1 + $0x18] sm:$0xff pattern:$0x75316420] }
  0x66   : > { %1283 = vrot.lane.b32.xlu0 %v1271_v57, %s5690_s25  ;;  %1978 = vst [vmem:[#allocation1 + $0x10] ss:$2 sm:$0xff] %v5885_v31 }
  0x67   : > { %v5901_v43 = vld.sshfl [vmem:[#allocation1] sm:$0xff pattern:$0x75316420]  ;;  %v5903_v50 = vld.sshfl [vmem:[#allocation1 + $0x8] sm:$0xff pattern:$0x75316420] }
  0x68   : > { %1463 = vrot.lane.b32.xlu1 %v1454_v0, %s5690_s25  ;;  %1461 = vrot.lane.b32.xlu2 %v1453_v5, %s5690_s25  ;;  %1976 = vst [vmem:[#allocation1] ss:$2 sm:$0xff] %v5892_v34  ;;  %v5425_v0 = vld [vmem:[%s5740_s23 + $0xa8] sm:$0xff] }
  0x69   : > { %5264 = vmatmul.msk.f32.vlgmr.msra.gmra.mxu0 %vm270_vm1, %v249_v21  ;;  %5266 = vmatmul.msk.f32.vlgmr.msra.gmra.mxu1 %vm270_vm1, %v249_v21 }
  0x6a   : > { %5268 = vmatmul.msk.f32.vlgmr.msra.gmra.mxu2 %vm270_vm1, %v249_v21  ;;  %5270 = vmatmul.msk.f32.vlgmr.msra.gmra.mxu3 %vm270_vm1, %v249_v21 }
  0x6b   : > { %v5911_v53 = vld.sshfl [vmem:[#allocation1 + $0x20] sm:$0xff pattern:$0x75316420]  ;;  %v5913_v54 = vld.sshfl [vmem:[#allocation1 + $0x28] sm:$0xff pattern:$0x75316420] }
  0x6c   : > { %2142 = vst [vmem:[#allocation1 + $0x20] ss:$2 sm:$0xff] %v5856_v15 }
  0x6d   : > { %v5916_v55 = vld.sshfl [vmem:[#allocation1 + $0x10] sm:$0xff pattern:$0x75316420]  ;;  %v5918_v56 = vld.sshfl [vmem:[#allocation1 + $0x18] sm:$0xff pattern:$0x75316420] }
  0x6e   : > { %1467 = vrot.lane.b32.xlu0 %v1456_v62, %s5690_s25  ;;  %2140 = vst [vmem:[#allocation1 + $0x10] ss:$2 sm:$0xff] %v5859_v16  ;;  %v5426_v62 = vld [vmem:[%s5740_s23 + $0xb0] sm:$0xff] }
  0x6f   : > { %v5922_v57 = vld.sshfl [vmem:[#allocation1] sm:$0xff pattern:$0x75316420]  ;;  %v5924_v58 = vld.sshfl [vmem:[#allocation1 + $0x8] sm:$0xff pattern:$0x75316420] }
  0x70   : > { %1469 = vrot.lane.b32.xlu1 %v1457_v63, %s5690_s25  ;;  %1465 = vrot.lane.b32.xlu2 %v1455_v1, %s5690_s25  ;;  %2138 = vst [vmem:[#allocation1] ss:$2 sm:$0xff] %v5866_v24  ;;  %v5443_v1 = vld [vmem:[%s5740_s23 + $0xd4] sm:$0xff] }
  0x73   : > { %v5944_v63 = vld.sshfl [vmem:[#allocation1 + $0x20] sm:$0xff pattern:$0x75316420]  ;;  %v5946_v13 = vld.sshfl [vmem:[#allocation1 + $0x28] sm:$0xff pattern:$0x75316420] }
  0x74   : > { %2326 = vst [vmem:[#allocation1 + $0x20] ss:$2 sm:$0xff] %v5930_v59 }
  0x75   : > { %v5954_v14 = vld.sshfl [vmem:[#allocation1 + $0x10] sm:$0xff pattern:$0x75316420]  ;;  %v5956_v11 = vld.sshfl [vmem:[#allocation1 + $0x18] sm:$0xff pattern:$0x75316420] }
  0x76   : > { %1644 = vrot.lane.b32.xlu0 %v1637_v27, %s5691_s28  ;;  %2324 = vst [vmem:[#allocation1 + $0x10] ss:$2 sm:$0xff] %v5426_v62 }
  0x77   : > { %v2146_v7 = vld.sshfl [vmem:[#allocation1 + $0x8] sm:$0xff pattern:$0x75316420]  ;;  %v2145_v9 = vld.sshfl [vmem:[#allocation1] sm:$0xff pattern:$0x75316420] }
  0x78   : > { %1648 = vrot.lane.b32.xlu1 %v5869_v25, %s5691_s28  ;;  %1650 = vrot.lane.b32.xlu2 %v5871_v26, %s5691_s28  ;;  %2322 = vst [vmem:[#allocation1] ss:$2 sm:$0xff] %v5425_v0 }
  0x7b   : > { %v5985_v22 = vld.sshfl [vmem:[#allocation1 + $0x20] sm:$0xff pattern:$0x75316420]  ;;  %v5987_v4 = vld.sshfl [vmem:[#allocation1 + $0x28] sm:$0xff pattern:$0x75316420] }
  0x7c   : > { %7304 = vst [vmem:[#allocation2_spill] sm:$0xff] %v5987_v4 }
  0x7d   : > { %2487 = vst [vmem:[#allocation1 + $0x20] ss:$2 sm:$0xff] %v5443_v1  ;;  %v5993_v20 = vld.sshfl [vmem:[#allocation1 + $0x10] sm:$0xff pattern:$0x75316420] }
  0x7e   : > { %v5995_v17 = vld.sshfl [vmem:[#allocation1 + $0x18] sm:$0xff pattern:$0x75316420]  ;;  %1654 = vrot.lane.b32.xlu0 %v5861_v6, %s5691_s28 }
  0x7f   : > { %2485 = vst [vmem:[#allocation1 + $0x10] ss:$2 sm:$0xff] %v5442_v19  ;;  %v6004_v5 = vld.sshfl [vmem:[#allocation1] sm:$0xff pattern:$0x75316420] }
  0x80   : > { %1646 = vrot.lane.b32.xlu1 %v5875_v28, %s5691_s28  ;;  %1652 = vrot.lane.b32.xlu2 %v5863_v23, %s5691_s28  ;;  %v6006_v25 = vld.sshfl [vmem:[#allocation1 + $0x8] sm:$0xff pattern:$0x75316420] }
  0x81   : > { %2483 = vst [vmem:[#allocation1] ss:$2 sm:$0xff] %v5441_v18 }
  0x84   : > { %v6008_v26 = vld.sshfl [vmem:[#allocation1 + $0x20] sm:$0xff pattern:$0x75316420]  ;;  %v6010_v27 = vld.sshfl [vmem:[#allocation1 + $0x28] sm:$0xff pattern:$0x75316420] }
  0x85   : > { %7305 = vst [vmem:[#allocation3_spill] sm:$0xff] %v6008_v26 }
  0x86   : > { %7306 = vst [vmem:[#allocation4_spill] sm:$0xff] %v6010_v27  ;;  %v6017_v6 = vld.sshfl [vmem:[#allocation1 + $0x10] sm:$0xff pattern:$0x75316420]  ;;  %2154 = vrot.lane.b32.xlu0 %v2146_v7, %s5689_s24  ;;  %v6022_v28 = vpop.permute.xlu2 %588 }
  0x87   : > { %2649 = vst [vmem:[#allocation1 + $0x20] ss:$2 sm:$0xff] %v5930_v59  ;;  %v6019_v23 = vld.sshfl [vmem:[#allocation1 + $0x18] sm:$0xff pattern:$0x75316420] }
  0x88   : > { %7307 = vst [vmem:[#allocation5_spill] sm:$0xff] %v6017_v6  ;;  %1656 = vrot.lane.b32.xlu1 %v5908_v51, %s5691_s28  ;;  %2164 = vrot.lane.b32.xlu2 %v2151_v61, %s5689_s24  ;;  %v6027_v29 = vld.sshfl [vmem:[#allocation1] sm:$0xff pattern:$0x75316420] }
  0x89   : > { %7308 = vst [vmem:[#allocation6_spill] sm:$0xff] %v6019_v23  ;;  %v6029_v52 = vld.sshfl [vmem:[#allocation1 + $0x8] sm:$0xff pattern:$0x75316420] }
  0x8a   : > { %2647 = vst [vmem:[#allocation1 + $0x10] ss:$2 sm:$0xff] %v5426_v62  ;;  %v2658_v62 = vld.sshfl [vmem:[#allocation1 + $0x30] sm:$0xff pattern:$0x75316420] }
  0x8b   : > { %2645 = vst [vmem:[#allocation1] ss:$2 sm:$0xff] %v5425_v0  ;;  %v5477_v23 = vld [vmem:[%s5740_s23 + $0x88] sm:$0xf] }
  0x8c   : > { %2836 = vst [vmem:[#allocation1 + $0x30] ss:$2 sm:$0xff] %v5477_v23 }
  0x8e   : > { %v2656_v59 = vld.sshfl [vmem:[#allocation1 + $0x20] sm:$0xff pattern:$0x75316420]  ;;  %2162 = vrot.lane.b32.xlu0 %v5946_v13, %s5689_s24  ;;  %v591_v7 = vpop.permute.xlu2 %590  ;;  %v6033_v1 = vld.sshfl [vmem:[#allocation1 + $0x28] sm:$0xff pattern:$0x75316420]  ;;  %v593_v13 = vpop.permute.xlu0 %592 }
  0x8f   : > { %2834 = vst [vmem:[#allocation1 + $0x20] ss:$2 sm:$0xff] %v5856_v15 }
  0x90   : > { %2156 = vrot.lane.b32.xlu1 %v5954_v14, %s5689_s24  ;;  %2152 = vrot.lane.b32.xlu2 %v2145_v9, %s5689_s24 }
  0x91   : > { %v2655_v60 = vld.sshfl [vmem:[#allocation1 + $0x18] sm:$0xff pattern:$0x75316420]  ;;  %v2654_v10 = vld.sshfl [vmem:[#allocation1 + $0x10] sm:$0xff pattern:$0x75316420] }
  0x92   : > { %2832 = vst [vmem:[#allocation1 + $0x10] ss:$2 sm:$0xff] %v5859_v16  ;;  %v2653_v51 = vld.sshfl [vmem:[#allocation1 + $0x8] sm:$0xff pattern:$0x75316420] }
  0x93   : > { %v2652_v61 = vld.sshfl [vmem:[#allocation1] sm:$0xff pattern:$0x75316420]  ;;  %v6068_v26 = vld.sshfl [vmem:[#allocation1 + $0x30] sm:$0xff pattern:$0x75316420] }
  0x94   : > { %2830 = vst [vmem:[#allocation1] ss:$2 sm:$0xff] %v5866_v24  ;;  %v6049_v14 = vpop.permute.xlu1 %1100 }
  0x96   : > { %2671 = vrot.lane.b32.xlu0 %v2658_v62, %s5689_s24  ;;  %v6042_v0 = vld.sshfl [vmem:[#allocation1 + $0x20] sm:$0xff pattern:$0x75316420]  ;;  %v6044_v21 = vld.sshfl [vmem:[#allocation1 + $0x28] sm:$0xff pattern:$0x75316420]  ;;  %v6051_v9 = vpop.permute.xlu2 %1285 }
  0x97   : > { %3019 = vst [vmem:[#allocation1 + $0x20] ss:$2 sm:$0xff] %v5882_v30 }
  0x98   : > { %2158 = vrot.lane.b32.xlu1 %v5956_v11, %s5689_s24  ;;  %2160 = vrot.lane.b32.xlu2 %v5944_v63, %s5689_s24  ;;  %v5494_v63 = vld [vmem:[%s5740_s23 + $0xa4] sm:$0xf] }
  0x99   : > { %v6055_v19 = vld.sshfl [vmem:[#allocation1 + $0x10] sm:$0xff pattern:$0x75316420]  ;;  %v6057_v62 = vld.sshfl [vmem:[#allocation1 + $0x18] sm:$0xff pattern:$0x75316420] }
  0x9a   : > { %3017 = vst [vmem:[#allocation1 + $0x10] ss:$2 sm:$0xff] %v5885_v31 }
  0x9b   : > { %v2838_v18 = vld.sshfl [vmem:[#allocation1 + $0x8] sm:$0xff pattern:$0x75316420]  ;;  %v2837_v30 = vld.sshfl [vmem:[#allocation1] sm:$0xff pattern:$0x75316420] }
  0x9c   : > { %3015 = vst [vmem:[#allocation1] ss:$2 sm:$0xff] %v5892_v34 }
  0x9d   : > { %3021 = vst [vmem:[#allocation1 + $0x30] ss:$2 sm:$0xff] %v5494_v63 }
  0x9e   : > { %2663 = vrot.lane.b32.xlu0 %v2654_v10, %s5689_s24 }
  0xa0   : > { %2665 = vrot.lane.b32.xlu1 %v2655_v60, %s5689_s24  ;;  %v585_v11 = vpop.permute.xlu0 %584  ;;  %2659 = vrot.lane.b32.xlu2 %v2652_v61, %s5689_s24  ;;  %v5271_v60 = vld [vmem:[%s7299_s1 + $0x8] sm:$0xf] }
  0xa2   : > { %v581_v6 = vpop.permute.xlu1 %580  ;;  %v6066_v27 = vpop.permute.xlu2 %1090 }
  0xa3   : > { %v6071_v31 = vld.sshfl [vmem:[#allocation1] sm:$0xff pattern:$0x75316420]  ;;  %v6073_v23 = vld.sshfl [vmem:[#allocation1 + $0x8] sm:$0xff pattern:$0x75316420] }
  0xa4   : > { %3200 = vst [vmem:[#allocation1] ss:$2 sm:$0xff] %v5866_v24  ;;  %v600_v24 = vsel %vm594_vm2, %v591_v7, %v593_v13 }
  0xa6   : > { %2661 = vrot.lane.b32.xlu0 %v2653_v51, %s5689_s24 }
  0xa8   : > { %2667 = vrot.lane.b32.xlu1 %v2656_v59, %s5689_s24  ;;  %v587_v34 = vpop.permute.xlu0 %586  ;;  %2844 = vrot.lane.b32.xlu2 %v2837_v30, %s5690_s25  ;;  %v599_v59 = vsel %vm594_vm2, %v6022_v28, %v591_v7  ;;  %v6111_v7 = vld.sshfl [vmem:[#allocation1 + $0x10] sm:$0xff pattern:$0x75316420] }
  0xa9   : > { %v597_v10 = vsel %vm594_vm2, %v585_v11, %v587_v34  ;;  %v598_v51 = vsel %vm594_vm2, %v587_v34, %v6022_v28  ;;  %v6104_v28 = vld.sshfl [vmem:[#allocation1 + $0x28] sm:$0xff pattern:$0x75316420] }
  0xaa   : > { %v583_v61 = vpop.permute.xlu1 %582  ;;  %v6084_v63 = vpop.permute.xlu2 %1098  ;;  %5276 = vmatpush.msk.msrb.mxu2 %vm274_vm0, %v597_v10  ;;  %5278 = vmatpush.msk.msrb.mxu3 %vm274_vm0, %v598_v51 }
  0xab   : > { %v595_v4 = vsel %vm594_vm2, %v581_v6, %v583_v61  ;;  %v596_v30 = vsel %vm594_vm2, %v583_v61, %v585_v11  ;;  %5277 = vmatmul.msk.f32.vlgmr.msrb.gmra.mxu2 %vm270_vm1, %v5271_v60  ;;  %5279 = vmatmul.msk.f32.vlgmr.msrb.gmra.mxu3 %vm270_vm1, %v5271_v60  ;;  %v5287_v6 = vld [vmem:[%s7299_s1 + $0xc] sm:$0xf]  ;;  %v3025_v11 = vld.sshfl [vmem:[#allocation1 + $0x18] sm:$0xff pattern:$0x75316420] }
  0xac   : > { %5272 = vmatpush.msk.msrb.mxu0 %vm274_vm0, %v595_v4  ;;  %5274 = vmatpush.msk.msrb.mxu1 %vm274_vm0, %v596_v30  ;;  %v6109_v4 = vld.sshfl [vmem:[#allocation1 + $0x20] sm:$0xff pattern:$0x75316420]  ;;  %3202 = vst [vmem:[#allocation1 + $0x10] ss:$2 sm:$0xff] %v5859_v16 }
  0xad   : > { %5273 = vmatmul.msk.f32.vlgmr.msrb.gmra.mxu0 %vm270_vm1, %v5271_v60  ;;  %5275 = vmatmul.msk.f32.vlgmr.msrb.gmra.mxu1 %vm270_vm1, %v5271_v60  ;;  %3204 = vst [vmem:[#allocation1 + $0x20] ss:$2 sm:$0xff] %v5856_v15  ;;  %v3208_v15 = vld.sshfl [vmem:[#allocation1 + $0x8] sm:$0xff pattern:$0x75316420] }
  0xae   : > { %5280 = vmatpush.msk.msra.mxu0 %vm274_vm0, %v599_v59  ;;  %5282 = vmatpush.msk.msra.mxu1 %vm274_vm0, %v600_v24  ;;  %v6235_v59 = vld [vmem:[%s5740_s23 + $0x10] sm:$0xff] }
  0xaf   : > { %2846 = vrot.lane.b32.xlu0 %v2838_v18, %s5690_s25  ;;  %5288 = vmatpush.msk.msra.mxu2 %vm274_vm0, %v5818_v41 }
  0xb0   : > { %2669 = vrot.lane.b32.xlu1 %v6033_v1, %s5689_s24  ;;  %v6115_v13 = vpop.permute.xlu0 %1471  ;;  %5290 = vmatpush.msk.msra.mxu3 %vm274_vm0, %v5820_v42  ;;  %v5511_v42 = vld [vmem:[%s5740_s23 + $0x88] sm:$0xf] }
  0xb1   : > { %5296 = vmatpush.msk.msrb.mxu2 %vm274_vm0, %v5807_v36  ;;  %5292 = vmatpush.msk.msrb.mxu0 %vm274_vm0, %v5813_v39 }
  0xb2   : > { %5294 = vmatpush.msk.msrb.mxu1 %vm274_vm0, %v5815_v40  ;;  %5298 = vmatpush.msk.msrb.mxu3 %vm274_vm0, %v5809_v37  ;;  %v6129_v41 = vpop.permute.xlu2 %1277  ;;  %v6153_v40 = vld.sshfl [vmem:[#allocation1 + $0x30] sm:$0xff pattern:$0x75316420] }
  0xb3   : > { %5289 = vmatmul.msk.f32.vlgmr.msra.gmra.mxu2 %vm270_vm1, %v5287_v6  ;;  %5291 = vmatmul.msk.f32.vlgmr.msra.gmra.mxu3 %vm270_vm1, %v5287_v6  ;;  %v6149_v37 = vld.sshfl [vmem:[#allocation1 + $0x18] sm:$0xff pattern:$0x75316420]  ;;  %3206 = vst [vmem:[#allocation1 + $0x30] ss:$2 sm:$0xff] %v5511_v42 }
  0xb4   : > { %5308 = vmatpush.msk.msra.mxu2 %vm274_vm0, %v5828_v46  ;;  %2848 = vrot.lane.b32.xlu2 %v6055_v19, %s5690_s25  ;;  %v3212_v24 = vld.sshfl [vmem:[#allocation1 + $0x28] sm:$0xff pattern:$0x75316420] }
  0xb5   : > { %5281 = vmatmul.msk.f32.vlgmr.msra.gmra.mxu0 %vm270_vm1, %v5271_v60  ;;  %5283 = vmatmul.msk.f32.vlgmr.msra.gmra.mxu1 %vm270_vm1, %v5271_v60 }
  0xb6   : > { %5304 = vmatpush.msk.msra.mxu0 %vm274_vm0, %v5833_v48  ;;  %5306 = vmatpush.msk.msra.mxu1 %vm274_vm0, %v5835_v49  ;;  %v6156_v49 = vld.sshfl [vmem:[#allocation1 + $0x10] sm:$0xff pattern:$0x75316420] }
  0xb7   : > { %2850 = vrot.lane.b32.xlu0 %v6057_v62, %s5690_s25  ;;  %5310 = vmatpush.msk.msra.mxu3 %vm274_vm0, %v5830_v47  ;;  %3387 = vst [vmem:[#allocation1 + $0x10] ss:$2 sm:$0xff] %v5763_v8  ;;  %v3207_v8 = vld.sshfl [vmem:[#allocation1] sm:$0xff pattern:$0x75316420] }
  0xb8   : > { %2852 = vrot.lane.b32.xlu1 %v6042_v0, %s5690_s25  ;;  %v1093_v36 = vpop.permute.xlu0 %1092  ;;  %3385 = vst [vmem:[#allocation1] ss:$2 sm:$0xff] %v5773_v12 }
  0xb9   : > { %v1103_v39 = vsel %vm594_vm2, %v6066_v27, %v1093_v36 }
  0xba   : > { %v1089_v46 = vpop.permute.xlu1 %1088  ;;  %v1276_v48 = vpop.permute.xlu2 %1275 }
  0xbb   : > { %v1102_v47 = vsel %vm594_vm2, %v1089_v46, %v6066_v27  ;;  %5297 = vmatmul.msk.f32.vlgmr.msrb.gmra.mxu2 %vm270_vm1, %v5287_v6  ;;  %5299 = vmatmul.msk.f32.vlgmr.msrb.gmra.mxu3 %vm270_vm1, %v5287_v6  ;;  %v5303_v27 = vld [vmem:[%s7299_s1 + $0x10] sm:$0xf] }
  0xbc   : > { %5321 = vmatpush.msk.msrb.mxu2 %vm274_vm0, %v1102_v47  ;;  %5323 = vmatpush.msk.msrb.mxu3 %vm274_vm0, %v1103_v39 }
  0xbd   : > { %5293 = vmatmul.msk.f32.vlgmr.msrb.gmra.mxu0 %vm270_vm1, %v5287_v6  ;;  %5295 = vmatmul.msk.f32.vlgmr.msrb.gmra.mxu1 %vm270_vm1, %v5287_v6 }
  0xbe   : > { %5312 = vmatpush.msk.msrb.mxu0 %vm274_vm0, %v5823_v44  ;;  %5314 = vmatpush.msk.msrb.mxu1 %vm274_vm0, %v5825_v45  ;;  %v1107_v44 = vsel %vm594_vm2, %v6084_v63, %v6049_v14  ;;  %v5320_v14 = vld [vmem:[%s7299_s1 + $0x14] sm:$0xf] }
  0xbf   : > { %3035 = vrot.lane.b32.xlu0 %v3025_v11, %s5690_s25  ;;  %2854 = vrot.lane.b32.xlu2 %v6044_v21, %s5690_s25  ;;  %v6206_v19 = vld.sshfl [vmem:[#allocation1] sm:$0xff pattern:$0x75316420]  ;;  %v6210_v62 = vld.sshfl [vmem:[#allocation1 + $0x8] sm:$0xff pattern:$0x75316420] }
  0xc0   : > { %2856 = vrot.lane.b32.xlu1 %v6068_v26, %s5690_s25  ;;  %v1095_v16 = vpop.permute.xlu0 %1094  ;;  %3571 = vst [vmem:[#allocation1] ss:$2 sm:$0xff] %v5751_v3  ;;  %v3211_v3 = vld.sshfl [vmem:[#allocation1 + $0x20] sm:$0xff pattern:$0x75316420] }
  0xc1   : > { %v1104_v0 = vsel %vm594_vm2, %v1093_v36, %v1095_v16  ;;  %v6229_v51 = vld.sshfl [vmem:[#allocation1 + $0x10] sm:$0xff pattern:$0x75316420]  ;;  %3389 = vst [vmem:[#allocation1 + $0x20] ss:$2 sm:$0xff] %v6235_v59 }
  0xc2   : > { %v1097_v45 = vpop.permute.xlu1 %1096  ;;  %v6183_v1 = vpop.permute.xlu2 %1461  ;;  %v3378_v11 = vld [vmem:[%s5740_s23 + $0x18] sm:$0xf] }
  0xc3   : > { %v1105_v21 = vsel %vm594_vm2, %v1095_v16, %v1097_v45  ;;  %v1106_v26 = vsel %vm594_vm2, %v1097_v45, %v6084_v63  ;;  %5309 = vmatmul.msk.f32.vlgmr.msra.gmra.mxu2 %vm270_vm1, %v5303_v27  ;;  %5311 = vmatmul.msk.f32.vlgmr.msra.gmra.mxu3 %vm270_vm1, %v5303_v27  ;;  %v6232_v63 = vld.sshfl [vmem:[#allocation1 + $0x18] sm:$0xff pattern:$0x75316420] }
  0xc4   : > { %5329 = vmatpush.msk.msra.mxu2 %vm274_vm0, %v1106_v26  ;;  %5331 = vmatpush.msk.msra.mxu3 %vm274_vm0, %v1107_v44  ;;  %3573 = vst [vmem:[#allocation1 + $0x10] ss:$2 sm:$0xff] %v5747_v2  ;;  %v5333_v2 = vld [vmem:[%s7299_s1 + $0x18] sm:$0xf]  ;;  %v5350_v16 = vld [vmem:[%s7299_s1 + $0x1c] sm:$0xf] }
  0xc5   : > { %5305 = vmatmul.msk.f32.vlgmr.msra.gmra.mxu0 %vm270_vm1, %v5303_v27  ;;  %5307 = vmatmul.msk.f32.vlgmr.msra.gmra.mxu1 %vm270_vm1, %v5303_v27  ;;  %v6295_v44 = vld [vmem:[%s5740_s23 + $0x8] sm:$0xff] }
  0xc6   : > { %5325 = vmatpush.msk.msra.mxu0 %vm274_vm0, %v1104_v0  ;;  %5327 = vmatpush.msk.msra.mxu1 %vm274_vm0, %v1105_v21 }
  0xc7   : > { %3037 = vrot.lane.b32.xlu0 %v6109_v4, %s5690_s25  ;;  %3033 = vrot.lane.b32.xlu2 %v6111_v7, %s5690_s25  ;;  %v3213_v7 = vld.sshfl [vmem:[#allocation1 + $0x30] sm:$0xff pattern:$0x75316420] }
  0xc8   : > { %3029 = vrot.lane.b32.xlu1 %v6071_v31, %s5690_s25  ;;  %v1280_v12 = vpop.permute.xlu0 %1279  ;;  %v1289_v31 = vsel %vm1287_vm3, %v1276_v48, %v6129_v41  ;;  %v6264_v42 = vld.sshfl [vmem:[#allocation1 + $0x20] sm:$0xff pattern:$0x75316420]  ;;  %v6266_v46 = vld.sshfl [vmem:[#allocation1 + $0x28] sm:$0xff pattern:$0x75316420] }
  0xc9   : > { %v1290_v18 = vsel %vm1287_vm3, %v6129_v41, %v1280_v12  ;;  %v6259_v41 = vld [vmem:[%s5740_s23 + $0x2c] sm:$0xff]  ;;  %3391 = vst [vmem:[#allocation1 + $0x30] ss:$2 sm:$0xff] %v3378_v11 }
  0xca   : > { %v1274_v34 = vpop.permute.xlu1 %1273  ;;  %v6212_v60 = vpop.permute.xlu2 %1465  ;;  %3575 = vst [vmem:[#allocation1 + $0x20] ss:$2 sm:$0xff] %v6259_v41 }
  0xcb   : > { %v1288_v10 = vsel %vm1287_vm3, %v1274_v34, %v1276_v48  ;;  %5322 = vmatmul.msk.f32.vlgmr.msrb.gmra.mxu2 %vm270_vm1, %v5320_v14  ;;  %5324 = vmatmul.msk.f32.vlgmr.msrb.gmra.mxu3 %vm270_vm1, %v5320_v14 }
  0xcc   : > { %5338 = vmatpush.msk.msrb.mxu2 %vm274_vm0, %v1290_v18  ;;  %v6323_v18 = vld [vmem:[%s5740_s23] sm:$0xff] }
  0xcd   : > { %5313 = vmatmul.msk.f32.vlgmr.msrb.gmra.mxu0 %vm270_vm1, %v5303_v27  ;;  %5315 = vmatmul.msk.f32.vlgmr.msrb.gmra.mxu1 %vm270_vm1, %v5303_v27  ;;  %v6292_v27 = vld.sshfl [vmem:[#allocation1 + $0x18] sm:$0xff pattern:$0x75316420] }
  0xce   : > { %5334 = vmatpush.msk.msrb.mxu0 %vm274_vm0, %v1288_v10  ;;  %5336 = vmatpush.msk.msrb.mxu1 %vm274_vm0, %v1289_v31  ;;  %v5363_v10 = vld [vmem:[%s7299_s1 + $0x20] sm:$0xf] }
  0xcf   : > { %3039 = vrot.lane.b32.xlu0 %v6104_v28, %s5690_s25  ;;  %3031 = vrot.lane.b32.xlu2 %v6073_v23, %s5690_s25 }
  0xd0   : > { %3214 = vrot.lane.b32.xlu1 %v3207_v8, %s5691_s28  ;;  %v1282_v61 = vpop.permute.xlu0 %1281 }
  0xd1   : > { %v1291_v30 = vsel %vm1287_vm3, %v1280_v12, %v1282_v61 }
  0xd2   : > { %v1460_v6 = vpop.permute.xlu1 %1459  ;;  %5340 = vmatpush.msk.msrb.mxu3 %vm274_vm0, %v1291_v30  ;;  %v6240_v23 = vpop.permute.xlu2 %1650  ;;  %v6356_v30 = vld [vmem:[%s5740_s23 + $0x38] sm:$0xff] }
  0xd3   : > { %v1473_v28 = vsel %vm1287_vm3, %v1460_v6, %v6183_v1  ;;  %5330 = vmatmul.msk.f32.vlgmr.msra.gmra.mxu2 %vm270_vm1, %v5320_v14  ;;  %5332 = vmatmul.msk.f32.vlgmr.msra.gmra.mxu3 %vm270_vm1, %v5320_v14 }
  0xd4   : > { %5351 = vmatpush.msk.msra.mxu2 %vm274_vm0, %v1473_v28 }
  0xd5   : > { %5326 = vmatmul.msk.f32.vlgmr.msra.gmra.mxu0 %vm270_vm1, %v5320_v14  ;;  %5328 = vmatmul.msk.f32.vlgmr.msra.gmra.mxu1 %vm270_vm1, %v5320_v14  ;;  %v3579_v14 = vld.sshfl [vmem:[#allocation1 + $0x8] sm:$0xff pattern:$0x75316420] }
  0xd7   : > { %3222 = vrot.lane.b32.xlu0 %v3211_v3, %s5691_s28  ;;  %3216 = vrot.lane.b32.xlu2 %v3208_v15, %s5691_s28 }
  0xd8   : > { %3218 = vrot.lane.b32.xlu1 %v6156_v49, %s5691_s28  ;;  %v1284_v4 = vpop.permute.xlu0 %1283 }
  0xd9   : > { %v1292_v36 = vsel %vm1287_vm3, %v1282_v61, %v1284_v4  ;;  %v1293_v39 = vsel %vm1287_vm3, %v1284_v4, %v6051_v9  ;;  %v6286_v9 = vld.sshfl [vmem:[#allocation1 + $0x10] sm:$0xff pattern:$0x75316420]  ;;  %v3749_v4 = vld [vmem:[%s5740_s23 + $0x18] sm:$0xf] }
  0xda   : > { %v1464_v48 = vpop.permute.xlu1 %1463  ;;  %5342 = vmatpush.msk.msra.mxu0 %vm274_vm0, %v1292_v36  ;;  %5344 = vmatpush.msk.msra.mxu1 %vm274_vm0, %v1293_v39  ;;  %v6270_v49 = vpop.permute.xlu2 %1652  ;;  %3758 = vst [vmem:[#allocation1 + $0x10] ss:$2 sm:$0xff] %v6295_v44  ;;  %v5541_v61 = vld [vmem:[%s5740_s23 + $0x34] sm:$0xf] }
  0xdb   : > { %v1474_v47 = vsel %vm1287_vm3, %v6183_v1, %v1464_v48  ;;  %v1475_v8 = vsel %vm1287_vm3, %v1464_v48, %v6212_v60  ;;  %5339 = vmatmul.msk.f32.vlgmr.msrb.gmra.mxu2 %vm270_vm1, %v5333_v2  ;;  %5341 = vmatmul.msk.f32.vlgmr.msrb.gmra.mxu3 %vm270_vm1, %v5333_v2  ;;  %v1662_v26 = vsel %vm1658_vm4, %v6240_v23, %v6270_v49 }
  0xdc   : > { %5353 = vmatpush.msk.msra.mxu3 %vm274_vm0, %v1474_v47  ;;  %v5395_v47 = vld [vmem:[%s7299_s1 + $0x28] sm:$0xf] }
  0xdd   : > { %5335 = vmatmul.msk.f32.vlgmr.msrb.gmra.mxu0 %vm270_vm1, %v5333_v2  ;;  %5337 = vmatmul.msk.f32.vlgmr.msrb.gmra.mxu1 %vm270_vm1, %v5333_v2 }
  0xde   : > { %5355 = vmatpush.msk.msrb.mxu0 %vm274_vm0, %v1475_v8 }
  0xdf   : > { %3226 = vrot.lane.b32.xlu0 %v3213_v7, %s5691_s28  ;;  %3041 = vrot.lane.b32.xlu2 %v6153_v40, %s5690_s25  ;;  %s5695_s25 = smov 37  }
  0xe0   : > { %3224 = vrot.lane.b32.xlu1 %v3212_v24, %s5691_s28  ;;  %v1468_v15 = vpop.permute.xlu0 %1467 }
  0xe1   : > { %v1476_v45 = vsel %vm1287_vm3, %v6212_v60, %v1468_v15 }
  0xe2   : > { %v1470_v1 = vpop.permute.xlu1 %1469  ;;  %5357 = vmatpush.msk.msrb.mxu1 %vm274_vm0, %v1476_v45  ;;  %v6301_v40 = vpop.permute.xlu2 %2164  ;;  %v5586_v45 = vld [vmem:[%s5740_s23 + $0x5c] sm:$0xff] }
  0xe3   : > { %v1477_v0 = vsel %vm1287_vm3, %v1468_v15, %v1470_v1  ;;  %v1478_v21 = vsel %vm1287_vm3, %v1470_v1, %v6115_v13  ;;  %5352 = vmatmul.msk.f32.vlgmr.msra.gmra.mxu2 %vm270_vm1, %v5350_v16  ;;  %5354 = vmatmul.msk.f32.vlgmr.msra.gmra.mxu3 %vm270_vm1, %v5350_v16  ;;  %v3578_v13 = vld.sshfl [vmem:[#allocation1] sm:$0xff pattern:$0x75316420] }
  0xe4   : > { %5359 = vmatpush.msk.msrb.mxu2 %vm274_vm0, %v1477_v0  ;;  %5361 = vmatpush.msk.msrb.mxu3 %vm274_vm0, %v1478_v21  ;;  %3756 = vst [vmem:[#allocation1] ss:$2 sm:$0xff] %v6323_v18  ;;  %v6467_v21 = vpop.f32.mrf.mxu0 }
  0xe5   : > { %5343 = vmatmul.msk.f32.vlgmr.msra.gmra.mxu0 %vm270_vm1, %v5333_v2  ;;  %5345 = vmatmul.msk.f32.vlgmr.msra.gmra.mxu1 %vm270_vm1, %v5333_v2  ;;  %v5379_v2 = vld [vmem:[%s7299_s1 + $0x24] sm:$0xf] }
  0xe6   : > { %5370 = vmatpush.msk.msra.mxu3 %vm274_vm0, %v1662_v26  ;;  %v6469_v26 = vpop.f32.mrf.mxu1 }
  0xe7   : > { %3399 = vrot.lane.b32.xlu0 %v6206_v19, %s5692_s20  ;;  %3220 = vrot.lane.b32.xlu2 %v6149_v37, %s5691_s28  ;;  %v3583_v37 = vld.sshfl [vmem:[#allocation1 + $0x28] sm:$0xff pattern:$0x75316420]  ;;  %v6339_v19 = vld.sshfl [vmem:[#allocation1 + $0x20] sm:$0xff pattern:$0x75316420] }
  0xe8   : > { %3403 = vrot.lane.b32.xlu1 %v6229_v51, %s5692_s20  ;;  %v1645_v12 = vpop.permute.xlu0 %1644  ;;  %3760 = vst [vmem:[#allocation1 + $0x20] ss:$2 sm:$0xff] %v6235_v59  ;;  %v3398_v51 = vld.sshfl [vmem:[#allocation1 + $0x30] sm:$0xff pattern:$0x75316420] }
  0xe9   : > { %3577 = vst [vmem:[#allocation1 + $0x30] ss:$2 sm:$0xff] %v5541_v61 }
  0xea   : > { %v1649_v34 = vpop.permute.xlu1 %1648  ;;  %v6326_v60 = vpop.permute.xlu2 %2152 }
  0xeb   : > { %v1661_v31 = vsel %vm1658_vm4, %v1649_v34, %v6240_v23  ;;  %5360 = vmatmul.msk.f32.vlgmr.msrb.gmra.mxu2 %vm270_vm1, %v5350_v16  ;;  %5362 = vmatmul.msk.f32.vlgmr.msrb.gmra.mxu3 %vm270_vm1, %v5350_v16  ;;  %v6350_v3 = vld.sshfl [vmem:[#allocation1 + $0x8] sm:$0xff pattern:$0x75316420] }
  0xec   : > { %5368 = vmatpush.msk.msra.mxu2 %vm274_vm0, %v1661_v31  ;;  %5382 = vmatpush.msk.msrb.mxu3 %vm274_vm0, %v5903_v50 }
  0xed   : > { %5356 = vmatmul.msk.f32.vlgmr.msrb.gmra.mxu0 %vm270_vm1, %v5350_v16  ;;  %5358 = vmatmul.msk.f32.vlgmr.msrb.gmra.mxu1 %vm270_vm1, %v5350_v16  ;;  %v5571_v16 = vld [vmem:[%s5740_s23 + $0x50] sm:$0xf] }
  0xee   : > { %5380 = vmatpush.msk.msrb.mxu2 %vm274_vm0, %v5901_v43  ;;  %v6352_v43 = vld.sshfl [vmem:[#allocation1] sm:$0xff pattern:$0x75316420] }
  0xef   : > { %3585 = vrot.lane.b32.xlu0 %v3578_v13, %s5692_s20  ;;  %3405 = vrot.lane.b32.xlu2 %v6232_v63, %s5692_s20  ;;  %3942 = vst [vmem:[#allocation1] ss:$2 sm:$0xff] %v6356_v30  ;;  %v6411_v39 = vld.sshfl [vmem:[#allocation1 + $0x20] sm:$0xff pattern:$0x75316420] }
  0xf0   : > { %3401 = vrot.lane.b32.xlu1 %v6210_v62, %s5692_s20  ;;  %v1655_v50 = vpop.permute.xlu0 %1654 }
  0xf1   : > { %v1663_v62 = vsel %vm1658_vm4, %v6270_v49, %v1655_v50 }
  0xf2   : > { %v1647_v24 = vpop.permute.xlu1 %1646  ;;  %v6358_v6 = vpop.permute.xlu2 %2160 }
  0xf3   : > { %v1659_v63 = vsel %vm1658_vm4, %v1645_v12, %v1647_v24  ;;  %v1660_v23 = vsel %vm1658_vm4, %v1647_v24, %v1649_v34  ;;  %5369 = vmatmul.msk.f32.vlgmr.msra.gmra.mxu2 %vm270_vm1, %v5363_v10  ;;  %5371 = vmatmul.msk.f32.vlgmr.msra.gmra.mxu3 %vm270_vm1, %v5363_v10  ;;  %v6482_v12 = vpop.f32.mrf.mxu3  ;;  %v6510_v24 = vpop.f32.mrf.mxu0 }
  0xf4   : > { %5364 = vmatpush.msk.msra.mxu0 %vm274_vm0, %v1659_v63  ;;  %5366 = vmatpush.msk.msra.mxu1 %vm274_vm0, %v1660_v23 }
  0xf5   : > { %5365 = vmatmul.msk.f32.vlgmr.msra.gmra.mxu0 %vm270_vm1, %v5363_v10  ;;  %5367 = vmatmul.msk.f32.vlgmr.msra.gmra.mxu1 %vm270_vm1, %v5363_v10 }
  0xf6   : > { %5372 = vmatpush.msk.msrb.mxu0 %vm274_vm0, %v1663_v62  ;;  %5388 = vmatpush.msk.msra.mxu2 %vm274_vm0, %v5887_v32  ;;  %v6387_v32 = vld.sshfl [vmem:[#allocation1 + $0x30] sm:$0xff pattern:$0x75316420] }
  0xf7   : > { %3589 = vrot.lane.b32.xlu0 %v6286_v9, %s5692_s20  ;;  %3407 = vrot.lane.b32.xlu2 %v6264_v42, %s5692_s20  ;;  %3762 = vst [vmem:[#allocation1 + $0x30] ss:$2 sm:$0xff] %v3749_v4  ;;  %v6417_v42 = vld [vmem:[%s5740_s23 + $0x40] sm:$0xff] }
  0xf8   : > { %3587 = vrot.lane.b32.xlu1 %v3579_v14, %s5692_s20  ;;  %v2155_v28 = vpop.permute.xlu0 %2154  ;;  %5390 = vmatpush.msk.msra.mxu3 %vm274_vm0, %v5889_v33  ;;  %v6403_v33 = vld.sshfl [vmem:[#allocation1 + $0x28] sm:$0xff pattern:$0x75316420] }
  0xf9   : > { %5384 = vmatpush.msk.msra.mxu0 %vm274_vm0, %v5895_v35  ;;  %v3765_v35 = vld.sshfl [vmem:[#allocation1 + $0x10] sm:$0xff pattern:$0x75316420]  ;;  %v3950_v14 = vld.sshfl [vmem:[#allocation1 + $0x8] sm:$0xff pattern:$0x75316420] }
  0xfa   : > { %v1657_v7 = vpop.permute.xlu1 %1656  ;;  %v6392_v36 = vpop.permute.xlu2 %2659 }
  0xfb   : > { %v1664_v11 = vsel %vm1658_vm4, %v1655_v50, %v1657_v7  ;;  %5381 = vmatmul.msk.f32.vlgmr.msrb.gmra.mxu2 %vm270_vm1, %v5379_v2  ;;  %5383 = vmatmul.msk.f32.vlgmr.msrb.gmra.mxu3 %vm270_vm1, %v5379_v2  ;;  %v5585_v50 = vld [vmem:[%s5740_s23 + $0x54] sm:$0xff] }
  0xfc   : > { %5374 = vmatpush.msk.msrb.mxu1 %vm274_vm0, %v1664_v11  ;;  %5400 = vmatpush.msk.msrb.mxu2 %vm274_vm0, %v5916_v55 }
  0xfd   : > { %5373 = vmatmul.msk.f32.vlgmr.msrb.gmra.mxu0 %vm270_vm1, %v5363_v10  ;;  %5375 = vmatmul.msk.f32.vlgmr.msrb.gmra.mxu1 %vm270_vm1, %v5363_v10  ;;  %v5587_v10 = vld [vmem:[%s5740_s23 + $0x64] sm:$0xff] }
  0xfe   : > { %5386 = vmatpush.msk.msra.mxu1 %vm274_vm0, %v5897_v38  ;;  %5402 = vmatpush.msk.msrb.mxu3 %vm274_vm0, %v5918_v56  ;;  %v6414_v38 = vld [vmem:[%s5740_s23 + $0x48] sm:$0xff]  ;;  %v2166_v56 = vsel %vm594_vm2, %v6326_v60, %v2155_v28  ;;  %v6454_v15 = vld.sshfl [vmem:[#allocation1 + $0x30] sm:$0xff pattern:$0x75316420] }
  0xff   : > { %3595 = vrot.lane.b32.xlu0 %v3583_v37, %s5692_s20  ;;  %3409 = vrot.lane.b32.xlu2 %v6266_v46, %s5692_s20  ;;  %v3766_v46 = vld.sshfl [vmem:[#allocation1 + $0x18] sm:$0xff pattern:$0x75316420]  ;;  %3946 = vst [vmem:[#allocation1 + $0x20] ss:$2 sm:$0xff] %v6414_v38  ;;  %v6493_v37 = vpop.f32.mrf.mxu2 }
 0x100   : > { %3411 = vrot.lane.b32.xlu1 %v3398_v51, %s5692_s20  ;;  %v2163_v55 = vpop.permute.xlu0 %2162  ;;  %5396 = vmatpush.msk.msrb.mxu0 %vm274_vm0, %v5922_v57  ;;  %3944 = vst [vmem:[#allocation1 + $0x10] ss:$2 sm:$0xff] %v6417_v42 }
 0x101   : > { %5398 = vmatpush.msk.msrb.mxu1 %vm274_vm0, %v5924_v58  ;;  %3948 = vst [vmem:[#allocation1 + $0x30] ss:$2 sm:$0xff] %v5571_v16 }
 0x102   : > { %v2157_v48 = vpop.permute.xlu1 %2156  ;;  %v6432_v58 = vpop.permute.xlu2 %2844 }
 0x103   : > { %v2167_v57 = vsel %vm594_vm2, %v2155_v28, %v2157_v48  ;;  %5389 = vmatmul.msk.f32.vlgmr.msra.gmra.mxu2 %vm270_vm1, %v5379_v2  ;;  %5391 = vmatmul.msk.f32.vlgmr.msra.gmra.mxu3 %vm270_vm1, %v5379_v2 }
 0x104   : > { %5413 = vmatpush.msk.msra.mxu2 %vm274_vm0, %v2166_v56  ;;  %5415 = vmatpush.msk.msra.mxu3 %vm274_vm0, %v2167_v57  ;;  %v5444_v56 = vld [vmem:[%s7299_s1 + $0x34] sm:$0xf] }
 0x105   : > { %5385 = vmatmul.msk.f32.vlgmr.msra.gmra.mxu0 %vm270_vm1, %v5379_v2  ;;  %5387 = vmatmul.msk.f32.vlgmr.msra.gmra.mxu1 %vm270_vm1, %v5379_v2  ;;  %v6564_v2 = vpop.f32.mrf.mxu0 }
 0x106   : > { %5404 = vmatpush.msk.msra.mxu0 %vm274_vm0, %v5911_v53  ;;  %5406 = vmatpush.msk.msra.mxu1 %vm274_vm0, %v5913_v54  ;;  %v2170_v53 = vsel %vm594_vm2, %v6358_v6, %v2163_v55  ;;  %v6478_v13 = vld.sshfl [vmem:[#allocation1 + $0x28] sm:$0xff pattern:$0x75316420]  ;;  %v6488_v60 = vld.sshfl [vmem:[#allocation1 + $0x20] sm:$0xff pattern:$0x75316420] }
 0x107   : > { %3774 = vrot.lane.b32.xlu0 %v3765_v35, %s5693_s26  ;;  %3593 = vrot.lane.b32.xlu2 %v6339_v19, %s5692_s20  ;;  %v6450_v8 = vld.sshfl [vmem:[#allocation1 + $0x10] sm:$0xff pattern:$0x75316420]  ;;  %v6452_v54 = vld.sshfl [vmem:[#allocation1 + $0x18] sm:$0xff pattern:$0x75316420] }
 0x108   : > { %3591 = vrot.lane.b32.xlu1 %v6292_v27, %s5692_s20  ;;  %v6443_v49 = vpop.permute.xlu0 %2671  ;;  %v2171_v27 = vsel %vm594_vm2, %v2163_v55, %v6301_v40  ;;  %4129 = vst [vmem:[#allocation1 + $0x10] ss:$2 sm:$0xff] %v5586_v45  ;;  %v5412_v40 = vld [vmem:[%s7299_s1 + $0x2c] sm:$0xf]  ;;  %v7310_v55 = vld [vmem:[#allocation3_spill] sm:$0xff] }
 0x109   : > { %v5588_v19 = vld [vmem:[%s5740_s23 + $0x6c] sm:$0xf]  ;;  %4131 = vst [vmem:[#allocation1 + $0x20] ss:$2 sm:$0xff] %v5587_v10 }
 0x10a   : > { %v2159_v9 = vpop.permute.xlu1 %2158  ;;  %v6500_v61 = vld.sshfl [vmem:[#allocation1 + $0x30] sm:$0xff pattern:$0x75316420] }
 0x10b   : > { %v2168_v1 = vsel %vm594_vm2, %v2157_v48, %v2159_v9  ;;  %v2169_v0 = vsel %vm594_vm2, %v2159_v9, %v6358_v6  ;;  %5401 = vmatmul.msk.f32.vlgmr.msrb.gmra.mxu2 %vm270_vm1, %v5395_v47  ;;  %5403 = vmatmul.msk.f32.vlgmr.msrb.gmra.mxu3 %vm270_vm1, %v5395_v47  ;;  %4133 = vst [vmem:[#allocation1 + $0x30] ss:$2 sm:$0xff] %v5588_v19  ;;  %v6512_v6 = vpop.f32.mrf.mxu1 }
 0x10c   : > { %5421 = vmatpush.msk.msrb.mxu2 %vm274_vm0, %v2170_v53  ;;  %5423 = vmatpush.msk.msrb.mxu3 %vm274_vm0, %v2171_v27 }
 0x10d   : > { %5397 = vmatmul.msk.f32.vlgmr.msrb.gmra.mxu0 %vm270_vm1, %v5395_v47  ;;  %5399 = vmatmul.msk.f32.vlgmr.msrb.gmra.mxu1 %vm270_vm1, %v5395_v47 }
 0x10e   : > { %5417 = vmatpush.msk.msrb.mxu0 %vm274_vm0, %v2168_v1  ;;  %5419 = vmatpush.msk.msrb.mxu1 %vm274_vm0, %v2169_v0  ;;  %v6486_v34 = vpop.permute.xlu2 %2848 }
 0x10f   : > { %3772 = vrot.lane.b32.xlu0 %v6350_v3, %s5693_s26  ;;  %3597 = vrot.lane.b32.xlu2 %v6387_v32, %s5692_s20  ;;  %v3949_v3 = vld.sshfl [vmem:[#allocation1] sm:$0xff pattern:$0x75316420]  ;;  %v4137_v4 = vld.sshfl [vmem:[#allocation1 + $0x18] sm:$0xff pattern:$0x75316420] }
 0x110   : > { %3776 = vrot.lane.b32.xlu1 %v3766_v46, %s5693_s26  ;;  %v6491_v31 = vpop.permute.xlu0 %2663  ;;  %4127 = vst [vmem:[#allocation1] ss:$2 sm:$0xff] %v5585_v50  ;;  %v6553_v28 = vld.sshfl [vmem:[#allocation1 + $0x20] sm:$0xff pattern:$0x75316420] }
 0x112   : > { %v6498_v51 = vpop.permute.xlu1 %2665  ;;  %v6593_v46 = vld.sshfl [vmem:[#allocation1 + $0x30] sm:$0xff pattern:$0x75316420] }
 0x113   : > { %5414 = vmatmul.msk.f32.vlgmr.msra.gmra.mxu2 %vm270_vm1, %v5412_v40  ;;  %5416 = vmatmul.msk.f32.vlgmr.msra.gmra.mxu3 %vm270_vm1, %v5412_v40 }
 0x114   : > { %5433 = vmatpush.msk.msra.mxu2 %vm274_vm0, %v5993_v20  ;;  %5435 = vmatpush.msk.msra.mxu3 %vm274_vm0, %v5995_v17  ;;  %v6525_v17 = vpop.f32.mrf.mxu3 }
 0x115   : > { %5405 = vmatmul.msk.f32.vlgmr.msra.gmra.mxu0 %vm270_vm1, %v5395_v47  ;;  %5407 = vmatmul.msk.f32.vlgmr.msra.gmra.mxu1 %vm270_vm1, %v5395_v47 }
 0x116   : > { %5429 = vmatpush.msk.msra.mxu0 %vm274_vm0, %v6004_v5  ;;  %5431 = vmatpush.msk.msra.mxu1 %vm274_vm0, %v6006_v25  ;;  %v6535_v25 = vpop.f32.mrf.mxu2 }
 0x117   : > { %3958 = vrot.lane.b32.xlu0 %v3950_v14, %s5692_s20  ;;  %3770 = vrot.lane.b32.xlu2 %v6352_v43, %s5693_s26  ;;  %v6529_v23 = vld.sshfl [vmem:[#allocation1] sm:$0xff pattern:$0x75316420]  ;;  %v6531_v5 = vld.sshfl [vmem:[#allocation1 + $0x8] sm:$0xff pattern:$0x75316420] }
 0x118   : > { %3778 = vrot.lane.b32.xlu1 %v6411_v39, %s5693_s26  ;;  %v6523_v20 = vpop.permute.xlu0 %2661  ;;  %4312 = vst [vmem:[#allocation1] ss:$2 sm:$0xff] %v6356_v30  ;;  %v5428_v43 = vld [vmem:[%s7299_s1 + $0x30] sm:$0xf]  ;;  %v7309_v30 = vld [vmem:[#allocation2_spill] sm:$0xff]  ;;  %v7311_v39 = vld [vmem:[#allocation4_spill] sm:$0xff] }
 0x119   : > { %v6527_v63 = vpop.permute.xlu2 %2854  ;;  %v2673_v27 = vsel %vm594_vm2, %v6392_v36, %v6523_v20  ;;  %v2674_v1 = vsel %vm594_vm2, %v6523_v20, %v6491_v31 }
 0x11a   : > { %v6533_v62 = vpop.permute.xlu1 %2667 }
 0x11b   : > { %5422 = vmatmul.msk.f32.vlgmr.msrb.gmra.mxu2 %vm270_vm1, %v5412_v40  ;;  %5424 = vmatmul.msk.f32.vlgmr.msrb.gmra.mxu3 %vm270_vm1, %v5412_v40  ;;  %v2676_v16 = vsel %vm594_vm2, %v6498_v51, %v6533_v62 }
 0x11c   : > { %5445 = vmatpush.msk.msrb.mxu2 %vm274_vm0, %v6027_v29  ;;  %5447 = vmatpush.msk.msrb.mxu3 %vm274_vm0, %v6029_v52  ;;  %v6558_v29 = vld.sshfl [vmem:[#allocation1 + $0x28] sm:$0xff pattern:$0x75316420]  ;;  %v6560_v52 = vld.sshfl [vmem:[#allocation1 + $0x10] sm:$0xff pattern:$0x75316420]  ;;  %v6574_v35 = vpop.f32.mrf.mxu3 }
 0x11d   : > { %5418 = vmatmul.msk.f32.vlgmr.msrb.gmra.mxu0 %vm270_vm1, %v5412_v40  ;;  %5420 = vmatmul.msk.f32.vlgmr.msrb.gmra.mxu1 %vm270_vm1, %v5412_v40  ;;  %4316 = vst [vmem:[#allocation1 + $0x20] ss:$2 sm:$0xff] %v6414_v38  ;;  %v7312_v38 = vld [vmem:[#allocation5_spill] sm:$0xff] }
 0x11e   : > { %5437 = vmatpush.msk.msrb.mxu0 %vm274_vm0, %v5985_v22  ;;  %5439 = vmatpush.msk.msrb.mxu1 %vm274_vm0, %v7309_v30  ;;  %v6566_v22 = vpop.f32.mrf.mxu1  ;;  %4314 = vst [vmem:[#allocation1 + $0x10] ss:$2 sm:$0xff] %v6417_v42  ;;  %v7313_v42 = vld [vmem:[#allocation6_spill] sm:$0xff] }
 0x11f   : > { %3782 = vrot.lane.b32.xlu0 %v6454_v15, %s5693_s26  ;;  %3956 = vrot.lane.b32.xlu2 %v3949_v3, %s5692_s20  ;;  %v4319_v14 = vld.sshfl [vmem:[#allocation1] sm:$0xff pattern:$0x75316420] }
 0x120   : > { %3780 = vrot.lane.b32.xlu1 %v6403_v33, %s5693_s26  ;;  %v6576_v33 = vpop.f32.mrf.mxu2 }
 0x121   : > { %v2847_v32 = vpop.permute.xlu0 %2846  ;;  %v6569_v7 = vpop.permute.xlu2 %3033 }
 0x122   : > { %v2670_v11 = vpop.permute.xlu1 %2669  ;;  %v2858_v3 = vsel %vm1287_vm3, %v6432_v58, %v2847_v32 }
 0x123   : > { %5434 = vmatmul.msk.f32.vlgmr.msra.gmra.mxu2 %vm270_vm1, %v5428_v43  ;;  %5436 = vmatmul.msk.f32.vlgmr.msra.gmra.mxu3 %vm270_vm1, %v5428_v43  ;;  %v2678_v20 = vsel %vm594_vm2, %v2670_v11, %v6443_v49  ;;  %v5461_v49 = vld [vmem:[%s7299_s1 + $0x38] sm:$0xf] }
 0x124   : > { %5453 = vmatpush.msk.msra.mxu2 %vm274_vm0, %v7310_v55  ;;  %5455 = vmatpush.msk.msra.mxu3 %vm274_vm0, %v7311_v39  ;;  %v6640_v36 = vld.sshfl [vmem:[#allocation1 + $0x20] sm:$0xff pattern:$0x75316420] }
 0x125   : > { %5430 = vmatmul.msk.f32.vlgmr.msra.gmra.mxu0 %vm270_vm1, %v5428_v43  ;;  %5432 = vmatmul.msk.f32.vlgmr.msra.gmra.mxu1 %vm270_vm1, %v5428_v43  ;;  %v6599_v48 = vld.sshfl [vmem:[#allocation1 + $0x10] sm:$0xff pattern:$0x75316420]  ;;  %v6601_v57 = vld.sshfl [vmem:[#allocation1 + $0x18] sm:$0xff pattern:$0x75316420] }
 0x126   : > { %5449 = vmatpush.msk.msra.mxu0 %vm274_vm0, %v7312_v38  ;;  %5451 = vmatpush.msk.msra.mxu1 %vm274_vm0, %v7313_v42  ;;  %4499 = vst [vmem:[#allocation1 + $0x10] ss:$2 sm:$0xff] %v6295_v44 }
 0x127   : > { %3962 = vrot.lane.b32.xlu0 %v6452_v54, %s5692_s20  ;;  %3960 = vrot.lane.b32.xlu2 %v6450_v8, %s5692_s20  ;;  %v5605_v54 = vld [vmem:[%s5740_s23 + $0x50] sm:$0xf]  ;;  %v2675_v8 = vsel %vm594_vm2, %v6491_v31, %v6498_v51  ;;  %v6646_v31 = vld.sshfl [vmem:[#allocation1 + $0x28] sm:$0xff pattern:$0x75316420]  ;;  %v2859_v51 = vsel %vm1287_vm3, %v2847_v32, %v6486_v34 }
 0x128   : > { %3964 = vrot.lane.b32.xlu1 %v6488_v60, %s5692_s20  ;;  %4318 = vst [vmem:[#allocation1 + $0x30] ss:$2 sm:$0xff] %v5605_v54  ;;  %v6642_v60 = vld.sshfl [vmem:[#allocation1 + $0x8] sm:$0xff pattern:$0x75316420] }
 0x129   : > { %v6603_v47 = vpop.permute.xlu0 %2850  ;;  %v6605_v53 = vpop.permute.xlu2 %3031  ;;  %4497 = vst [vmem:[#allocation1] ss:$2 sm:$0xff] %v6323_v18 }
 0x12a   : > { %v6609_v9 = vpop.f32.mrf.mxu0  ;;  %v6611_v15 = vpop.f32.mrf.mxu1  ;;  %4501 = vst [vmem:[#allocation1 + $0x20] ss:$2 sm:$0xff] %v6235_v59  ;;  %v2677_v59 = vsel %vm594_vm2, %v6533_v62, %v2670_v11  ;;  %v5632_v11 = vld [vmem:[%s5740_s23 + $0x1c] sm:$0xff] }
 0x12b   : > { %v6619_v45 = vpop.permute.xlu1 %2852  ;;  %5446 = vmatmul.msk.f32.vlgmr.msrb.gmra.mxu2 %vm270_vm1, %v5444_v56  ;;  %5448 = vmatmul.msk.f32.vlgmr.msrb.gmra.mxu3 %vm270_vm1, %v5444_v56 }
 0x12c   : > { %5466 = vmatpush.msk.msrb.mxu2 %vm274_vm0, %v2675_v8  ;;  %5468 = vmatpush.msk.msrb.mxu3 %vm274_vm0, %v2676_v16 }
 0x12d   : > { %5438 = vmatmul.msk.f32.vlgmr.msrb.gmra.mxu0 %vm270_vm1, %v5428_v43  ;;  %5440 = vmatmul.msk.f32.vlgmr.msrb.gmra.mxu1 %vm270_vm1, %v5428_v43  ;;  %v6735_v16 = vld.sshfl [vmem:[#allocation1 + $0x18] sm:$0xff pattern:$0x75316420] }
 0x12e   : > { %5462 = vmatpush.msk.msrb.mxu0 %vm274_vm0, %v2673_v27  ;;  %5464 = vmatpush.msk.msrb.mxu1 %vm274_vm0, %v2674_v1  ;;  %v6635_v0 = vpop.f32.mrf.mxu3  ;;  %v673_v40 = vpop.f32.mrf.mxu2  ;;  %v6739_v27 = vld.sshfl [vmem:[#allocation1 + $0x10] sm:$0xff pattern:$0x75316420] }
 0x12f   : > { %4147 = vrot.lane.b32.xlu0 %v4137_v4, %s5692_s20  ;;  %3966 = vrot.lane.b32.xlu2 %v6478_v13, %s5692_s20 }
 0x130   : > { %3968 = vrot.lane.b32.xlu1 %v6500_v61, %s5692_s20  ;;  %v6687_v62 = vld.sshfl [vmem:[#allocation1] sm:$0xff pattern:$0x75316420]  ;;  %v6693_v32 = vld.sshfl [vmem:[#allocation1 + $0x8] sm:$0xff pattern:$0x75316420] }
 0x131   : > { %v6649_v19 = vpop.permute.xlu0 %3035  ;;  %v6651_v10 = vpop.permute.xlu2 %3216  ;;  %4683 = vst [vmem:[#allocation1] ss:$2 sm:$0xff] %v5632_v11  ;;  %v6782_v11 = vld.sshfl [vmem:[#allocation1 + $0x28] sm:$0xff pattern:$0x75316420] }
 0x132   : > { %v6654_v50 = vpop.f32.mrf.mxu0  ;;  %v6656_v13 = vpop.f32.mrf.mxu1  ;;  %v3045_v1 = vsel %vm1287_vm3, %v6569_v7, %v6649_v19 }
 0x133   : > { %v2857_v61 = vpop.permute.xlu1 %2856  ;;  %5454 = vmatmul.msk.f32.vlgmr.msra.gmra.mxu2 %vm270_vm1, %v5444_v56  ;;  %5456 = vmatmul.msk.f32.vlgmr.msra.gmra.mxu3 %vm270_vm1, %v5444_v56 }
 0x134   : > { %5479 = vmatpush.msk.msra.mxu2 %vm274_vm0, %v2858_v3  ;;  %5481 = vmatpush.msk.msra.mxu3 %vm274_vm0, %v2859_v51  ;;  %v2863_v39 = vsel %vm1287_vm3, %v6527_v63, %v2857_v61  ;;  %v3044_v3 = vsel %vm1287_vm3, %v6605_v53, %v6569_v7 }
 0x135   : > { %5450 = vmatmul.msk.f32.vlgmr.msra.gmra.mxu0 %vm270_vm1, %v5444_v56  ;;  %5452 = vmatmul.msk.f32.vlgmr.msra.gmra.mxu1 %vm270_vm1, %v5444_v56 }
 0x136   : > { %5470 = vmatpush.msk.msra.mxu0 %vm274_vm0, %v2677_v59  ;;  %5472 = vmatpush.msk.msra.mxu1 %vm274_vm0, %v2678_v20  ;;  %v6674_v58 = vpop.f32.mrf.mxu3  ;;  %v6676_v43 = vpop.f32.mrf.mxu2 }
 0x137   : > { %4149 = vrot.lane.b32.xlu0 %v6553_v28, %s5692_s20  ;;  %4145 = vrot.lane.b32.xlu2 %v6560_v52, %s5692_s20  ;;  %v2862_v52 = vsel %vm1287_vm3, %v6619_v45, %v6527_v63 }
 0x138   : > { %4141 = vrot.lane.b32.xlu1 %v6529_v23, %s5692_s20  ;;  %v494_v23 = vadd.f32 %v6564_v2, %v6493_v37  ;;  %v2860_v37 = vsel %vm1287_vm3, %v6486_v34, %v6603_v47  ;;  %v2861_v2 = vsel %vm1287_vm3, %v6603_v47, %v6619_v45  ;;  %v5478_v34 = vld [vmem:[%s7299_s1 + $0x3c] sm:$0xf]  ;;  %v454_v47 = vadd.f32 %v6535_v25, %v6467_v21  ;;  %v6770_v7 = vld.sshfl [vmem:[#allocation1] sm:$0xff pattern:$0x75316420] }
 0x139   : > { %v6689_v30 = vpop.permute.xlu0 %3037  ;;  %v6691_v4 = vpop.permute.xlu2 %3041 }
 0x13a   : > { %v834_v28 = vpop.f32.mrf.mxu0  ;;  %v6696_v55 = vpop.f32.mrf.mxu1  ;;  %v738_v56 = vadd.f32 %v673_v40, %v494_v23  ;;  %v3046_v21 = vsel %vm1287_vm3, %v6649_v19, %v6689_v30  ;;  %v4325_v23 = vld.sshfl [vmem:[#allocation1 + $0x30] sm:$0xff pattern:$0x75316420] }
 0x13b   : > { %v3030_v38 = vpop.permute.xlu1 %3029  ;;  %5467 = vmatmul.msk.f32.vlgmr.msrb.gmra.mxu2 %vm270_vm1, %v5461_v49  ;;  %5469 = vmatmul.msk.f32.vlgmr.msrb.gmra.mxu3 %vm270_vm1, %v5461_v49 }
 0x13c   : > { %5487 = vmatpush.msk.msrb.mxu2 %vm274_vm0, %v2862_v52  ;;  %5489 = vmatpush.msk.msrb.mxu3 %vm274_vm0, %v2863_v39  ;;  %v899_v40 = vadd.f32 %v834_v28, %v738_v56  ;;  %v3043_v51 = vsel %vm1287_vm3, %v3030_v38, %v6605_v53  ;;  %v6772_v53 = vld.sshfl [vmem:[#allocation1 + $0x8] sm:$0xff pattern:$0x75316420]  ;;  %v4490_v52 = vld [vmem:[%s5740_s23 + $0x18] sm:$0xf] }
 0x13d   : > { %5463 = vmatmul.msk.f32.vlgmr.msrb.gmra.mxu0 %vm270_vm1, %v5461_v49  ;;  %5465 = vmatmul.msk.f32.vlgmr.msrb.gmra.mxu1 %vm270_vm1, %v5461_v49  ;;  %4868 = vst [vmem:[#allocation1] ss:$2 sm:$0xff] %v6323_v18 }
 0x13e   : > { %5483 = vmatpush.msk.msrb.mxu0 %vm274_vm0, %v2860_v37  ;;  %5485 = vmatpush.msk.msrb.mxu1 %vm274_vm0, %v2861_v2  ;;  %v6719_v63 = vpop.f32.mrf.mxu3  ;;  %v6721_v42 = vpop.f32.mrf.mxu2  ;;  %4503 = vst [vmem:[#allocation1 + $0x30] ss:$2 sm:$0xff] %v4490_v52 }
 0x13f   : > { %4151 = vrot.lane.b32.xlu0 %v6558_v29, %s5692_s20  ;;  %4143 = vrot.lane.b32.xlu2 %v6531_v5, %s5692_s20  ;;  %v5633_v5 = vld [vmem:[%s5740_s23 + $0x24] sm:$0xff] }
 0x140   : > { %4326 = vrot.lane.b32.xlu1 %v4319_v14, %s5693_s26  ;;  %4685 = vst [vmem:[#allocation1 + $0x10] ss:$2 sm:$0xff] %v5633_v5  ;;  %v736_v14 = vadd.f32 %v6609_v9, %v454_v47 }
 0x141   : > { %v3040_v54 = vpop.permute.xlu0 %3039  ;;  %v6733_v8 = vpop.permute.xlu2 %3220 }
 0x142   : > { %v6737_v45 = vpop.f32.mrf.mxu1  ;;  %v955_v29 = vpop.f32.mrf.mxu0  ;;  %v897_v59 = vadd.f32 %v6676_v43, %v736_v14  ;;  %v3047_v38 = vsel %vm1287_vm3, %v6689_v30, %v3040_v54 }
 0x143   : > { %v3215_v25 = vpop.permute.xlu1 %3214  ;;  %5480 = vmatmul.msk.f32.vlgmr.msra.gmra.mxu2 %vm270_vm1, %v5478_v34  ;;  %5482 = vmatmul.msk.f32.vlgmr.msra.gmra.mxu3 %vm270_vm1, %v5478_v34 }
 0x144   : > { %5500 = vmatpush.msk.msra.mxu2 %vm274_vm0, %v3045_v1  ;;  %5502 = vmatpush.msk.msra.mxu3 %vm274_vm0, %v3046_v21  ;;  %v3228_v18 = vsel %vm1658_vm4, %v3215_v25, %v6651_v10 }
 0x145   : > { %5471 = vmatmul.msk.f32.vlgmr.msra.gmra.mxu0 %vm270_vm1, %v5461_v49  ;;  %5473 = vmatmul.msk.f32.vlgmr.msra.gmra.mxu1 %vm270_vm1, %v5461_v49 }
 0x146   : > { %5496 = vmatpush.msk.msra.mxu0 %vm274_vm0, %v3043_v51  ;;  %5498 = vmatpush.msk.msra.mxu1 %vm274_vm0, %v3044_v3  ;;  %v6762_v19 = vpop.f32.mrf.mxu3  ;;  %v995_v61 = vpop.f32.mrf.mxu2  ;;  %v4510_v51 = vld.sshfl [vmem:[#allocation1 + $0x30] sm:$0xff pattern:$0x75316420] }
 0x147   : > { %4334 = vrot.lane.b32.xlu0 %v6640_v36, %s5693_s26  ;;  %v6766_v9 = vadd.f32 %v995_v61, %v899_v40  ;;  %4328 = vrot.lane.b32.xlu2 %v6642_v60, %s5693_s26  ;;  %v6780_v36 = vld.sshfl [vmem:[#allocation1 + $0x20] sm:$0xff pattern:$0x75316420]  ;;  %v6822_v47 = vld.sshfl [vmem:[#allocation1 + $0x18] sm:$0xff pattern:$0x75316420] }
 0x148   : > { %4330 = vrot.lane.b32.xlu1 %v6599_v48, %s5693_s26  ;;  %v3048_v48 = vsel %vm1287_vm3, %v3040_v54, %v6691_v4  ;;  %4687 = vst [vmem:[#allocation1 + $0x20] ss:$2 sm:$0xff] %v6259_v41  ;;  %v1058_v4 = vadd.f32 %v955_v29, %v897_v59 }
 0x149   : > { %v3223_v20 = vpop.permute.xlu0 %3222  ;;  %v6778_v49 = vpop.permute.xlu2 %3405 }
 0x14a   : > { %v6784_v28 = vpop.f32.mrf.mxu1  ;;  %v6786_v60 = vpop.f32.mrf.mxu0 }
 0x14b   : > { %v3219_v43 = vpop.permute.xlu1 %3218  ;;  %5488 = vmatmul.msk.f32.vlgmr.msrb.gmra.mxu2 %vm270_vm1, %v5478_v34  ;;  %5490 = vmatmul.msk.f32.vlgmr.msrb.gmra.mxu3 %vm270_vm1, %v5478_v34 }
 0x14c   : > { %v3229_v39 = vsel %vm1658_vm4, %v6651_v10, %v3219_v43  ;;  %5513 = vmatpush.msk.msrb.mxu2 %vm274_vm0, %v3228_v18  ;;  %v5495_v10 = vld [vmem:[%s7299_s1 + $0x40] sm:$0xf]  ;;  %v3230_v40 = vsel %vm1658_vm4, %v3219_v43, %v6733_v8 }
 0x14d   : > { %5484 = vmatmul.msk.f32.vlgmr.msrb.gmra.mxu0 %vm270_vm1, %v5478_v34  ;;  %5486 = vmatmul.msk.f32.vlgmr.msrb.gmra.mxu1 %vm270_vm1, %v5478_v34  ;;  %v6820_v34 = vld.sshfl [vmem:[#allocation1 + $0x10] sm:$0xff pattern:$0x75316420] }
 0x14e   : > { %5504 = vmatpush.msk.msrb.mxu0 %vm274_vm0, %v3047_v38  ;;  %5506 = vmatpush.msk.msrb.mxu1 %vm274_vm0, %v3048_v48  ;;  %v6805_v37 = vpop.f32.mrf.mxu3  ;;  %v1140_v2 = vpop.f32.mrf.mxu2  ;;  %4870 = vst [vmem:[#allocation1 + $0x10] ss:$2 sm:$0xff] %v6295_v44  ;;  %v4861_v38 = vld [vmem:[%s5740_s23 + $0x18] sm:$0xf] }
 0x14f   : > { %5515 = vmatpush.msk.msrb.mxu3 %vm274_vm0, %v3229_v39  ;;  %4338 = vrot.lane.b32.xlu0 %v4325_v23, %s5693_s26  ;;  %v6809_v41 = vadd.f32 %v1140_v2, %v1058_v4  ;;  %v6878_v52 = vld.sshfl [vmem:[#allocation1 + $0x20] sm:$0xff pattern:$0x75316420]  ;;  %v4860_v39 = vld [vmem:[%s5740_s23 + $0x10] sm:$0xff] }
 0x150   : > { %4336 = vrot.lane.b32.xlu1 %v6646_v31, %s5693_s26  ;;  %4153 = vrot.lane.b32.xlu2 %v6593_v46, %s5692_s20  ;;  %v3231_v31 = vsel %vm1658_vm4, %v6733_v8, %v3223_v20  ;;  %v5512_v8 = vld [vmem:[%s7299_s1 + $0x44] sm:$0xf] }
 0x151   : > { %v3227_v30 = vpop.permute.xlu0 %3226  ;;  %v6818_v56 = vpop.permute.xlu2 %3407 }
 0x152   : > { %v6824_v54 = vpop.f32.mrf.mxu1  ;;  %v6826_v29 = vpop.f32.mrf.mxu0  ;;  %v3417_v25 = vsel %vm3413_vm5, %v6778_v49, %v6818_v56 }
 0x153   : > { %v3225_v5 = vpop.permute.xlu1 %3224  ;;  %5501 = vmatmul.msk.f32.vlgmr.msra.gmra.mxu2 %vm270_vm1, %v5495_v10  ;;  %5503 = vmatmul.msk.f32.vlgmr.msra.gmra.mxu3 %vm270_vm1, %v5495_v10 }
 0x154   : > { %v3232_v46 = vsel %vm1658_vm4, %v3223_v20, %v3225_v5  ;;  %v3233_v1 = vsel %vm1658_vm4, %v3225_v5, %v3227_v30 }
 0x155   : > { %5497 = vmatmul.msk.f32.vlgmr.msra.gmra.mxu0 %vm270_vm1, %v5495_v10  ;;  %5499 = vmatmul.msk.f32.vlgmr.msra.gmra.mxu1 %vm270_vm1, %v5495_v10 }
 0x156   : > { %5517 = vmatpush.msk.msra.mxu0 %vm274_vm0, %v3230_v40  ;;  %5519 = vmatpush.msk.msra.mxu1 %vm274_vm0, %v3231_v31  ;;  %v6841_v44 = vpop.f32.mrf.mxu3  ;;  %v6843_v21 = vpop.f32.mrf.mxu2 }
 0x157   : > { %5521 = vmatpush.msk.msra.mxu2 %vm274_vm0, %v3232_v46  ;;  %5523 = vmatpush.msk.msra.mxu3 %vm274_vm0, %v3233_v1 }
 0x158   : > { %4515 = vrot.lane.b32.xlu1 %v6739_v27, %s5694_s16  ;;  %4511 = vrot.lane.b32.xlu0 %v6687_v62, %s5694_s16  ;;  %v5635_v27 = vld [vmem:[%s5740_s23 + $0x34] sm:$0xf] }
 0x159   : > { %v3400_v14 = vpop.permute.xlu0 %3399  ;;  %4332 = vrot.lane.b32.xlu2 %v6601_v57, %s5693_s26  ;;  %v6859_v3 = vpop.permute.xlu2 %3409  ;;  %4689 = vst [vmem:[#allocation1 + $0x30] ss:$2 sm:$0xff] %v5635_v27  ;;  %s241_s26 = scalar_lea.vmem %s7302_s4, %s5241_s22 }
 0x15a   : > { %v6862_v61 = vpop.f32.mrf.mxu1  ;;  %v6864_v62 = vpop.f32.mrf.mxu0 }
 0x15b   : > { %v3404_v59 = vpop.permute.xlu1 %3403  ;;  %5514 = vmatmul.msk.f32.vlgmr.msrb.gmra.mxu2 %vm270_vm1, %v5512_v8  ;;  %5516 = vmatmul.msk.f32.vlgmr.msrb.gmra.mxu3 %vm270_vm1, %v5512_v8 }
 0x15c   : > { %v3416_v20 = vsel %vm3413_vm5, %v3404_v59, %v6778_v49  ;;  %5532 = vmatpush.msk.msrb.mxu3 %vm274_vm0, %v3417_v25  ;;  %v4695_v49 = vld.sshfl [vmem:[#allocation1 + $0x28] sm:$0xff pattern:$0x75316420] }
 0x15d   : > { %5505 = vmatmul.msk.f32.vlgmr.msrb.gmra.mxu0 %vm270_vm1, %v5495_v10  ;;  %5507 = vmatmul.msk.f32.vlgmr.msrb.gmra.mxu1 %vm270_vm1, %v5495_v10  ;;  %4872 = vst [vmem:[#allocation1 + $0x20] ss:$2 sm:$0xff] %v4860_v39 }
 0x15e   : > { %5530 = vmatpush.msk.msrb.mxu2 %vm274_vm0, %v3416_v20  ;;  %v6874_v57 = vpop.f32.mrf.mxu3  ;;  %v6876_v23 = vpop.f32.mrf.mxu2 }
 0x160   : > { %4513 = vrot.lane.b32.xlu1 %v6693_v32, %s5694_s16  ;;  %4697 = vrot.lane.b32.xlu0 %v6770_v7, %s5694_s16  ;;  %v6888_v43 = vld.sshfl [vmem:[#allocation1 + $0x30] sm:$0xff pattern:$0x75316420] }
 0x161   : > { %v3586_v48 = vpop.permute.xlu0 %3585  ;;  %4517 = vrot.lane.b32.xlu2 %v6735_v16, %s5694_s16  ;;  %v6886_v18 = vpop.permute.xlu2 %3593  ;;  %4874 = vst [vmem:[#allocation1 + $0x30] ss:$2 sm:$0xff] %v4861_v38  ;;  %v3418_v16 = vsel %vm3413_vm5, %v6818_v56, %v6859_v3  ;;  %v5525_v56 = vld [vmem:[%s7299_s1 + $0x48] sm:$0xf] }
 0x162   : > { %v6892_v4 = vpop.f32.mrf.mxu1  ;;  %v6894_v2 = vpop.f32.mrf.mxu0 }
 0x163   : > { %v3402_v32 = vpop.permute.xlu1 %3401  ;;  %5522 = vmatmul.msk.f32.vlgmr.msra.gmra.mxu2 %vm270_vm1, %v5512_v8  ;;  %5524 = vmatmul.msk.f32.vlgmr.msra.gmra.mxu3 %vm270_vm1, %v5512_v8 }
 0x164   : > { %v3414_v7 = vsel %vm3413_vm5, %v3400_v14, %v3402_v32  ;;  %v3415_v10 = vsel %vm3413_vm5, %v3402_v32, %v3404_v59  ;;  %v5542_v14 = vld [vmem:[%s7299_s1 + $0x4c] sm:$0xf] }
 0x165   : > { %5526 = vmatpush.msk.msrb.mxu0 %vm274_vm0, %v3414_v7  ;;  %5528 = vmatpush.msk.msrb.mxu1 %vm274_vm0, %v3415_v10 }
 0x166   : > { %5518 = vmatmul.msk.f32.vlgmr.msra.gmra.mxu0 %vm270_vm1, %v5512_v8  ;;  %5520 = vmatmul.msk.f32.vlgmr.msra.gmra.mxu1 %vm270_vm1, %v5512_v8  ;;  %v6907_v30 = vpop.f32.mrf.mxu3  ;;  %v6909_v31 = vpop.f32.mrf.mxu2 }
 0x167   : > { %5534 = vmatpush.msk.msra.mxu0 %vm274_vm0, %v3418_v16 }
 0x168   : > { %4699 = vrot.lane.b32.xlu1 %v6772_v53, %s5694_s16  ;;  %4701 = vrot.lane.b32.xlu0 %v6820_v34, %s5694_s16 }
 0x169   : > { %v3590_v5 = vpop.permute.xlu0 %3589  ;;  %4519 = vrot.lane.b32.xlu2 %v6780_v36, %s5694_s16  ;;  %v3598_v46 = vpop.permute.xlu2 %3597 }
 0x16a   : > { %v6921_v1 = vpop.f32.mrf.mxu1  ;;  %v6923_v40 = vpop.f32.mrf.mxu0 }
 0x16b   : > { %v3588_v8 = vpop.permute.xlu1 %3587  ;;  %5531 = vmatmul.msk.f32.vlgmr.msrb.gmra.mxu2 %vm270_vm1, %v5525_v56  ;;  %5533 = vmatmul.msk.f32.vlgmr.msrb.gmra.mxu3 %vm270_vm1, %v5525_v56 }
 0x16c   : > { %v3599_v53 = vsel %vm3413_vm5, %v3586_v48, %v3588_v8  ;;  %v3600_v34 = vsel %vm3413_vm5, %v3588_v8, %v3590_v5 }
 0x16d   : > { %5543 = vmatpush.msk.msra.mxu2 %vm274_vm0, %v3599_v53  ;;  %5545 = vmatpush.msk.msra.mxu3 %vm274_vm0, %v3600_v34  ;;  %v474_v53 = vadd.f32 %v6525_v17, %v6469_v26  ;;  %v4876_v34 = vld.sshfl [vmem:[#allocation1 + $0x8] sm:$0xff pattern:$0x75316420] }
 0x16e   : > { %5527 = vmatmul.msk.f32.vlgmr.msrb.gmra.mxu0 %vm270_vm1, %v5525_v56  ;;  %5529 = vmatmul.msk.f32.vlgmr.msrb.gmra.mxu1 %vm270_vm1, %v5525_v56  ;;  %v6933_v36 = vpop.f32.mrf.mxu3  ;;  %v6935_v25 = vpop.f32.mrf.mxu2 }
 0x16f   : > { %v737_v26 = vadd.f32 %v6611_v15, %v474_v53  ;;  %v7010_v15 = vld [vmem:[%s7299_s1 + $0x50] sm:$0xf] }
 0x170   : > { %4523 = vrot.lane.b32.xlu1 %v4510_v51, %s5694_s16  ;;  %4707 = vrot.lane.b32.xlu0 %v4695_v49, %s5694_s16 }
 0x171   : > { %v3596_v27 = vpop.permute.xlu0 %3595  ;;  %4521 = vrot.lane.b32.xlu2 %v6782_v11, %s5694_s16  ;;  %v3771_v59 = vpop.permute.xlu2 %3770  ;;  %v4877_v11 = vld.sshfl [vmem:[#allocation1 + $0x10] sm:$0xff pattern:$0x75316420] }
 0x172   : > { %v6944_v20 = vpop.f32.mrf.mxu1  ;;  %v3603_v48 = vsel %vm3413_vm5, %v6886_v18, %v3596_v27  ;;  %v3604_v39 = vsel %vm3413_vm5, %v3596_v27, %v3598_v46  ;;  %v6949_v38 = vpop.f32.mrf.mxu0 }
 0x173   : > { %v3412_v51 = vpop.permute.xlu1 %3411  ;;  %5544 = vmatmul.msk.f32.vlgmr.msra.gmra.mxu2 %vm270_vm1, %v5542_v14  ;;  %5546 = vmatmul.msk.f32.vlgmr.msra.gmra.mxu3 %vm270_vm1, %v5542_v14 }
 0x174   : > { %v3419_v49 = vsel %vm3413_vm5, %v6859_v3, %v3412_v51  ;;  %5551 = vmatpush.msk.msrb.mxu2 %vm274_vm0, %v3603_v48  ;;  %5553 = vmatpush.msk.msrb.mxu3 %vm274_vm0, %v3604_v39 }
 0x175   : > { %5536 = vmatpush.msk.msra.mxu1 %vm274_vm0, %v3419_v49 }
 0x176   : > { %5535 = vmatmul.msk.f32.vlgmr.msra.gmra.mxu0 %vm270_vm1, %v5525_v56  ;;  %5537 = vmatmul.msk.f32.vlgmr.msra.gmra.mxu1 %vm270_vm1, %v5525_v56  ;;  %v6960_v32 = vpop.f32.mrf.mxu3  ;;  %v6962_v16 = vpop.f32.mrf.mxu2 }
 0x178   : > { %4703 = vrot.lane.b32.xlu1 %v6822_v47, %s5694_s16  ;;  %4886 = vrot.lane.b32.xlu0 %v4877_v11, %s5695_s25  ;;  %v4879_v11 = vld.sshfl [vmem:[#allocation1 + $0x20] sm:$0xff pattern:$0x75316420] }
 0x179   : > { %v3775_v3 = vpop.permute.xlu0 %3774  ;;  %4705 = vrot.lane.b32.xlu2 %v6878_v52, %s5694_s16  ;;  %v3957_v7 = vpop.permute.xlu2 %3956  ;;  %v4878_v52 = vld.sshfl [vmem:[#allocation1 + $0x18] sm:$0xff pattern:$0x75316420] }
 0x17a   : > { %v6969_v10 = vpop.f32.mrf.mxu1  ;;  %v6971_v46 = vpop.f32.mrf.mxu0 }
 0x17b   : > { %v3592_v56 = vpop.permute.xlu1 %3591  ;;  %5552 = vmatmul.msk.f32.vlgmr.msrb.gmra.mxu2 %vm270_vm1, %v5542_v14  ;;  %5554 = vmatmul.msk.f32.vlgmr.msrb.gmra.mxu3 %vm270_vm1, %v5542_v14 }
 0x17c   : > { %v3601_v8 = vsel %vm3413_vm5, %v3590_v5, %v3592_v56  ;;  %v3602_v47 = vsel %vm3413_vm5, %v3592_v56, %v6886_v18  ;;  %v514_v18 = vadd.f32 %v6566_v22, %v6482_v12  ;;  %v4881_v56 = vld.sshfl [vmem:[#allocation1 + $0x30] sm:$0xff pattern:$0x75316420] }
 0x17d   : > { %5547 = vmatpush.msk.msrb.mxu0 %vm274_vm0, %v3601_v8  ;;  %5549 = vmatpush.msk.msrb.mxu1 %vm274_vm0, %v3602_v47 }
 0x17e   : > { %5548 = vmatmul.msk.f32.vlgmr.msrb.gmra.mxu0 %vm270_vm1, %v5542_v14  ;;  %5550 = vmatmul.msk.f32.vlgmr.msrb.gmra.mxu1 %vm270_vm1, %v5542_v14  ;;  %v6984_v27 = vpop.f32.mrf.mxu3  ;;  %v6986_v48 = vpop.f32.mrf.mxu2  ;;  %v554_v14 = vadd.f32 %v6574_v35, %v6512_v6  ;;  %v534_v6 = vadd.f32 %v6576_v33, %v6510_v24  ;;  %v739_v35 = vadd.f32 %v6635_v0, %v514_v18  ;;  %v4875_v33 = vld.sshfl [vmem:[#allocation1] sm:$0xff pattern:$0x75316420] }
 0x180   : > { %4888 = vrot.lane.b32.xlu1 %v4878_v52, %s5695_s25  ;;  %4884 = vrot.lane.b32.xlu0 %v4876_v34, %s5695_s25  ;;  %v741_v8 = vadd.f32 %v6656_v13, %v554_v14  ;;  %v740_v0 = vadd.f32 %v6654_v50, %v534_v6  ;;  %v4880_v6 = vld.sshfl [vmem:[#allocation1 + $0x28] sm:$0xff pattern:$0x75316420] }
 0x181   : > { %v3773_v17 = vpop.permute.xlu0 %3772  ;;  %4709 = vrot.lane.b32.xlu2 %v6888_v43, %s5694_s16  ;;  %v6995_v5 = vpop.permute.xlu2 %3960 }
 0x182   : > { %v6999_v39 = vpop.f32.mrf.mxu1  ;;  %v3785_v51 = vsel %vm3784_vm6, %v3771_v59, %v3773_v17  ;;  %v3786_v12 = vsel %vm3784_vm6, %v3773_v17, %v3775_v3  ;;  %v7003_v22 = vpop.f32.mrf.mxu0  ;;  %v898_v59 = vadd.f32 %v6674_v58, %v737_v26  ;;  %v900_v58 = vadd.f32 %v6696_v55, %v739_v35 }
 0x183   : > { %v3777_v49 = vpop.permute.xlu1 %3776  ;;  %5556 = vmatpush.msk.msra.mxu0 %vm274_vm0, %v3785_v51  ;;  %5558 = vmatpush.msk.msra.mxu1 %vm274_vm0, %v3786_v12  ;;  %v902_v52 = vadd.f32 %v6719_v63, %v741_v8  ;;  %v901_v17 = vadd.f32 %v6721_v42, %v740_v0  ;;  %v7049_v63 = vld [vmem:[%s7299_s1 + $0x54] sm:$0xf]  ;;  %v1245_v35 = vadd.f32 %v6826_v29, %v6766_v9 }
 0x184   : > { %v3787_v43 = vsel %vm3784_vm6, %v3775_v3, %v3777_v49  ;;  %v1059_v13 = vadd.f32 %v6737_v45, %v898_v59  ;;  %v1061_v45 = vadd.f32 %v6762_v19, %v900_v58 }
 0x185   : > { %5560 = vmatpush.msk.msra.mxu2 %vm274_vm0, %v3787_v43  ;;  %v1063_v42 = vadd.f32 %v6784_v28, %v902_v52  ;;  %v1062_v28 = vadd.f32 %v6786_v60, %v901_v17 }
 0x186   : > { %5557 = vmatmul.msk.f32.vlgmr.msra.gmra.mxu0 %vm270_vm1, %v7010_v15  ;;  %5559 = vmatmul.msk.f32.vlgmr.msra.gmra.mxu1 %vm270_vm1, %v7010_v15  ;;  %v7023_v47 = vpop.f32.mrf.mxu3  ;;  %v7025_v24 = vpop.f32.mrf.mxu2  ;;  %v1244_v50 = vadd.f32 %v6805_v37, %v1059_v13  ;;  %v1429_v37 = vadd.f32 %v6864_v62, %v6809_v41  ;;  %v1246_v19 = vadd.f32 %v6824_v54, %v1061_v45 }
 0x187   : > { %5561 = vmatmul.msk.f32.vlgmr.msra.gmra.mxu2 %vm270_vm1, %v7010_v15  ;;  %v1248_v54 = vadd.f32 %v6841_v44, %v1063_v42  ;;  %v1431_v62 = vadd.f32 %v6876_v23, %v1245_v35 }
 0x188   : > { %4890 = vrot.lane.b32.xlu1 %v4879_v11, %s5695_s25  ;;  %4894 = vrot.lane.b32.xlu0 %v4881_v56, %s5695_s25  ;;  %v1614_v43 = vadd.f32 %v6909_v31, %v1429_v37  ;;  %v1432_v41 = vadd.f32 %v6874_v57, %v1246_v19  ;;  %v1247_v31 = vadd.f32 %v6843_v21, %v1062_v28 }
 0x189   : > { %v3959_v3 = vpop.permute.xlu0 %3958  ;;  %v7034_v53 = vpop.permute.xlu2 %3966  ;;  %4882 = vrot.lane.b32.xlu2 %v4875_v33, %s5695_s25  ;;  %v1434_v57 = vadd.f32 %v6892_v4, %v1248_v54  ;;  %v1616_v44 = vadd.f32 %v6923_v40, %v1431_v62 }
 0x18a   : > { %v2039_v34 = vpop.f32.mrf.mxu1  ;;  %v3970_v18 = vsel %vm3413_vm5, %v3957_v7, %v3959_v3  ;;  %v2019_v26 = vpop.f32.mrf.mxu0  ;;  %v3971_v51 = vsel %vm3413_vm5, %v3959_v3, %v6995_v5  ;;  %v1430_v7 = vadd.f32 %v6862_v61, %v1244_v50  ;;  %v1800_v9 = vadd.f32 %v6949_v38, %v1614_v43 }
 0x18b   : > { %v3779_v55 = vpop.permute.xlu1 %3778  ;;  %5573 = vmatpush.msk.msrb.mxu2 %vm274_vm0, %v3970_v18  ;;  %v1617_v11 = vadd.f32 %v6921_v1, %v1432_v41  ;;  %v1433_v8 = vadd.f32 %v6894_v2, %v1247_v31  ;;  %v1802_v1 = vadd.f32 %v6962_v16, %v1616_v44  ;;  %v1619_v4 = vadd.f32 %v6933_v36, %v1434_v57  ;;  %v5589_v41 = vld [vmem:[%s7299_s1 + $0x58] sm:$0xf] }
 0x18c   : > { %v3788_v14 = vsel %vm3784_vm6, %v3777_v49, %v3779_v55  ;;  %v1615_v61 = vadd.f32 %v6907_v30, %v1430_v7 }
 0x18d   : > { %5562 = vmatpush.msk.msra.mxu3 %vm274_vm0, %v3788_v14  ;;  %v1803_v33 = vadd.f32 %v6960_v32, %v1617_v11  ;;  %v1618_v40 = vadd.f32 %v6935_v25, %v1433_v8  ;;  %v1805_v36 = vadd.f32 %v6969_v10, %v1619_v4 }
 0x18e   : > { %5563 = vmatmul.msk.f32.vlgmr.msra.gmra.mxu3 %vm270_vm1, %v7010_v15  ;;  %v2059_v12 = vpop.f32.mrf.mxu2  ;;  %v2079_v49 = vpop.f32.mrf.mxu3  ;;  %v1801_v59 = vadd.f32 %v6944_v20, %v1615_v61  ;;  %v1961_v20 = vadd.f32 %v6986_v48, %v1800_v9 }
 0x18f   : > { %5574 = vmatmul.msk.f32.vlgmr.msrb.gmra.mxu2 %vm270_vm1, %v7049_v63  ;;  %5575 = vmatpush.msk.msrb.mxu3 %vm274_vm0, %v3971_v51  ;;  %v1964_v16 = vadd.f32 %v6999_v39, %v1803_v33  ;;  %v1804_v25 = vadd.f32 %v6971_v46, %v1618_v40 }
 0x190   : > { %v1962_v23 = vadd.f32 %v6984_v27, %v1801_v59  ;;  %v2122_v13 = vadd.f32 %v2019_v26, %v1961_v20  ;;  %v1963_v27 = vadd.f32 %v7003_v22, %v1802_v1  ;;  %v1966_v22 = vadd.f32 %v7023_v47, %v1805_v36 }
 0x191   : > { %v3783_v29 = vpop.permute.xlu0 %3782  ;;  %v7072_v30 = vpop.permute.xlu2 %4145  ;;  %4892 = vrot.lane.b32.xlu2 %v4880_v6, %s5695_s25 }
 0x192   : > { %v2119_v60 = vpop.f32.mrf.mxu1  ;;  %v2099_v56 = vpop.f32.mrf.mxu0  ;;  %v2123_v58 = vadd.f32 %v2039_v34, %v1962_v23  ;;  %v2124_v52 = vadd.f32 %v2059_v12, %v1963_v27  ;;  %v2125_v34 = vadd.f32 %v2079_v49, %v1964_v16 }
 0x193   : > { %v3781_v38 = vpop.permute.xlu1 %3780  ;;  %v2127_v7 = vadd.f32 %v2119_v60, %v1966_v22 }
 0x194   : > { %v3789_v0 = vsel %vm3784_vm6, %v3779_v55, %v3781_v38  ;;  %v3790_v21 = vsel %vm3784_vm6, %v3781_v38, %v3783_v29  ;;  %v1965_v55 = vadd.f32 %v7025_v24, %v1804_v25 }
 0x195   : > { %5564 = vmatpush.msk.msrb.mxu0 %vm274_vm0, %v3789_v0  ;;  %5566 = vmatpush.msk.msrb.mxu1 %vm274_vm0, %v3790_v21 }
 0x196   : > { %5565 = vmatmul.msk.f32.vlgmr.msrb.gmra.mxu0 %vm270_vm1, %v7010_v15  ;;  %5567 = vmatmul.msk.f32.vlgmr.msrb.gmra.mxu1 %vm270_vm1, %v7010_v15  ;;  %v2224_v2 = vpop.f32.mrf.mxu3  ;;  %v2204_v32 = vpop.f32.mrf.mxu2 }
 0x197   : > { %5576 = vmatmul.msk.f32.vlgmr.msrb.gmra.mxu3 %vm270_vm1, %v7049_v63  ;;  %v2308_v48 = vadd.f32 %v2224_v2, %v2123_v58  ;;  %v2307_v3 = vadd.f32 %v2204_v32, %v2122_v13  ;;  %v5606_v2 = vld [vmem:[%s7299_s1 + $0x5c] sm:$0xf] }
 0x199   : > { %v3963_v18 = vpop.permute.xlu0 %3962  ;;  %v4144_v26 = vpop.permute.xlu2 %4143 }
 0x19a   : > { %v2264_v15 = vpop.f32.mrf.mxu1  ;;  %v3972_v50 = vsel %vm3413_vm5, %v6995_v5, %v3963_v18  ;;  %v2244_v39 = vpop.f32.mrf.mxu0  ;;  %v4156_v51 = vsel %vm3413_vm5, %v4144_v26, %v7072_v30  ;;  %v2126_v5 = vadd.f32 %v2099_v56, %v1965_v55 }
 0x19b   : > { %v2310_v17 = vadd.f32 %v2264_v15, %v2125_v34  ;;  %v3965_v45 = vpop.permute.xlu1 %3964  ;;  %v2309_v14 = vadd.f32 %v2244_v39, %v2124_v52  ;;  %5577 = vmatpush.msk.msra.mxu0 %vm274_vm0, %v3972_v50 }
 0x19c   : > { %v3974_v10 = vsel %vm3413_vm5, %v3965_v45, %v7034_v53  ;;  %v3973_v46 = vsel %vm3413_vm5, %v3963_v18, %v3965_v45 }
 0x19d   : > { %5579 = vmatpush.msk.msra.mxu1 %vm274_vm0, %v3973_v46  ;;  %5581 = vmatpush.msk.msra.mxu2 %vm274_vm0, %v3974_v10 }
 0x19e   : > { %5578 = vmatmul.msk.f32.vlgmr.msra.gmra.mxu0 %vm270_vm1, %v7049_v63  ;;  %5580 = vmatmul.msk.f32.vlgmr.msra.gmra.mxu1 %vm270_vm1, %v7049_v63  ;;  %v2304_v47 = vpop.f32.mrf.mxu3  ;;  %v2284_v24 = vpop.f32.mrf.mxu2 }
 0x19f   : > { %5582 = vmatmul.msk.f32.vlgmr.msra.gmra.mxu2 %vm270_vm1, %v7049_v63  ;;  %v2312_v37 = vadd.f32 %v2304_v47, %v2127_v7  ;;  %v2311_v42 = vadd.f32 %v2284_v24, %v2126_v5  ;;  %5592 = vmatpush.msk.msrb.mxu1 %vm274_vm0, %v4156_v51 }
 0x1a1   : > { %v4148_v19 = vpop.permute.xlu0 %4147  ;;  %v7119_v12 = vpop.permute.xlu2 %4328 }
 0x1a2   : > { %v2385_v49 = vpop.f32.mrf.mxu1  ;;  %v4157_v6 = vsel %vm3413_vm5, %v7072_v30, %v4148_v19  ;;  %v2365_v35 = vpop.f32.mrf.mxu0 }
 0x1a3   : > { %v2469_v61 = vadd.f32 %v2385_v49, %v2308_v48  ;;  %v3969_v43 = vpop.permute.xlu1 %3968  ;;  %v2468_v28 = vadd.f32 %v2365_v35, %v2307_v3  ;;  %5594 = vmatpush.msk.msrb.mxu2 %vm274_vm0, %v4157_v6 }
 0x1a4   : > { %v3975_v54 = vsel %vm3413_vm5, %v7034_v53, %v3969_v43 }
 0x1a5   : > { %5583 = vmatpush.msk.msra.mxu3 %vm274_vm0, %v3975_v54 }
 0x1a6   : > { %5584 = vmatmul.msk.f32.vlgmr.msra.gmra.mxu3 %vm270_vm1, %v7049_v63  ;;  %5593 = vmatmul.msk.f32.vlgmr.msrb.gmra.mxu1 %vm270_vm1, %v5589_v41  ;;  %v2405_v62 = vpop.f32.mrf.mxu2  ;;  %v2425_v59 = vpop.f32.mrf.mxu3 }
 0x1a7   : > { %5595 = vmatmul.msk.f32.vlgmr.msrb.gmra.mxu2 %vm270_vm1, %v5589_v41  ;;  %v2470_v9 = vadd.f32 %v2405_v62, %v2309_v14  ;;  %v2471_v29 = vadd.f32 %v2425_v59, %v2310_v17  ;;  %v5619_v59 = vld [vmem:[%s7299_s1 + $0x60] sm:$0xf] }
 0x1a9   : > { %v4150_v30 = vpop.permute.xlu0 %4149 }
 0x1aa   : > { %v2465_v31 = vpop.f32.mrf.mxu1  ;;  %v4158_v11 = vsel %vm3413_vm5, %v4148_v19, %v4150_v30  ;;  %v2445_v60 = vpop.f32.mrf.mxu0 }
 0x1ab   : > { %v2473_v56 = vadd.f32 %v2465_v31, %v2312_v37  ;;  %v4142_v53 = vpop.permute.xlu1 %4141  ;;  %v2472_v57 = vadd.f32 %v2445_v60, %v2311_v42  ;;  %5596 = vmatpush.msk.msrb.mxu3 %vm274_vm0, %v4158_v11  ;;  %v4154_v44 = vpop.permute.xlu2 %4153 }
 0x1ac   : > { %v4155_v63 = vsel %vm3413_vm5, %v4142_v53, %v4144_v26 }
 0x1ad   : > { %5590 = vmatpush.msk.msrb.mxu0 %vm274_vm0, %v4155_v63 }
 0x1ae   : > { %5591 = vmatmul.msk.f32.vlgmr.msrb.gmra.mxu0 %vm270_vm1, %v5589_v41  ;;  %5597 = vmatmul.msk.f32.vlgmr.msrb.gmra.mxu3 %vm270_vm1, %v5589_v41  ;;  %v2526_v23 = vpop.f32.mrf.mxu2  ;;  %v2546_v20 = vpop.f32.mrf.mxu3 }
 0x1af   : > { %v2629_v38 = vadd.f32 %v2526_v23, %v2468_v28  ;;  %v2630_v8 = vadd.f32 %v2546_v20, %v2469_v61 }
 0x1b1   : > { %v4152_v33 = vpop.permute.xlu0 %4151 }
 0x1b2   : > { %v2586_v0 = vpop.f32.mrf.mxu1  ;;  %v4159_v21 = vsel %vm3413_vm5, %v4150_v30, %v4152_v33  ;;  %v4160_v1 = vsel %vm3413_vm5, %v4152_v33, %v4154_v44  ;;  %v2566_v58 = vpop.f32.mrf.mxu0 }
 0x1b3   : > { %v2632_v13 = vadd.f32 %v2586_v0, %v2471_v29  ;;  %v4327_v4 = vpop.permute.xlu1 %4326  ;;  %v2631_v40 = vadd.f32 %v2566_v58, %v2470_v9  ;;  %5598 = vmatpush.msk.msra.mxu0 %vm274_vm0, %v4159_v21  ;;  %5600 = vmatpush.msk.msra.mxu1 %vm274_vm0, %v4160_v1  ;;  %v4333_v32 = vpop.permute.xlu2 %4332 }
 0x1b4   : > { %v4340_v16 = vsel %vm3784_vm6, %v4327_v4, %v7119_v12  ;;  %5601 = vmatmul.msk.f32.vlgmr.msra.gmra.mxu1 %vm270_vm1, %v5589_v41 }
 0x1b5   : > { %5607 = vmatpush.msk.msra.mxu2 %vm274_vm0, %v4340_v16 }
 0x1b6   : > { %5599 = vmatmul.msk.f32.vlgmr.msra.gmra.mxu0 %vm270_vm1, %v5589_v41  ;;  %5608 = vmatmul.msk.f32.vlgmr.msra.gmra.mxu2 %vm270_vm1, %v5606_v2  ;;  %v2606_v27 = vpop.f32.mrf.mxu2  ;;  %v2626_v48 = vpop.f32.mrf.mxu3 }
 0x1b7   : > { %v2633_v3 = vadd.f32 %v2606_v27, %v2472_v57  ;;  %v2634_v36 = vadd.f32 %v2626_v48, %v2473_v56  ;;  %v5636_v27 = vld [vmem:[%s7299_s1 + $0x64] sm:$0xf] }
 0x1b9   : > { %v4335_v25 = vpop.permute.xlu0 %4334 }
 0x1ba   : > { %v2731_v52 = vpop.f32.mrf.mxu1  ;;  %v4343_v34 = vsel %vm3784_vm6, %v4333_v32, %v4335_v25  ;;  %v2711_v18 = vpop.f32.mrf.mxu0 }
 0x1bb   : > { %v2815_v26 = vadd.f32 %v2731_v52, %v2630_v8  ;;  %v4331_v15 = vpop.permute.xlu1 %4330  ;;  %v2814_v50 = vadd.f32 %v2711_v18, %v2629_v38  ;;  %5613 = vmatpush.msk.msrb.mxu1 %vm274_vm0, %v4343_v34  ;;  %v4518_v39 = vpop.permute.xlu2 %4517 }
 0x1bc   : > { %v4341_v22 = vsel %vm3784_vm6, %v7119_v12, %v4331_v15  ;;  %v4342_v55 = vsel %vm3784_vm6, %v4331_v15, %v4333_v32  ;;  %5614 = vmatmul.msk.f32.vlgmr.msrb.gmra.mxu1 %vm270_vm1, %v5606_v2 }
 0x1bd   : > { %5609 = vmatpush.msk.msra.mxu3 %vm274_vm0, %v4341_v22  ;;  %5611 = vmatpush.msk.msrb.mxu0 %vm274_vm0, %v4342_v55 }
 0x1be   : > { %5610 = vmatmul.msk.f32.vlgmr.msra.gmra.mxu3 %vm270_vm1, %v5606_v2  ;;  %5612 = vmatmul.msk.f32.vlgmr.msrb.gmra.mxu0 %vm270_vm1, %v5606_v2  ;;  %v2751_v17 = vpop.f32.mrf.mxu2  ;;  %v2771_v45 = vpop.f32.mrf.mxu3 }
 0x1bf   : > { %v2816_v14 = vadd.f32 %v2751_v17, %v2631_v40  ;;  %v2817_v10 = vadd.f32 %v2771_v45, %v2632_v13 }
 0x1c1   : > { %v4339_v46 = vpop.permute.xlu0 %4338 }
 0x1c2   : > { %v2811_v51 = vpop.f32.mrf.mxu1  ;;  %v2791_v7 = vpop.f32.mrf.mxu0 }
 0x1c3   : > { %v2819_v5 = vadd.f32 %v2811_v51, %v2634_v36  ;;  %v4337_v47 = vpop.permute.xlu1 %4336  ;;  %v2818_v24 = vadd.f32 %v2791_v7, %v2633_v3  ;;  %v4520_v37 = vpop.permute.xlu2 %4519 }
 0x1c4   : > { %v4344_v42 = vsel %vm3784_vm6, %v4335_v25, %v4337_v47  ;;  %v4345_v19 = vsel %vm3784_vm6, %v4337_v47, %v4339_v46  ;;  %v4529_v12 = vsel %vm4525_vm7, %v4518_v39, %v4520_v37 }
 0x1c5   : > { %5615 = vmatpush.msk.msrb.mxu2 %vm274_vm0, %v4344_v42  ;;  %5617 = vmatpush.msk.msrb.mxu3 %vm274_vm0, %v4345_v19 }
 0x1c6   : > { %5616 = vmatmul.msk.f32.vlgmr.msrb.gmra.mxu2 %vm270_vm1, %v5606_v2  ;;  %5618 = vmatmul.msk.f32.vlgmr.msrb.gmra.mxu3 %vm270_vm1, %v5606_v2  ;;  %v2896_v49 = vpop.f32.mrf.mxu2  ;;  %v2916_v6 = vpop.f32.mrf.mxu3 }
 0x1c7   : > { %v2999_v35 = vadd.f32 %v2896_v49, %v2814_v50  ;;  %v3000_v61 = vadd.f32 %v2916_v6, %v2815_v26  ;;  %5626 = vmatpush.msk.msra.mxu3 %vm274_vm0, %v4529_v12 }
 0x1ca   : > { %v2956_v43 = vpop.f32.mrf.mxu1  ;;  %v4512_v28 = vpop.permute.xlu0 %4511 }
 0x1cb   : > { %v3002_v41 = vadd.f32 %v2956_v43, %v2817_v10  ;;  %v4516_v54 = vpop.permute.xlu1 %4515  ;;  %v2936_v62 = vpop.f32.mrf.mxu0 }
 0x1cc   : > { %v4528_v9 = vsel %vm4525_vm7, %v4516_v54, %v4518_v39  ;;  %v3001_v29 = vadd.f32 %v2936_v62, %v2816_v14  ;;  %v4522_v30 = vpop.permute.xlu2 %4521 }
 0x1cd   : > { %5624 = vmatpush.msk.msra.mxu2 %vm274_vm0, %v4528_v9  ;;  %v4530_v20 = vsel %vm4525_vm7, %v4520_v37, %v4522_v30 }
 0x1ce   : > { %5625 = vmatmul.msk.f32.vlgmr.msra.gmra.mxu2 %vm270_vm1, %v5619_v59  ;;  %5627 = vmatmul.msk.f32.vlgmr.msra.gmra.mxu3 %vm270_vm1, %v5619_v59  ;;  %v2976_v31 = vpop.f32.mrf.mxu2  ;;  %v2996_v11 = vpop.f32.mrf.mxu3 }
 0x1cf   : > { %v3003_v60 = vadd.f32 %v2976_v31, %v2818_v24  ;;  %v3004_v56 = vadd.f32 %v2996_v11, %v2819_v5 }
 0x1d2   : > { %v3101_v53 = vpop.f32.mrf.mxu1  ;;  %v4698_v57 = vpop.permute.xlu0 %4697 }
 0x1d3   : > { %v3185_v44 = vadd.f32 %v3101_v53, %v3000_v61  ;;  %v4514_v63 = vpop.permute.xlu1 %4513  ;;  %v3081_v23 = vpop.f32.mrf.mxu0 }
 0x1d4   : > { %v4526_v38 = vsel %vm4525_vm7, %v4512_v28, %v4514_v63  ;;  %v4527_v8 = vsel %vm4525_vm7, %v4514_v63, %v4516_v54  ;;  %v3184_v33 = vadd.f32 %v3081_v23, %v2999_v35  ;;  %v4706_v0 = vpop.permute.xlu2 %4705 }
 0x1d5   : > { %5620 = vmatpush.msk.msra.mxu0 %vm274_vm0, %v4526_v38  ;;  %5622 = vmatpush.msk.msra.mxu1 %vm274_vm0, %v4527_v8 }
 0x1d6   : > { %5621 = vmatmul.msk.f32.vlgmr.msra.gmra.mxu0 %vm270_vm1, %v5619_v59  ;;  %5623 = vmatmul.msk.f32.vlgmr.msra.gmra.mxu1 %vm270_vm1, %v5619_v59  ;;  %v3121_v21 = vpop.f32.mrf.mxu2  ;;  %v3141_v1 = vpop.f32.mrf.mxu3 }
 0x1d7   : > { %v3186_v58 = vadd.f32 %v3121_v21, %v3001_v29  ;;  %v3187_v13 = vadd.f32 %v3141_v1, %v3002_v41  ;;  %5628 = vmatpush.msk.msrb.mxu0 %vm274_vm0, %v4530_v20 }
 0x1da   : > { %v3181_v4 = vpop.f32.mrf.mxu1  ;;  %v4702_v40 = vpop.permute.xlu0 %4701 }
 0x1db   : > { %v3189_v2 = vadd.f32 %v3181_v4, %v3004_v56  ;;  %v4700_v32 = vpop.permute.xlu1 %4699  ;;  %v3161_v16 = vpop.f32.mrf.mxu0 }
 0x1dc   : > { %v4711_v48 = vsel %vm4525_vm7, %v4698_v57, %v4700_v32  ;;  %v4712_v3 = vsel %vm4525_vm7, %v4700_v32, %v4702_v40  ;;  %v3188_v36 = vadd.f32 %v3161_v16, %v3003_v60  ;;  %v4710_v26 = vpop.permute.xlu2 %4709 }
 0x1dd   : > { %5637 = vmatpush.msk.msrb.mxu2 %vm274_vm0, %v4711_v48  ;;  %5639 = vmatpush.msk.msrb.mxu3 %vm274_vm0, %v4712_v3 }
 0x1de   : > { %5629 = vmatmul.msk.f32.vlgmr.msrb.gmra.mxu0 %vm270_vm1, %v5619_v59  ;;  %5638 = vmatmul.msk.f32.vlgmr.msrb.gmra.mxu2 %vm270_vm1, %v5636_v27  ;;  %v3266_v25 = vpop.f32.mrf.mxu2  ;;  %v3286_v52 = vpop.f32.mrf.mxu3 }
 0x1df   : > { %5640 = vmatmul.msk.f32.vlgmr.msrb.gmra.mxu3 %vm270_vm1, %v5636_v27  ;;  %v3369_v34 = vadd.f32 %v3266_v25, %v3184_v33  ;;  %v3370_v18 = vadd.f32 %v3286_v52, %v3185_v44 }
 0x1e2   : > { %v4708_v15 = vpop.permute.xlu0 %4707 }
 0x1e3   : > { %v3326_v50 = vpop.f32.mrf.mxu1  ;;  %v4524_v39 = vpop.permute.xlu1 %4523  ;;  %v4715_v22 = vsel %vm4525_vm7, %v4706_v0, %v4708_v15  ;;  %v4716_v55 = vsel %vm4525_vm7, %v4708_v15, %v4710_v26 }
 0x1e4   : > { %v3372_v17 = vadd.f32 %v3326_v50, %v3187_v13  ;;  %v4531_v45 = vsel %vm4525_vm7, %v4522_v30, %v4524_v39  ;;  %v3306_v14 = vpop.f32.mrf.mxu0  ;;  %5645 = vmatpush.msk.msra.mxu2 %vm274_vm0, %v4715_v22  ;;  %5647 = vmatpush.msk.msra.mxu3 %vm274_vm0, %v4716_v55  ;;  %v4883_v35 = vpop.permute.xlu2 %4882  ;;  %v5649_v30 = vld [vmem:[%s7299_s1 + $0x68] sm:$0xf] }
 0x1e5   : > { %v3371_v10 = vadd.f32 %v3306_v14, %v3186_v58  ;;  %5630 = vmatpush.msk.msrb.mxu1 %vm274_vm0, %v4531_v45 }
 0x1e6   : > { %5631 = vmatmul.msk.f32.vlgmr.msrb.gmra.mxu1 %vm270_vm1, %v5619_v59  ;;  %5646 = vmatmul.msk.f32.vlgmr.msra.gmra.mxu2 %vm270_vm1, %v5636_v27  ;;  %v3346_v46 = vpop.f32.mrf.mxu2  ;;  %v3366_v51 = vpop.f32.mrf.mxu3 }
 0x1e7   : > { %5648 = vmatmul.msk.f32.vlgmr.msra.gmra.mxu3 %vm270_vm1, %v5636_v27  ;;  %v3373_v7 = vadd.f32 %v3346_v46, %v3188_v36  ;;  %v3374_v5 = vadd.f32 %v3366_v51, %v3189_v2 }
 0x1ea   : > { %v4887_v47 = vpop.permute.xlu0 %4886 }
 0x1eb   : > { %v3472_v24 = vpop.f32.mrf.mxu1  ;;  %v4704_v37 = vpop.permute.xlu1 %4703 }
 0x1ec   : > { %v7205_v42 = vadd.f32 %v3472_v24, %v3370_v18  ;;  %v4713_v19 = vsel %vm4525_vm7, %v4702_v40, %v4704_v37  ;;  %v4714_v12 = vsel %vm4525_vm7, %v4704_v37, %v4706_v0  ;;  %v3452_v49 = vpop.f32.mrf.mxu0  ;;  %v4893_v44 = vpop.permute.xlu2 %4892 }
 0x1ed   : > { %v3555_v6 = vadd.f32 %v3452_v49, %v3369_v34  ;;  %5641 = vmatpush.msk.msra.mxu0 %vm274_vm0, %v4713_v19  ;;  %5643 = vmatpush.msk.msra.mxu1 %vm274_vm0, %v4714_v12 }
 0x1ee   : > { %5642 = vmatmul.msk.f32.vlgmr.msra.gmra.mxu0 %vm270_vm1, %v5636_v27  ;;  %5644 = vmatmul.msk.f32.vlgmr.msra.gmra.mxu1 %vm270_vm1, %v5636_v27  ;;  %v3492_v61 = vpop.f32.mrf.mxu2  ;;  %v3512_v43 = vpop.f32.mrf.mxu3 }
 0x1ef   : > { %v3557_v28 = vadd.f32 %v3492_v61, %v3371_v10  ;;  %v3558_v41 = vadd.f32 %v3512_v43, %v3372_v17 }
 0x1f2   : > { %v4885_v54 = vpop.permute.xlu0 %4884 }
 0x1f3   : > { %v3552_v62 = vpop.f32.mrf.mxu1  ;;  %v4889_v59 = vpop.permute.xlu1 %4888  ;;  %v4898_v9 = vsel %vm4896_vm8, %v4885_v54, %v4887_v47  ;;  %v4897_v29 = vsel %vm4896_vm8, %v4883_v35, %v4885_v54 }
 0x1f4   : > { %v7218_v31 = vadd.f32 %v3552_v62, %v3374_v5  ;;  %v4899_v11 = vsel %vm4896_vm8, %v4887_v47, %v4889_v59  ;;  %v3532_v60 = vpop.f32.mrf.mxu0  ;;  %5650 = vmatpush.msk.msrb.mxu0 %vm274_vm0, %v4897_v29  ;;  %5652 = vmatpush.msk.msrb.mxu1 %vm274_vm0, %v4898_v9 }
 0x1f5   : > { %v3559_v56 = vadd.f32 %v3532_v60, %v3373_v7  ;;  %5654 = vmatpush.msk.msrb.mxu2 %vm274_vm0, %v4899_v11 }
 0x1f6   : > { %5651 = vmatmul.msk.f32.vlgmr.msrb.gmra.mxu0 %vm270_vm1, %v5649_v30  ;;  %5653 = vmatmul.msk.f32.vlgmr.msrb.gmra.mxu1 %vm270_vm1, %v5649_v30  ;;  %v3637_v53 = vpop.f32.mrf.mxu2  ;;  %v3657_v4 = vpop.f32.mrf.mxu3 }
 0x1f7   : > { %5655 = vmatmul.msk.f32.vlgmr.msrb.gmra.mxu2 %vm270_vm1, %v5649_v30  ;;  %v3740_v57 = vadd.f32 %v3637_v53, %v3555_v6  ;;  %v3741_v12 = vadd.f32 %v3657_v4, %v7205_v42  ;;  %v7251_v42 = vld [vmem:[%s7300_s2] sm:$0x3f] }
 0x1fa   : > { %v4895_v63 = vpop.permute.xlu0 %4894 }
 0x1fb   : > { %v3697_v23 = vpop.f32.mrf.mxu1  ;;  %v4891_v20 = vpop.permute.xlu1 %4890  ;;  %v4902_v38 = vsel %vm4896_vm8, %v4893_v44, %v4895_v63 }
 0x1fc   : > { %v7228_v8 = vadd.f32 %v3697_v23, %v3558_v41  ;;  %v4900_v33 = vsel %vm4896_vm8, %v4889_v59, %v4891_v20  ;;  %v4901_v0 = vsel %vm4896_vm8, %v4891_v20, %v4893_v44  ;;  %v3677_v21 = vpop.f32.mrf.mxu0  ;;  %5660 = vmatpush.msk.msra.mxu1 %vm274_vm0, %v4902_v38 }
 0x1fd   : > { %v3742_v1 = vadd.f32 %v3677_v21, %v3557_v28  ;;  %5656 = vmatpush.msk.msrb.mxu3 %vm274_vm0, %v4900_v33  ;;  %5658 = vmatpush.msk.msra.mxu0 %vm274_vm0, %v4901_v0  ;;  %v5064_v33 = vperm.slane %v7251_v42, 0  ;;  %v5065_v0 = vperm.slane %v7251_v42, 1 }
 0x1fe   : > { %5657 = vmatmul.msk.f32.vlgmr.msrb.gmra.mxu3 %vm270_vm1, %v5649_v30  ;;  %5659 = vmatmul.msk.f32.vlgmr.msra.gmra.mxu0 %vm270_vm1, %v5649_v30  ;;  %v3717_v58 = vpop.f32.mrf.mxu2  ;;  %v3737_v32 = vpop.f32.mrf.mxu3 }
 0x1ff   : > { %5661 = vmatmul.msk.f32.vlgmr.msra.gmra.mxu1 %vm270_vm1, %v5649_v30  ;;  %v3744_v13 = vadd.f32 %v3717_v58, %v3559_v56  ;;  %v3745_v11 = vadd.f32 %v3737_v32, %v7218_v31 }
 0x203   : > { %v3843_v2 = vpop.f32.mrf.mxu1 }
 0x204   : > { %v3823_v40 = vpop.f32.mrf.mxu0  ;;  %v3927_v35 = vadd.f32 %v3843_v2, %v3741_v12 }
 0x205   : > { %v3926_v6 = vadd.f32 %v3823_v40, %v3740_v57 }
 0x20a   : > { %v3863_v16 = vpop.f32.mrf.mxu2 }
 0x20b   : > { %v3928_v60 = vadd.f32 %v3863_v16, %v3742_v1 }
 0x211   : > { %v3883_v3 = vpop.f32.mrf.mxu3 }
 0x212   : > { %v4008_v36 = vpop.f32.mrf.mxu2  ;;  %v3929_v40 = vadd.f32 %v3883_v3, %v7228_v8  ;;  %v5066_v8 = vperm.slane %v7251_v42, 2 }
 0x213   : > { %v3903_v27 = vpop.f32.mrf.mxu0  ;;  %v3923_v48 = vpop.f32.mrf.mxu1  ;;  %v4111_v43 = vadd.f32 %v4008_v36, %v3926_v6 }
 0x214   : > { %v3930_v57 = vadd.f32 %v3903_v27, %v3744_v13  ;;  %v3931_v44 = vadd.f32 %v3923_v48, %v3745_v11 }
 0x21a   : > { %v4028_v34 = vpop.f32.mrf.mxu3 }
 0x21b   : > { %v4048_v25 = vpop.f32.mrf.mxu0  ;;  %v4068_v52 = vpop.f32.mrf.mxu1  ;;  %v4112_v28 = vadd.f32 %v4028_v34, %v3927_v35 }
 0x21c   : > { %v4113_v63 = vadd.f32 %v4048_v25, %v3928_v60  ;;  %v4114_v48 = vadd.f32 %v4068_v52, %v3929_v40  ;;  %v5067_v60 = vperm.slane %v7251_v42, 3 }
 0x222   : > { %v4088_v18 = vpop.f32.mrf.mxu2 }
 0x223   : > { %v4213_v50 = vpop.f32.mrf.mxu1  ;;  %v4115_v31 = vadd.f32 %v4088_v18, %v3930_v57 }
 0x224   : > { %v4297_v62 = vadd.f32 %v4213_v50, %v4112_v28 }
 0x229   : > { %v4108_v15 = vpop.f32.mrf.mxu3 }
 0x22a   : > { %v4233_v39 = vpop.f32.mrf.mxu2  ;;  %v4116_v21 = vadd.f32 %v4108_v15, %v3931_v44 }
 0x22b   : > { %v4193_v26 = vpop.f32.mrf.mxu0  ;;  %v4298_v1 = vadd.f32 %v4233_v39, %v4113_v63 }
 0x22c   : > { %v4296_v59 = vadd.f32 %v4193_v26, %v4111_v43 }
 0x231   : > { %v4293_v55 = vpop.f32.mrf.mxu1  ;;  %v7238_v17 = vpop.f32.mrf.mxu3 }
 0x232   : > { %v4301_v16 = vadd.f32 %v4293_v55, %v4116_v21 }
 0x233   : > { %v4273_v22 = vpop.f32.mrf.mxu0 }
 0x234   : > { %v4300_v13 = vadd.f32 %v4273_v22, %v4115_v31 }
 0x239   : > { %v4378_v45 = vpop.f32.mrf.mxu2  ;;  %v7240_v46 = vpop.f32.mrf.mxu1 }
 0x23a   : > { %v4481_v9 = vadd.f32 %v4378_v45, %v4296_v59 }
 0x23b   : > { %v4418_v14 = vpop.f32.mrf.mxu0 }
 0x23c   : > { %v4483_v27 = vadd.f32 %v4418_v14, %v4298_v1 }
 0x241   : > { %v4398_v10 = vpop.f32.mrf.mxu3 }
 0x242   : > { %v4482_v29 = vadd.f32 %v4398_v10, %v4297_v62 }
 0x249   : > { %v4458_v51 = vpop.f32.mrf.mxu2  ;;  %v4478_v47 = vpop.f32.mrf.mxu3 }
 0x24a   : > { %v4485_v18 = vadd.f32 %v4458_v51, %v4300_v13  ;;  %v4486_v26 = vadd.f32 %v4478_v47, %v4301_v16 }
 0x251   : > { %v4604_v24 = vpop.f32.mrf.mxu2  ;;  %v7243_v49 = vpop.f32.mrf.mxu3 }
 0x252   : > { %v4669_v15 = vadd.f32 %v4604_v24, %v4483_v27 }
 0x253   : > { %v4564_v7 = vpop.f32.mrf.mxu0  ;;  %v4584_v5 = vpop.f32.mrf.mxu1 }
 0x254   : > { %v4667_v56 = vadd.f32 %v4564_v7, %v4481_v9  ;;  %v4668_v53 = vadd.f32 %v4584_v5, %v4482_v29  ;;  %v4299_v7 = vadd.f32 %v7238_v17, %v4114_v48 }
 0x25b   : > { %v4644_v37 = vpop.f32.mrf.mxu0 }
 0x25c   : > { %v4671_v51 = vadd.f32 %v4644_v37, %v4485_v18  ;;  %v5068_v37 = vperm.slane %v7251_v42, 4 }
 0x261   : > { %v4749_v61 = vpop.f32.mrf.mxu2 }
 0x262   : > { %v4769_v30 = vpop.f32.mrf.mxu3  ;;  %v4852_v23 = vadd.f32 %v4749_v61, %v4667_v56  ;;  %v4484_v61 = vadd.f32 %v7240_v46, %v4299_v7  ;;  %v5069_v46 = vperm.slane %v7251_v42, 5 }
 0x263   : > { %v4664_v19 = vpop.f32.mrf.mxu1  ;;  %v4853_v20 = vadd.f32 %v4769_v30, %v4668_v53 }
 0x264   : > { %v4672_v55 = vadd.f32 %v4664_v19, %v4486_v26  ;;  %v4670_v59 = vadd.f32 %v7243_v49, %v4484_v61 }
 0x269   : > { %v4829_v38 = vpop.f32.mrf.mxu2 }
 0x26a   : > { %v4849_v3 = vpop.f32.mrf.mxu3  ;;  %v4856_v43 = vadd.f32 %v4829_v38, %v4671_v51 }
 0x26b   : > { %v4789_v41 = vpop.f32.mrf.mxu0  ;;  %v7245_v54 = vpop.f32.mrf.mxu1  ;;  %v4857_v24 = vadd.f32 %v4849_v3, %v4672_v55 }
 0x26c   : > { %v4854_v45 = vadd.f32 %v4789_v41, %v4669_v15  ;;  %v4855_v11 = vadd.f32 %v7245_v54, %v4670_v59 }
 0x273   : > { %v4935_v58 = vpop.f32.mrf.mxu0  ;;  %v4955_v4 = vpop.f32.mrf.mxu1 }
 0x274   : > { %v5038_v2 = vadd.f32 %v4935_v58, %v4852_v23  ;;  %v5039_v32 = vadd.f32 %v4955_v4, %v4853_v20 }
 0x276   : > { %v5076_v36 = vmul.f32 %v5064_v33, %v5038_v2  ;;  %v5050_v25 = vrot.slane %v5039_v32, 4  ;;  %v5077_v34 = vmul.f32 %v5065_v0, %v5039_v32 }
 0x278   : > { %v5082_v50 = vsel %vm274_vm0, %v5076_v36, 0.0  ;;  %v5097_v39 = vmul.f32 %v5076_v36, %v5038_v2  ;;  %v5053_v52 = vsel %vm274_vm0, %v5038_v2, %v5050_v25  ;;  %v5083_v22 = vsel %vm274_vm0, %v5077_v34, 0.0 }
 0x279   : > { %5059 = vst [vmem:[%s7260_s21] sm:$0xff] %v5053_v52  ;;  %v5084_v14 = vadd.f32 %v5083_v22, %v5082_v50  ;;  %v5098_v10 = vmul.f32 %v5077_v34, %v5039_v32 }
 0x27a   : > { %v5103_v5 = vsel %vm274_vm0, %v5097_v39, 0.0  ;;  %v4975_v47 = vpop.f32.mrf.mxu2 }
 0x27b   : > { %v5104_v12 = vsel %vm274_vm0, %v5098_v10, 0.0  ;;  %v5040_v6 = vadd.f32 %v4975_v47, %v4854_v45  ;;  %v5015_v35 = vpop.f32.mrf.mxu0 }
 0x27c   : > { %v5105_v28 = vadd.f32 %v5104_v12, %v5103_v5  ;;  %v5035_v19 = vpop.f32.mrf.mxu1  ;;  %v5042_v17 = vadd.f32 %v5015_v35, %v4856_v43 }
 0x27d   : > { %v5078_v41 = vmul.f32 %v5066_v8, %v5040_v6  ;;  %v5043_v62 = vadd.f32 %v5035_v19, %v4857_v24 }
 0x27e   : > { %v5080_v44 = vmul.f32 %v5068_v37, %v5042_v17 }
 0x27f   : > { %v5085_v9 = vsel %vm274_vm0, %v5078_v41, 0.0  ;;  %v5099_v29 = vmul.f32 %v5078_v41, %v5040_v6  ;;  %v5052_v30 = vrot.slane %v5043_v62, 4  ;;  %v5081_v33 = vmul.f32 %v5069_v46, %v5043_v62 }
 0x280   : > { %v5086_v56 = vadd.f32 %v5085_v9, %v5084_v14  ;;  %v5101_v0 = vmul.f32 %v5080_v44, %v5042_v17  ;;  %v5089_v1 = vsel %vm274_vm0, %v5080_v44, 0.0 }
 0x281   : > { %v5106_v53 = vsel %vm274_vm0, %v5099_v29, 0.0  ;;  %v5055_v57 = vsel %vm274_vm0, %v5042_v17, %v5052_v30  ;;  %v4995_v49 = vpop.f32.mrf.mxu3  ;;  %v5102_v58 = vmul.f32 %v5081_v33, %v5043_v62  ;;  %v5091_v32 = vsel %vm274_vm0, %v5081_v33, 0.0 }
 0x282   : > { %5061 = vst [vmem:[%s7260_s21 + $0x10] sm:$0xff] %v5055_v57  ;;  %v5041_v63 = vadd.f32 %v4995_v49, %v4855_v11  ;;  %v5107_v23 = vadd.f32 %v5106_v53, %v5105_v28  ;;  %v5110_v13 = vsel %vm274_vm0, %v5101_v0, 0.0 }
 0x283   : > { %v5112_v48 = vsel %vm274_vm0, %v5102_v58, 0.0 }
 0x284   : > { %v5051_v20 = vrot.slane %v5041_v63, 4  ;;  %v5079_v38 = vmul.f32 %v5067_v60, %v5041_v63 }
 0x286   : > { %v5054_v54 = vsel %vm274_vm0, %v5040_v6, %v5051_v20  ;;  %v5100_v31 = vmul.f32 %v5079_v38, %v5041_v63  ;;  %v5087_v42 = vsel %vm274_vm0, %v5079_v38, 0.0 }
 0x287   : > { %5060 = vst [vmem:[%s7260_s21 + $0x8] sm:$0xff] %v5054_v54  ;;  %v5088_v21 = vadd.f32 %v5087_v42, %v5086_v56 }
 0x288   : > { %v5108_v4 = vsel %vm274_vm0, %v5100_v31, 0.0 }
 0x289   : > { %v5090_v40 = vadd.f32 %v5089_v1, %v5088_v21  ;;  %v5109_v2 = vadd.f32 %v5108_v4, %v5107_v23 }
 0x28b   : > { %v5092_v16 = vadd.f32 %v5091_v32, %v5090_v40  ;;  %v5111_v27 = vadd.f32 %v5110_v13, %v5109_v2 }
 0x28d   : > { %5093 = vadd.xlane.f32.xlu1 %v5092_v16  ;;  %v5113_v36 = vadd.f32 %v5112_v48, %v5111_v27 }
 0x28f   : > { %5114 = vadd.xlane.f32.xlu2 %v5113_v36 }
 0x300   : > { %v5094_v25 = vpop.xlane.xlu1 %5093 }
 0x301   : > { %5096 = vst.msk [vmem:[%s241_s26] sm:$0xf] %vm5095_vm9, %v5094_v25 }
 0x302   : > { %v5115_v34 = vpop.xlane.xlu2 %5114 }
 0x303   : > { %5116 = vst.msk [vmem:[%s245_s29] sm:$0xf] %vm5095_vm9, %v5115_v34 }
 0x304 PF: > { %s16_s18 = sadd.s32 1, %s5687_s18  }
 0x305   : > { %p13_p4 = scmp.ge.s32.totalorder %s16_s18, 4  }
 0x307   :  { %15 = sbr.rel (!%p13_p4) target bundleno = 1 (0x1), region = 192 }

</bundles_post_ra>
